<compile_context>
chip_gen: v7x
topology: tpu7x:2x2x1
jax: 0.10.0
libtpu: 0.0.40
codegen_flags: <defaults>
</compile_context>

<pallas_src>
import functools

import jax
import jax.numpy as jnp
from jax.experimental import pallas as pl
from jax.experimental.pallas import tpu as pltpu


def _conv2d_roll_fma_kernel(x_ref, w_ref, b_ref, o_ref, *,
                            N, Cin, H, W, KH, KW, COUT8):
    """Direct valid conv via per-tap pltpu.roll + VPU broadcast-FMAs.

    x_ref: (N*Cin, H*W)        each row = one (n, cin) image plane, lane-aligned
    w_ref: (COUT8, Cin*KH*KW)  OIHW weights flattened, Cout zero-padded to 8
    b_ref: (COUT8, 1)          bias, zero-padded to 8 rows
    o_ref: (N*COUT8, H*W)      rows n*COUT8 + co hold output lanes p = oh*W + ow.
                               Rows co >= Cout, lanes with ow >= OW or oh >= OH
                               are garbage and MUST be sliced off by the wrapper.
    """
    HW = H * W
    w_all = w_ref[...]                                            # (COUT8, 27)
    # Bias-initialised accumulator, hoisted out of the batch loop.
    acc0 = jnp.broadcast_to(b_ref[...], (COUT8, HW)).astype(jnp.float32)

    outs = []
    for n in range(N):                       # N is tiny; unrolled, one grid step
        acc = acc0
        for cin in range(Cin):
            row = n * Cin + cin
            slab = x_ref[row:row + 1, :]                          # (1, HW) aligned
            for kh in range(KH):
                for kw in range(KW):
                    delta = kh * W + kw                           # tap lane offset
                    k = (cin * KH + kh) * KW + kw                 # flat weight col
                    if delta == 0:
                        xs = slab
                    else:
                        # rolled[p] = slab[p + delta] for p < HW - delta; the
                        # wrapped lanes p >= HW - delta are never valid outputs.
                        xs = pltpu.roll(slab, HW - delta, axis=1)  # XLU rotate
                    acc = acc + w_all[:, k:k + 1] * xs            # VPU FMA (COUT8, HW)
        outs.append(acc)

    full = outs[0] if N == 1 else jnp.concatenate(outs, axis=0)  # (N*COUT8, HW)
    o_ref[...] = full.astype(o_ref.dtype)                        # single dense store


def my_conv_forward(x_nchw, w_oihw, bias):
    """Forward pass of MyConv: conv2d (valid, stride 1) + reshape(-1, 3, 30, 30)."""
    N, Cin, H, W = x_nchw.shape
    Cout, _, KH, KW = w_oihw.shape
    OH, OW = H - KH + 1, W - KW + 1
    HW = H * W
    COUT8 = ((Cout + 7) // 8) * 8            # sublane-grain-padded output channels

    # Free row-major view of the input; tiny one-off pads of the parameters.
    x2 = x_nchw.reshape(N * Cin, HW)                              # (6, 1024)
    w2 = w_oihw.reshape(Cout, Cin * KH * KW)                      # (6, 27)
    w8 = jnp.zeros((COUT8, Cin * KH * KW), w2.dtype).at[:Cout].set(w2)
    b8 = jnp.zeros((COUT8, 1), bias.dtype).at[:Cout, 0].set(bias)

    kernel = functools.partial(
        _conv2d_roll_fma_kernel,
        N=N, Cin=Cin, H=H, W=W, KH=KH, KW=KW, COUT8=COUT8)

    out_full = pl.pallas_call(
        kernel,
        out_shape=jax.ShapeDtypeStruct((N * COUT8, HW), x_nchw.dtype),
        grid=(1,),  # batch folded into one step; blocks = full (tiny) arrays
        in_specs=[
            pl.BlockSpec((N * Cin, HW), lambda i: (0, 0)),
            pl.BlockSpec((COUT8, Cin * KH * KW), lambda i: (0, 0)),
            pl.BlockSpec((COUT8, 1), lambda i: (0, 0)),
        ],
        out_specs=pl.BlockSpec((N * COUT8, HW), lambda i: (0, 0)),
        compiler_params=pltpu.CompilerParams(
            dimension_semantics=("arbitrary",)),
    )(x2, w8, b8)

    # (N*COUT8, HW) -> (N, COUT8, H, W) is a free row-major view.  Rows co >= Cout
    # and columns/rows beyond (OH, OW) hold undefined/wrap-around garbage and are
    # sliced off here — never consume out_full directly.
    out = out_full.reshape(N, COUT8, H, W)[:, :Cout, :OH, :OW]    # (N, 6, 30, 30)
    return out.reshape(-1, 3, OH, OW)


if __name__ == "__main__":
    key = jax.random.PRNGKey(0)
    kx, kw_key, kb_key = jax.random.split(key, 3)

    # Input must be (N, 3, 32, 32) so the post-conv reshape to (-1, 3, 30, 30)
    # is valid (conv output is (N, 6, 30, 30)).
    N, Cin, H, W = 2, 3, 32, 32
    Cout, KH, KW = 6, 3, 3

    x = jax.random.normal(kx, (N, Cin, H, W), dtype=jnp.float32)

    # Deterministic parameter init (PyTorch-style uniform(-1/sqrt(fan_in), +)).
    fan_in = Cin * KH * KW
    bound = 1.0 / (fan_in ** 0.5)
    weight = jax.random.uniform(kw_key, (Cout, Cin, KH, KW),
                                minval=-bound, maxval=bound, dtype=jnp.float32)
    bias = jax.random.uniform(kb_key, (Cout,),
                              minval=-bound, maxval=bound, dtype=jnp.float32)

    out = jax.jit(my_conv_forward)(x, weight, bias)
    out = jax.block_until_ready(out)
    assert out.shape == (2 * N, 3, H - KH + 1, W - KW + 1), out.shape

    # Cross-check against XLA's native convolution.
    ref = jax.lax.conv_general_dilated(
        x, weight, window_strides=(1, 1), padding="VALID",
        dimension_numbers=("NCHW", "OIHW", "NCHW"))
    ref = (ref + bias[None, :, None, None]).reshape(-1, 3, 30, 30)
    assert jnp.allclose(out, ref, atol=1e-5, rtol=1e-5), float(
        jnp.max(jnp.abs(out - ref)))

    print("KERNEL_OK")
</pallas_src>

<mosaic_0001>
module attributes {stable_mosaic.version = 11 : i64} {
  func.func @_conv2d_roll_fma_kernel(%arg0: i32, %arg1: memref<6x1024xf32, #tpu.memory_space<vmem>>, %arg2: memref<8x27xf32, #tpu.memory_space<vmem>>, %arg3: memref<8x1xf32, #tpu.memory_space<vmem>>, %arg4: memref<16x1024xf32, #tpu.memory_space<vmem>>) attributes {dimension_semantics = [#tpu.dimension_semantics<arbitrary>], iteration_bounds = array<i64: 1>, scalar_prefetch = 0 : i64, scratch_operands = 0 : i64, tpu.core_type = #tpu.core_type<tc>, window_params = [{pipeline_mode = #tpu.pipeline_mode<synchronous>, transform_indices = @transform_0, window_bounds = array<i64: 6, 1024>}, {pipeline_mode = #tpu.pipeline_mode<synchronous>, transform_indices = @transform_1, window_bounds = array<i64: 8, 27>}, {pipeline_mode = #tpu.pipeline_mode<synchronous>, transform_indices = @transform_2, window_bounds = array<i64: 8, 1>}, {pipeline_mode = #tpu.pipeline_mode<synchronous>, transform_indices = @transform_3, window_bounds = array<i64: 16, 1024>}]} {
    %c0 = arith.constant 0 : index
    %c0_0 = arith.constant 0 : index
    %0 = vector.load %arg2[%c0, %c0_0] : memref<8x27xf32, #tpu.memory_space<vmem>>, vector<8x27xf32>
    %c0_1 = arith.constant 0 : index
    %c0_2 = arith.constant 0 : index
    %1 = vector.load %arg3[%c0_1, %c0_2] : memref<8x1xf32, #tpu.memory_space<vmem>>, vector<8x1xf32>
    %2 = vector.shape_cast %1 : vector<8x1xf32> to vector<8x1xf32>
    %3 = vector.broadcast %2 : vector<8x1xf32> to vector<8x1024xf32>
    %c0_3 = arith.constant 0 : index
    %c0_4 = arith.constant 0 : index
    %4 = vector.load %arg1[%c0_3, %c0_4] : memref<6x1024xf32, #tpu.memory_space<vmem>>, vector<1x1024xf32>
    %5 = vector.extract_strided_slice %0 {offsets = [0, 0], sizes = [8, 1], strides = [1, 1]} : vector<8x27xf32> to vector<8x1xf32>
    %6 = vector.broadcast %5 : vector<8x1xf32> to vector<8x1024xf32>
    %7 = vector.broadcast %4 : vector<1x1024xf32> to vector<8x1024xf32>
    %8 = arith.mulf %6, %7 : vector<8x1024xf32>
    %9 = arith.addf %3, %8 : vector<8x1024xf32>
    %c1023_i32 = arith.constant 1023 : i32
    %10 = tpu.dynamic_rotate %4 by %c1023_i32 dim 1 : vector<1x1024xf32>, i32 -> vector<1x1024xf32>
    %11 = vector.extract_strided_slice %0 {offsets = [0, 1], sizes = [8, 1], strides = [1, 1]} : vector<8x27xf32> to vector<8x1xf32>
    %12 = vector.broadcast %11 : vector<8x1xf32> to vector<8x1024xf32>
    %13 = vector.broadcast %10 : vector<1x1024xf32> to vector<8x1024xf32>
    %14 = arith.mulf %12, %13 : vector<8x1024xf32>
    %15 = arith.addf %9, %14 : vector<8x1024xf32>
    %c1022_i32 = arith.constant 1022 : i32
    %16 = tpu.dynamic_rotate %4 by %c1022_i32 dim 1 : vector<1x1024xf32>, i32 -> vector<1x1024xf32>
    %17 = vector.extract_strided_slice %0 {offsets = [0, 2], sizes = [8, 1], strides = [1, 1]} : vector<8x27xf32> to vector<8x1xf32>
    %18 = vector.broadcast %17 : vector<8x1xf32> to vector<8x1024xf32>
    %19 = vector.broadcast %16 : vector<1x1024xf32> to vector<8x1024xf32>
    %20 = arith.mulf %18, %19 : vector<8x1024xf32>
    %21 = arith.addf %15, %20 : vector<8x1024xf32>
    %c992_i32 = arith.constant 992 : i32
    %22 = tpu.dynamic_rotate %4 by %c992_i32 dim 1 : vector<1x1024xf32>, i32 -> vector<1x1024xf32>
    %23 = vector.extract_strided_slice %0 {offsets = [0, 3], sizes = [8, 1], strides = [1, 1]} : vector<8x27xf32> to vector<8x1xf32>
    %24 = vector.broadcast %23 : vector<8x1xf32> to vector<8x1024xf32>
    %25 = vector.broadcast %22 : vector<1x1024xf32> to vector<8x1024xf32>
    %26 = arith.mulf %24, %25 : vector<8x1024xf32>
    %27 = arith.addf %21, %26 : vector<8x1024xf32>
    %c991_i32 = arith.constant 991 : i32
    %28 = tpu.dynamic_rotate %4 by %c991_i32 dim 1 : vector<1x1024xf32>, i32 -> vector<1x1024xf32>
    %29 = vector.extract_strided_slice %0 {offsets = [0, 4], sizes = [8, 1], strides = [1, 1]} : vector<8x27xf32> to vector<8x1xf32>
    %30 = vector.broadcast %29 : vector<8x1xf32> to vector<8x1024xf32>
    %31 = vector.broadcast %28 : vector<1x1024xf32> to vector<8x1024xf32>
    %32 = arith.mulf %30, %31 : vector<8x1024xf32>
    %33 = arith.addf %27, %32 : vector<8x1024xf32>
    %c990_i32 = arith.constant 990 : i32
    %34 = tpu.dynamic_rotate %4 by %c990_i32 dim 1 : vector<1x1024xf32>, i32 -> vector<1x1024xf32>
    %35 = vector.extract_strided_slice %0 {offsets = [0, 5], sizes = [8, 1], strides = [1, 1]} : vector<8x27xf32> to vector<8x1xf32>
    %36 = vector.broadcast %35 : vector<8x1xf32> to vector<8x1024xf32>
    %37 = vector.broadcast %34 : vector<1x1024xf32> to vector<8x1024xf32>
    %38 = arith.mulf %36, %37 : vector<8x1024xf32>
    %39 = arith.addf %33, %38 : vector<8x1024xf32>
    %c960_i32 = arith.constant 960 : i32
    %40 = tpu.dynamic_rotate %4 by %c960_i32 dim 1 : vector<1x1024xf32>, i32 -> vector<1x1024xf32>
    %41 = vector.extract_strided_slice %0 {offsets = [0, 6], sizes = [8, 1], strides = [1, 1]} : vector<8x27xf32> to vector<8x1xf32>
    %42 = vector.broadcast %41 : vector<8x1xf32> to vector<8x1024xf32>
    %43 = vector.broadcast %40 : vector<1x1024xf32> to vector<8x1024xf32>
    %44 = arith.mulf %42, %43 : vector<8x1024xf32>
    %45 = arith.addf %39, %44 : vector<8x1024xf32>
    %c959_i32 = arith.constant 959 : i32
    %46 = tpu.dynamic_rotate %4 by %c959_i32 dim 1 : vector<1x1024xf32>, i32 -> vector<1x1024xf32>
    %47 = vector.extract_strided_slice %0 {offsets = [0, 7], sizes = [8, 1], strides = [1, 1]} : vector<8x27xf32> to vector<8x1xf32>
    %48 = vector.broadcast %47 : vector<8x1xf32> to vector<8x1024xf32>
    %49 = vector.broadcast %46 : vector<1x1024xf32> to vector<8x1024xf32>
    %50 = arith.mulf %48, %49 : vector<8x1024xf32>
    %51 = arith.addf %45, %50 : vector<8x1024xf32>
    %c958_i32 = arith.constant 958 : i32
    %52 = tpu.dynamic_rotate %4 by %c958_i32 dim 1 : vector<1x1024xf32>, i32 -> vector<1x1024xf32>
    %53 = vector.extract_strided_slice %0 {offsets = [0, 8], sizes = [8, 1], strides = [1, 1]} : vector<8x27xf32> to vector<8x1xf32>
    %54 = vector.broadcast %53 : vector<8x1xf32> to vector<8x1024xf32>
    %55 = vector.broadcast %52 : vector<1x1024xf32> to vector<8x1024xf32>
    %56 = arith.mulf %54, %55 : vector<8x1024xf32>
    %57 = arith.addf %51, %56 : vector<8x1024xf32>
    %c1 = arith.constant 1 : index
    %c0_5 = arith.constant 0 : index
    %58 = vector.load %arg1[%c1, %c0_5] : memref<6x1024xf32, #tpu.memory_space<vmem>>, vector<1x1024xf32>
    %59 = vector.extract_strided_slice %0 {offsets = [0, 9], sizes = [8, 1], strides = [1, 1]} : vector<8x27xf32> to vector<8x1xf32>
    %60 = vector.broadcast %59 : vector<8x1xf32> to vector<8x1024xf32>
    %61 = vector.broadcast %58 : vector<1x1024xf32> to vector<8x1024xf32>
    %62 = arith.mulf %60, %61 : vector<8x1024xf32>
    %63 = arith.addf %57, %62 : vector<8x1024xf32>
    %c1023_i32_6 = arith.constant 1023 : i32
    %64 = tpu.dynamic_rotate %58 by %c1023_i32_6 dim 1 : vector<1x1024xf32>, i32 -> vector<1x1024xf32>
    %65 = vector.extract_strided_slice %0 {offsets = [0, 10], sizes = [8, 1], strides = [1, 1]} : vector<8x27xf32> to vector<8x1xf32>
    %66 = vector.broadcast %65 : vector<8x1xf32> to vector<8x1024xf32>
    %67 = vector.broadcast %64 : vector<1x1024xf32> to vector<8x1024xf32>
    %68 = arith.mulf %66, %67 : vector<8x1024xf32>
    %69 = arith.addf %63, %68 : vector<8x1024xf32>
    %c1022_i32_7 = arith.constant 1022 : i32
    %70 = tpu.dynamic_rotate %58 by %c1022_i32_7 dim 1 : vector<1x1024xf32>, i32 -> vector<1x1024xf32>
    %71 = vector.extract_strided_slice %0 {offsets = [0, 11], sizes = [8, 1], strides = [1, 1]} : vector<8x27xf32> to vector<8x1xf32>
    %72 = vector.broadcast %71 : vector<8x1xf32> to vector<8x1024xf32>
    %73 = vector.broadcast %70 : vector<1x1024xf32> to vector<8x1024xf32>
    %74 = arith.mulf %72, %73 : vector<8x1024xf32>
    %75 = arith.addf %69, %74 : vector<8x1024xf32>
    %c992_i32_8 = arith.constant 992 : i32
    %76 = tpu.dynamic_rotate %58 by %c992_i32_8 dim 1 : vector<1x1024xf32>, i32 -> vector<1x1024xf32>
    %77 = vector.extract_strided_slice %0 {offsets = [0, 12], sizes = [8, 1], strides = [1, 1]} : vector<8x27xf32> to vector<8x1xf32>
    %78 = vector.broadcast %77 : vector<8x1xf32> to vector<8x1024xf32>
    %79 = vector.broadcast %76 : vector<1x1024xf32> to vector<8x1024xf32>
    %80 = arith.mulf %78, %79 : vector<8x1024xf32>
    %81 = arith.addf %75, %80 : vector<8x1024xf32>
    %c991_i32_9 = arith.constant 991 : i32
    %82 = tpu.dynamic_rotate %58 by %c991_i32_9 dim 1 : vector<1x1024xf32>, i32 -> vector<1x1024xf32>
    %83 = vector.extract_strided_slice %0 {offsets = [0, 13], sizes = [8, 1], strides = [1, 1]} : vector<8x27xf32> to vector<8x1xf32>
    %84 = vector.broadcast %83 : vector<8x1xf32> to vector<8x1024xf32>
    %85 = vector.broadcast %82 : vector<1x1024xf32> to vector<8x1024xf32>
    %86 = arith.mulf %84, %85 : vector<8x1024xf32>
    %87 = arith.addf %81, %86 : vector<8x1024xf32>
    %c990_i32_10 = arith.constant 990 : i32
    %88 = tpu.dynamic_rotate %58 by %c990_i32_10 dim 1 : vector<1x1024xf32>, i32 -> vector<1x1024xf32>
    %89 = vector.extract_strided_slice %0 {offsets = [0, 14], sizes = [8, 1], strides = [1, 1]} : vector<8x27xf32> to vector<8x1xf32>
    %90 = vector.broadcast %89 : vector<8x1xf32> to vector<8x1024xf32>
    %91 = vector.broadcast %88 : vector<1x1024xf32> to vector<8x1024xf32>
    %92 = arith.mulf %90, %91 : vector<8x1024xf32>
    %93 = arith.addf %87, %92 : vector<8x1024xf32>
    %c960_i32_11 = arith.constant 960 : i32
    %94 = tpu.dynamic_rotate %58 by %c960_i32_11 dim 1 : vector<1x1024xf32>, i32 -> vector<1x1024xf32>
    %95 = vector.extract_strided_slice %0 {offsets = [0, 15], sizes = [8, 1], strides = [1, 1]} : vector<8x27xf32> to vector<8x1xf32>
    %96 = vector.broadcast %95 : vector<8x1xf32> to vector<8x1024xf32>
    %97 = vector.broadcast %94 : vector<1x1024xf32> to vector<8x1024xf32>
    %98 = arith.mulf %96, %97 : vector<8x1024xf32>
    %99 = arith.addf %93, %98 : vector<8x1024xf32>
    %c959_i32_12 = arith.constant 959 : i32
    %100 = tpu.dynamic_rotate %58 by %c959_i32_12 dim 1 : vector<1x1024xf32>, i32 -> vector<1x1024xf32>
    %101 = vector.extract_strided_slice %0 {offsets = [0, 16], sizes = [8, 1], strides = [1, 1]} : vector<8x27xf32> to vector<8x1xf32>
    %102 = vector.broadcast %101 : vector<8x1xf32> to vector<8x1024xf32>
    %103 = vector.broadcast %100 : vector<1x1024xf32> to vector<8x1024xf32>
    %104 = arith.mulf %102, %103 : vector<8x1024xf32>
    %105 = arith.addf %99, %104 : vector<8x1024xf32>
    %c958_i32_13 = arith.constant 958 : i32
    %106 = tpu.dynamic_rotate %58 by %c958_i32_13 dim 1 : vector<1x1024xf32>, i32 -> vector<1x1024xf32>
    %107 = vector.extract_strided_slice %0 {offsets = [0, 17], sizes = [8, 1], strides = [1, 1]} : vector<8x27xf32> to vector<8x1xf32>
    %108 = vector.broadcast %107 : vector<8x1xf32> to vector<8x1024xf32>
    %109 = vector.broadcast %106 : vector<1x1024xf32> to vector<8x1024xf32>
    %110 = arith.mulf %108, %109 : vector<8x1024xf32>
    %111 = arith.addf %105, %110 : vector<8x1024xf32>
    %c2 = arith.constant 2 : index
    %c0_14 = arith.constant 0 : index
    %112 = vector.load %arg1[%c2, %c0_14] : memref<6x1024xf32, #tpu.memory_space<vmem>>, vector<1x1024xf32>
    %113 = vector.extract_strided_slice %0 {offsets = [0, 18], sizes = [8, 1], strides = [1, 1]} : vector<8x27xf32> to vector<8x1xf32>
    %114 = vector.broadcast %113 : vector<8x1xf32> to vector<8x1024xf32>
    %115 = vector.broadcast %112 : vector<1x1024xf32> to vector<8x1024xf32>
    %116 = arith.mulf %114, %115 : vector<8x1024xf32>
    %117 = arith.addf %111, %116 : vector<8x1024xf32>
    %c1023_i32_15 = arith.constant 1023 : i32
    %118 = tpu.dynamic_rotate %112 by %c1023_i32_15 dim 1 : vector<1x1024xf32>, i32 -> vector<1x1024xf32>
    %119 = vector.extract_strided_slice %0 {offsets = [0, 19], sizes = [8, 1], strides = [1, 1]} : vector<8x27xf32> to vector<8x1xf32>
    %120 = vector.broadcast %119 : vector<8x1xf32> to vector<8x1024xf32>
    %121 = vector.broadcast %118 : vector<1x1024xf32> to vector<8x1024xf32>
    %122 = arith.mulf %120, %121 : vector<8x1024xf32>
    %123 = arith.addf %117, %122 : vector<8x1024xf32>
    %c1022_i32_16 = arith.constant 1022 : i32
    %124 = tpu.dynamic_rotate %112 by %c1022_i32_16 dim 1 : vector<1x1024xf32>, i32 -> vector<1x1024xf32>
    %125 = vector.extract_strided_slice %0 {offsets = [0, 20], sizes = [8, 1], strides = [1, 1]} : vector<8x27xf32> to vector<8x1xf32>
    %126 = vector.broadcast %125 : vector<8x1xf32> to vector<8x1024xf32>
    %127 = vector.broadcast %124 : vector<1x1024xf32> to vector<8x1024xf32>
    %128 = arith.mulf %126, %127 : vector<8x1024xf32>
    %129 = arith.addf %123, %128 : vector<8x1024xf32>
    %c992_i32_17 = arith.constant 992 : i32
    %130 = tpu.dynamic_rotate %112 by %c992_i32_17 dim 1 : vector<1x1024xf32>, i32 -> vector<1x1024xf32>
    %131 = vector.extract_strided_slice %0 {offsets = [0, 21], sizes = [8, 1], strides = [1, 1]} : vector<8x27xf32> to vector<8x1xf32>
    %132 = vector.broadcast %131 : vector<8x1xf32> to vector<8x1024xf32>
    %133 = vector.broadcast %130 : vector<1x1024xf32> to vector<8x1024xf32>
    %134 = arith.mulf %132, %133 : vector<8x1024xf32>
    %135 = arith.addf %129, %134 : vector<8x1024xf32>
    %c991_i32_18 = arith.constant 991 : i32
    %136 = tpu.dynamic_rotate %112 by %c991_i32_18 dim 1 : vector<1x1024xf32>, i32 -> vector<1x1024xf32>
    %137 = vector.extract_strided_slice %0 {offsets = [0, 22], sizes = [8, 1], strides = [1, 1]} : vector<8x27xf32> to vector<8x1xf32>
    %138 = vector.broadcast %137 : vector<8x1xf32> to vector<8x1024xf32>
    %139 = vector.broadcast %136 : vector<1x1024xf32> to vector<8x1024xf32>
    %140 = arith.mulf %138, %139 : vector<8x1024xf32>
    %141 = arith.addf %135, %140 : vector<8x1024xf32>
    %c990_i32_19 = arith.constant 990 : i32
    %142 = tpu.dynamic_rotate %112 by %c990_i32_19 dim 1 : vector<1x1024xf32>, i32 -> vector<1x1024xf32>
    %143 = vector.extract_strided_slice %0 {offsets = [0, 23], sizes = [8, 1], strides = [1, 1]} : vector<8x27xf32> to vector<8x1xf32>
    %144 = vector.broadcast %143 : vector<8x1xf32> to vector<8x1024xf32>
    %145 = vector.broadcast %142 : vector<1x1024xf32> to vector<8x1024xf32>
    %146 = arith.mulf %144, %145 : vector<8x1024xf32>
    %147 = arith.addf %141, %146 : vector<8x1024xf32>
    %c960_i32_20 = arith.constant 960 : i32
    %148 = tpu.dynamic_rotate %112 by %c960_i32_20 dim 1 : vector<1x1024xf32>, i32 -> vector<1x1024xf32>
    %149 = vector.extract_strided_slice %0 {offsets = [0, 24], sizes = [8, 1], strides = [1, 1]} : vector<8x27xf32> to vector<8x1xf32>
    %150 = vector.broadcast %149 : vector<8x1xf32> to vector<8x1024xf32>
    %151 = vector.broadcast %148 : vector<1x1024xf32> to vector<8x1024xf32>
    %152 = arith.mulf %150, %151 : vector<8x1024xf32>
    %153 = arith.addf %147, %152 : vector<8x1024xf32>
    %c959_i32_21 = arith.constant 959 : i32
    %154 = tpu.dynamic_rotate %112 by %c959_i32_21 dim 1 : vector<1x1024xf32>, i32 -> vector<1x1024xf32>
    %155 = vector.extract_strided_slice %0 {offsets = [0, 25], sizes = [8, 1], strides = [1, 1]} : vector<8x27xf32> to vector<8x1xf32>
    %156 = vector.broadcast %155 : vector<8x1xf32> to vector<8x1024xf32>
    %157 = vector.broadcast %154 : vector<1x1024xf32> to vector<8x1024xf32>
    %158 = arith.mulf %156, %157 : vector<8x1024xf32>
    %159 = arith.addf %153, %158 : vector<8x1024xf32>
    %c958_i32_22 = arith.constant 958 : i32
    %160 = tpu.dynamic_rotate %112 by %c958_i32_22 dim 1 : vector<1x1024xf32>, i32 -> vector<1x1024xf32>
    %161 = vector.extract_strided_slice %0 {offsets = [0, 26], sizes = [8, 1], strides = [1, 1]} : vector<8x27xf32> to vector<8x1xf32>
    %162 = vector.broadcast %161 : vector<8x1xf32> to vector<8x1024xf32>
    %163 = vector.broadcast %160 : vector<1x1024xf32> to vector<8x1024xf32>
    %164 = arith.mulf %162, %163 : vector<8x1024xf32>
    %165 = arith.addf %159, %164 : vector<8x1024xf32>
    %c3 = arith.constant 3 : index
    %c0_23 = arith.constant 0 : index
    %166 = vector.load %arg1[%c3, %c0_23] : memref<6x1024xf32, #tpu.memory_space<vmem>>, vector<1x1024xf32>
    %167 = vector.extract_strided_slice %0 {offsets = [0, 0], sizes = [8, 1], strides = [1, 1]} : vector<8x27xf32> to vector<8x1xf32>
    %168 = vector.broadcast %167 : vector<8x1xf32> to vector<8x1024xf32>
    %169 = vector.broadcast %166 : vector<1x1024xf32> to vector<8x1024xf32>
    %170 = arith.mulf %168, %169 : vector<8x1024xf32>
    %171 = arith.addf %3, %170 : vector<8x1024xf32>
    %c1023_i32_24 = arith.constant 1023 : i32
    %172 = tpu.dynamic_rotate %166 by %c1023_i32_24 dim 1 : vector<1x1024xf32>, i32 -> vector<1x1024xf32>
    %173 = vector.extract_strided_slice %0 {offsets = [0, 1], sizes = [8, 1], strides = [1, 1]} : vector<8x27xf32> to vector<8x1xf32>
    %174 = vector.broadcast %173 : vector<8x1xf32> to vector<8x1024xf32>
    %175 = vector.broadcast %172 : vector<1x1024xf32> to vector<8x1024xf32>
    %176 = arith.mulf %174, %175 : vector<8x1024xf32>
    %177 = arith.addf %171, %176 : vector<8x1024xf32>
    %c1022_i32_25 = arith.constant 1022 : i32
    %178 = tpu.dynamic_rotate %166 by %c1022_i32_25 dim 1 : vector<1x1024xf32>, i32 -> vector<1x1024xf32>
    %179 = vector.extract_strided_slice %0 {offsets = [0, 2], sizes = [8, 1], strides = [1, 1]} : vector<8x27xf32> to vector<8x1xf32>
    %180 = vector.broadcast %179 : vector<8x1xf32> to vector<8x1024xf32>
    %181 = vector.broadcast %178 : vector<1x1024xf32> to vector<8x1024xf32>
    %182 = arith.mulf %180, %181 : vector<8x1024xf32>
    %183 = arith.addf %177, %182 : vector<8x1024xf32>
    %c992_i32_26 = arith.constant 992 : i32
    %184 = tpu.dynamic_rotate %166 by %c992_i32_26 dim 1 : vector<1x1024xf32>, i32 -> vector<1x1024xf32>
    %185 = vector.extract_strided_slice %0 {offsets = [0, 3], sizes = [8, 1], strides = [1, 1]} : vector<8x27xf32> to vector<8x1xf32>
    %186 = vector.broadcast %185 : vector<8x1xf32> to vector<8x1024xf32>
    %187 = vector.broadcast %184 : vector<1x1024xf32> to vector<8x1024xf32>
    %188 = arith.mulf %186, %187 : vector<8x1024xf32>
    %189 = arith.addf %183, %188 : vector<8x1024xf32>
    %c991_i32_27 = arith.constant 991 : i32
    %190 = tpu.dynamic_rotate %166 by %c991_i32_27 dim 1 : vector<1x1024xf32>, i32 -> vector<1x1024xf32>
    %191 = vector.extract_strided_slice %0 {offsets = [0, 4], sizes = [8, 1], strides = [1, 1]} : vector<8x27xf32> to vector<8x1xf32>
    %192 = vector.broadcast %191 : vector<8x1xf32> to vector<8x1024xf32>
    %193 = vector.broadcast %190 : vector<1x1024xf32> to vector<8x1024xf32>
    %194 = arith.mulf %192, %193 : vector<8x1024xf32>
    %195 = arith.addf %189, %194 : vector<8x1024xf32>
    %c990_i32_28 = arith.constant 990 : i32
    %196 = tpu.dynamic_rotate %166 by %c990_i32_28 dim 1 : vector<1x1024xf32>, i32 -> vector<1x1024xf32>
    %197 = vector.extract_strided_slice %0 {offsets = [0, 5], sizes = [8, 1], strides = [1, 1]} : vector<8x27xf32> to vector<8x1xf32>
    %198 = vector.broadcast %197 : vector<8x1xf32> to vector<8x1024xf32>
    %199 = vector.broadcast %196 : vector<1x1024xf32> to vector<8x1024xf32>
    %200 = arith.mulf %198, %199 : vector<8x1024xf32>
    %201 = arith.addf %195, %200 : vector<8x1024xf32>
    %c960_i32_29 = arith.constant 960 : i32
    %202 = tpu.dynamic_rotate %166 by %c960_i32_29 dim 1 : vector<1x1024xf32>, i32 -> vector<1x1024xf32>
    %203 = vector.extract_strided_slice %0 {offsets = [0, 6], sizes = [8, 1], strides = [1, 1]} : vector<8x27xf32> to vector<8x1xf32>
    %204 = vector.broadcast %203 : vector<8x1xf32> to vector<8x1024xf32>
    %205 = vector.broadcast %202 : vector<1x1024xf32> to vector<8x1024xf32>
    %206 = arith.mulf %204, %205 : vector<8x1024xf32>
    %207 = arith.addf %201, %206 : vector<8x1024xf32>
    %c959_i32_30 = arith.constant 959 : i32
    %208 = tpu.dynamic_rotate %166 by %c959_i32_30 dim 1 : vector<1x1024xf32>, i32 -> vector<1x1024xf32>
    %209 = vector.extract_strided_slice %0 {offsets = [0, 7], sizes = [8, 1], strides = [1, 1]} : vector<8x27xf32> to vector<8x1xf32>
    %210 = vector.broadcast %209 : vector<8x1xf32> to vector<8x1024xf32>
    %211 = vector.broadcast %208 : vector<1x1024xf32> to vector<8x1024xf32>
    %212 = arith.mulf %210, %211 : vector<8x1024xf32>
    %213 = arith.addf %207, %212 : vector<8x1024xf32>
    %c958_i32_31 = arith.constant 958 : i32
    %214 = tpu.dynamic_rotate %166 by %c958_i32_31 dim 1 : vector<1x1024xf32>, i32 -> vector<1x1024xf32>
    %215 = vector.extract_strided_slice %0 {offsets = [0, 8], sizes = [8, 1], strides = [1, 1]} : vector<8x27xf32> to vector<8x1xf32>
    %216 = vector.broadcast %215 : vector<8x1xf32> to vector<8x1024xf32>
    %217 = vector.broadcast %214 : vector<1x1024xf32> to vector<8x1024xf32>
    %218 = arith.mulf %216, %217 : vector<8x1024xf32>
    %219 = arith.addf %213, %218 : vector<8x1024xf32>
    %c4 = arith.constant 4 : index
    %c0_32 = arith.constant 0 : index
    %220 = vector.load %arg1[%c4, %c0_32] : memref<6x1024xf32, #tpu.memory_space<vmem>>, vector<1x1024xf32>
    %221 = vector.extract_strided_slice %0 {offsets = [0, 9], sizes = [8, 1], strides = [1, 1]} : vector<8x27xf32> to vector<8x1xf32>
    %222 = vector.broadcast %221 : vector<8x1xf32> to vector<8x1024xf32>
    %223 = vector.broadcast %220 : vector<1x1024xf32> to vector<8x1024xf32>
    %224 = arith.mulf %222, %223 : vector<8x1024xf32>
    %225 = arith.addf %219, %224 : vector<8x1024xf32>
    %c1023_i32_33 = arith.constant 1023 : i32
    %226 = tpu.dynamic_rotate %220 by %c1023_i32_33 dim 1 : vector<1x1024xf32>, i32 -> vector<1x1024xf32>
    %227 = vector.extract_strided_slice %0 {offsets = [0, 10], sizes = [8, 1], strides = [1, 1]} : vector<8x27xf32> to vector<8x1xf32>
    %228 = vector.broadcast %227 : vector<8x1xf32> to vector<8x1024xf32>
    %229 = vector.broadcast %226 : vector<1x1024xf32> to vector<8x1024xf32>
    %230 = arith.mulf %228, %229 : vector<8x1024xf32>
    %231 = arith.addf %225, %230 : vector<8x1024xf32>
    %c1022_i32_34 = arith.constant 1022 : i32
    %232 = tpu.dynamic_rotate %220 by %c1022_i32_34 dim 1 : vector<1x1024xf32>, i32 -> vector<1x1024xf32>
    %233 = vector.extract_strided_slice %0 {offsets = [0, 11], sizes = [8, 1], strides = [1, 1]} : vector<8x27xf32> to vector<8x1xf32>
    %234 = vector.broadcast %233 : vector<8x1xf32> to vector<8x1024xf32>
    %235 = vector.broadcast %232 : vector<1x1024xf32> to vector<8x1024xf32>
    %236 = arith.mulf %234, %235 : vector<8x1024xf32>
    %237 = arith.addf %231, %236 : vector<8x1024xf32>
    %c992_i32_35 = arith.constant 992 : i32
    %238 = tpu.dynamic_rotate %220 by %c992_i32_35 dim 1 : vector<1x1024xf32>, i32 -> vector<1x1024xf32>
    %239 = vector.extract_strided_slice %0 {offsets = [0, 12], sizes = [8, 1], strides = [1, 1]} : vector<8x27xf32> to vector<8x1xf32>
    %240 = vector.broadcast %239 : vector<8x1xf32> to vector<8x1024xf32>
    %241 = vector.broadcast %238 : vector<1x1024xf32> to vector<8x1024xf32>
    %242 = arith.mulf %240, %241 : vector<8x1024xf32>
    %243 = arith.addf %237, %242 : vector<8x1024xf32>
    %c991_i32_36 = arith.constant 991 : i32
    %244 = tpu.dynamic_rotate %220 by %c991_i32_36 dim 1 : vector<1x1024xf32>, i32 -> vector<1x1024xf32>
    %245 = vector.extract_strided_slice %0 {offsets = [0, 13], sizes = [8, 1], strides = [1, 1]} : vector<8x27xf32> to vector<8x1xf32>
    %246 = vector.broadcast %245 : vector<8x1xf32> to vector<8x1024xf32>
    %247 = vector.broadcast %244 : vector<1x1024xf32> to vector<8x1024xf32>
    %248 = arith.mulf %246, %247 : vector<8x1024xf32>
    %249 = arith.addf %243, %248 : vector<8x1024xf32>
    %c990_i32_37 = arith.constant 990 : i32
    %250 = tpu.dynamic_rotate %220 by %c990_i32_37 dim 1 : vector<1x1024xf32>, i32 -> vector<1x1024xf32>
    %251 = vector.extract_strided_slice %0 {offsets = [0, 14], sizes = [8, 1], strides = [1, 1]} : vector<8x27xf32> to vector<8x1xf32>
    %252 = vector.broadcast %251 : vector<8x1xf32> to vector<8x1024xf32>
    %253 = vector.broadcast %250 : vector<1x1024xf32> to vector<8x1024xf32>
    %254 = arith.mulf %252, %253 : vector<8x1024xf32>
    %255 = arith.addf %249, %254 : vector<8x1024xf32>
    %c960_i32_38 = arith.constant 960 : i32
    %256 = tpu.dynamic_rotate %220 by %c960_i32_38 dim 1 : vector<1x1024xf32>, i32 -> vector<1x1024xf32>
    %257 = vector.extract_strided_slice %0 {offsets = [0, 15], sizes = [8, 1], strides = [1, 1]} : vector<8x27xf32> to vector<8x1xf32>
    %258 = vector.broadcast %257 : vector<8x1xf32> to vector<8x1024xf32>
    %259 = vector.broadcast %256 : vector<1x1024xf32> to vector<8x1024xf32>
    %260 = arith.mulf %258, %259 : vector<8x1024xf32>
    %261 = arith.addf %255, %260 : vector<8x1024xf32>
    %c959_i32_39 = arith.constant 959 : i32
    %262 = tpu.dynamic_rotate %220 by %c959_i32_39 dim 1 : vector<1x1024xf32>, i32 -> vector<1x1024xf32>
    %263 = vector.extract_strided_slice %0 {offsets = [0, 16], sizes = [8, 1], strides = [1, 1]} : vector<8x27xf32> to vector<8x1xf32>
    %264 = vector.broadcast %263 : vector<8x1xf32> to vector<8x1024xf32>
    %265 = vector.broadcast %262 : vector<1x1024xf32> to vector<8x1024xf32>
    %266 = arith.mulf %264, %265 : vector<8x1024xf32>
    %267 = arith.addf %261, %266 : vector<8x1024xf32>
    %c958_i32_40 = arith.constant 958 : i32
    %268 = tpu.dynamic_rotate %220 by %c958_i32_40 dim 1 : vector<1x1024xf32>, i32 -> vector<1x1024xf32>
    %269 = vector.extract_strided_slice %0 {offsets = [0, 17], sizes = [8, 1], strides = [1, 1]} : vector<8x27xf32> to vector<8x1xf32>
    %270 = vector.broadcast %269 : vector<8x1xf32> to vector<8x1024xf32>
    %271 = vector.broadcast %268 : vector<1x1024xf32> to vector<8x1024xf32>
    %272 = arith.mulf %270, %271 : vector<8x1024xf32>
    %273 = arith.addf %267, %272 : vector<8x1024xf32>
    %c5 = arith.constant 5 : index
    %c0_41 = arith.constant 0 : index
    %274 = vector.load %arg1[%c5, %c0_41] : memref<6x1024xf32, #tpu.memory_space<vmem>>, vector<1x1024xf32>
    %275 = vector.extract_strided_slice %0 {offsets = [0, 18], sizes = [8, 1], strides = [1, 1]} : vector<8x27xf32> to vector<8x1xf32>
    %276 = vector.broadcast %275 : vector<8x1xf32> to vector<8x1024xf32>
    %277 = vector.broadcast %274 : vector<1x1024xf32> to vector<8x1024xf32>
    %278 = arith.mulf %276, %277 : vector<8x1024xf32>
    %279 = arith.addf %273, %278 : vector<8x1024xf32>
    %c1023_i32_42 = arith.constant 1023 : i32
    %280 = tpu.dynamic_rotate %274 by %c1023_i32_42 dim 1 : vector<1x1024xf32>, i32 -> vector<1x1024xf32>
    %281 = vector.extract_strided_slice %0 {offsets = [0, 19], sizes = [8, 1], strides = [1, 1]} : vector<8x27xf32> to vector<8x1xf32>
    %282 = vector.broadcast %281 : vector<8x1xf32> to vector<8x1024xf32>
    %283 = vector.broadcast %280 : vector<1x1024xf32> to vector<8x1024xf32>
    %284 = arith.mulf %282, %283 : vector<8x1024xf32>
    %285 = arith.addf %279, %284 : vector<8x1024xf32>
    %c1022_i32_43 = arith.constant 1022 : i32
    %286 = tpu.dynamic_rotate %274 by %c1022_i32_43 dim 1 : vector<1x1024xf32>, i32 -> vector<1x1024xf32>
    %287 = vector.extract_strided_slice %0 {offsets = [0, 20], sizes = [8, 1], strides = [1, 1]} : vector<8x27xf32> to vector<8x1xf32>
    %288 = vector.broadcast %287 : vector<8x1xf32> to vector<8x1024xf32>
    %289 = vector.broadcast %286 : vector<1x1024xf32> to vector<8x1024xf32>
    %290 = arith.mulf %288, %289 : vector<8x1024xf32>
    %291 = arith.addf %285, %290 : vector<8x1024xf32>
    %c992_i32_44 = arith.constant 992 : i32
    %292 = tpu.dynamic_rotate %274 by %c992_i32_44 dim 1 : vector<1x1024xf32>, i32 -> vector<1x1024xf32>
    %293 = vector.extract_strided_slice %0 {offsets = [0, 21], sizes = [8, 1], strides = [1, 1]} : vector<8x27xf32> to vector<8x1xf32>
    %294 = vector.broadcast %293 : vector<8x1xf32> to vector<8x1024xf32>
    %295 = vector.broadcast %292 : vector<1x1024xf32> to vector<8x1024xf32>
    %296 = arith.mulf %294, %295 : vector<8x1024xf32>
    %297 = arith.addf %291, %296 : vector<8x1024xf32>
    %c991_i32_45 = arith.constant 991 : i32
    %298 = tpu.dynamic_rotate %274 by %c991_i32_45 dim 1 : vector<1x1024xf32>, i32 -> vector<1x1024xf32>
    %299 = vector.extract_strided_slice %0 {offsets = [0, 22], sizes = [8, 1], strides = [1, 1]} : vector<8x27xf32> to vector<8x1xf32>
    %300 = vector.broadcast %299 : vector<8x1xf32> to vector<8x1024xf32>
    %301 = vector.broadcast %298 : vector<1x1024xf32> to vector<8x1024xf32>
    %302 = arith.mulf %300, %301 : vector<8x1024xf32>
    %303 = arith.addf %297, %302 : vector<8x1024xf32>
    %c990_i32_46 = arith.constant 990 : i32
    %304 = tpu.dynamic_rotate %274 by %c990_i32_46 dim 1 : vector<1x1024xf32>, i32 -> vector<1x1024xf32>
    %305 = vector.extract_strided_slice %0 {offsets = [0, 23], sizes = [8, 1], strides = [1, 1]} : vector<8x27xf32> to vector<8x1xf32>
    %306 = vector.broadcast %305 : vector<8x1xf32> to vector<8x1024xf32>
    %307 = vector.broadcast %304 : vector<1x1024xf32> to vector<8x1024xf32>
    %308 = arith.mulf %306, %307 : vector<8x1024xf32>
    %309 = arith.addf %303, %308 : vector<8x1024xf32>
    %c960_i32_47 = arith.constant 960 : i32
    %310 = tpu.dynamic_rotate %274 by %c960_i32_47 dim 1 : vector<1x1024xf32>, i32 -> vector<1x1024xf32>
    %311 = vector.extract_strided_slice %0 {offsets = [0, 24], sizes = [8, 1], strides = [1, 1]} : vector<8x27xf32> to vector<8x1xf32>
    %312 = vector.broadcast %311 : vector<8x1xf32> to vector<8x1024xf32>
    %313 = vector.broadcast %310 : vector<1x1024xf32> to vector<8x1024xf32>
    %314 = arith.mulf %312, %313 : vector<8x1024xf32>
    %315 = arith.addf %309, %314 : vector<8x1024xf32>
    %c959_i32_48 = arith.constant 959 : i32
    %316 = tpu.dynamic_rotate %274 by %c959_i32_48 dim 1 : vector<1x1024xf32>, i32 -> vector<1x1024xf32>
    %317 = vector.extract_strided_slice %0 {offsets = [0, 25], sizes = [8, 1], strides = [1, 1]} : vector<8x27xf32> to vector<8x1xf32>
    %318 = vector.broadcast %317 : vector<8x1xf32> to vector<8x1024xf32>
    %319 = vector.broadcast %316 : vector<1x1024xf32> to vector<8x1024xf32>
    %320 = arith.mulf %318, %319 : vector<8x1024xf32>
    %321 = arith.addf %315, %320 : vector<8x1024xf32>
    %c958_i32_49 = arith.constant 958 : i32
    %322 = tpu.dynamic_rotate %274 by %c958_i32_49 dim 1 : vector<1x1024xf32>, i32 -> vector<1x1024xf32>
    %323 = vector.extract_strided_slice %0 {offsets = [0, 26], sizes = [8, 1], strides = [1, 1]} : vector<8x27xf32> to vector<8x1xf32>
    %324 = vector.broadcast %323 : vector<8x1xf32> to vector<8x1024xf32>
    %325 = vector.broadcast %322 : vector<1x1024xf32> to vector<8x1024xf32>
    %326 = arith.mulf %324, %325 : vector<8x1024xf32>
    %327 = arith.addf %321, %326 : vector<8x1024xf32>
    %328 = tpu.concatenate %165, %327 in 0 : vector<8x1024xf32>, vector<8x1024xf32> -> vector<16x1024xf32>
    %c0_50 = arith.constant 0 : index
    %c0_51 = arith.constant 0 : index
    %329 = vector.load %arg4[%c0_50, %c0_51] : memref<16x1024xf32, #tpu.memory_space<vmem>>, vector<16x1024xf32>
    tpu.vector_store %arg4[%c0_50, %c0_51], %328 {strides = array<i32>} : memref<16x1024xf32, #tpu.memory_space<vmem>>, vector<16x1024xf32>,
    return
  }
  func.func @transform_0(%arg0: i32) -> (i32, i32) {
    %c0_i32 = arith.constant 0 : i32
    %c0_i32_0 = arith.constant 0 : i32
    %c0_i32_1 = arith.constant 0 : i32
    return %c0_i32, %c0_i32_0 : i32, i32
  }
  func.func @transform_1(%arg0: i32) -> (i32, i32) {
    %c0_i32 = arith.constant 0 : i32
    %c0_i32_0 = arith.constant 0 : i32
    %c0_i32_1 = arith.constant 0 : i32
    return %c0_i32, %c0_i32_0 : i32, i32
  }
  func.func @transform_2(%arg0: i32) -> (i32, i32) {
    %c0_i32 = arith.constant 0 : i32
    %c0_i32_0 = arith.constant 0 : i32
    %c0_i32_1 = arith.constant 0 : i32
    return %c0_i32, %c0_i32_0 : i32, i32
  }
  func.func @transform_3(%arg0: i32) -> (i32, i32) {
    %c0_i32 = arith.constant 0 : i32
    %c0_i32_0 = arith.constant 0 : i32
    %c0_i32_1 = arith.constant 0 : i32
    return %c0_i32, %c0_i32_0 : i32, i32
  }
}

</mosaic_0001>

<bundles_post_ra>
// kernel: my_conv_forward.1
= control target key start
LH: loop header
LB: loop body
LE: loop exit
PB: predicated region body
PF: predicated region fallthrough
CT: control target
= control target key end

     0   :  { %v8375_v0 = vlaneseq  ;;  %v4053_v1 = vmov 0   ;;  %v4055_v18 = vmov 1   ;;  %v4057_v25 = vmov 2   ;;  %s4059_s20 = smov 96   ;;  %s4061_s21 = smov 95   ;;  %s8371_s2 = inlined_call_operand.vmem [shape: f32[8,1], index: 2, kind: input, shape index: {}]   ;;  %s8372_s1 = inlined_call_operand.vmem [shape: f32[8,27], index: 1, kind: input, shape index: {}]   ;;  %s8373_s0 = inlined_call_operand.vmem [shape: f32[6,1024], index: 0, kind: input, shape index: {}]   ;;  %s8374_s3 = inlined_call_operand.vmem [shape: f32[16,1024], index: 3, kind: output, shape index: {}]  }
   0x1   :  { %4026 = vset.pattern.permute.xlu0 %v4053_v1  ;;  %v15_v2 = vld [vmem:[%s8371_s2] sm:$0xff]  ;;  %s4054_s2 = smov 127   ;;  %v4058_v26 = vmov 9   ;;  %v4060_v27 = vmov 3   ;;  %v4062_v28 = vmov 4   ;;  %s4063_s22 = smov 94  }
   0x2   :  { %v21_v3 = vld [vmem:[%s8373_s0] ss:$8 sm:$0xf]  ;;  %18 = vperm.xlu0 %4026, %v15_v2   ;;  %v31_v5 = vshrl.u32 %v8375_v0, 7  ;;  %4035 = vset.pattern.permute.xlu1 %v4058_v26  ;;  %v4064_v29 = vmov 5   ;;  %s4065_s23 = smov 64  }
   0x3   :  { %v22_v4 = vld [vmem:[%s8373_s0] ss:$8 sm:$0xf0]  ;;  %v4066_v30 = vmov 6   ;;  %s4067_s24 = smov 63   ;;  %v4068_v31 = vmov 7  }
   0x4   :  { %v4121_v6 = vld [vmem:[%s8372_s1] sm:$0xff]  ;;  %v23_v7 = vor.u32 %v22_v4, %v21_v3  ;;  %v4123_v8 = vsub.s32 0, %v31_v5  ;;  %v4125_v9 = vsub.s32 2, %v31_v5  ;;  %v4127_v10 = vsub.s32 1, %v31_v5  ;;  %s4056_s1 = smov 126   ;;  %s4069_s25 = smov 62  }
   0x5   :  { %v4136_v13 = vsub.s32 4, %v31_v5  ;;  %v4143_v15 = vsub.s32 3, %v31_v5  ;;  %v4150_v17 = vsub.s32 6, %v31_v5  ;;  %v4157_v20 = vsub.s32 5, %v31_v5 }
   0x6   :  { %8654 = vst [vmem:[#allocation2_spill] sm:$0xff] %v4125_v9  ;;  %8655 = vst [vmem:[#allocation3_spill] sm:$0xff] %v4127_v10  ;;  %26 = vperm.xlu0 %4026, %v4121_v6   ;;  %v4131_v11 = vrot.slane %v23_v7, %v4123_v8  ;;  %v4134_v12 = vrot.slane %v23_v7, %v4125_v9  ;;  %v4141_v14 = vrot.slane %v23_v7, %v4127_v10  ;;  %v4070_v33 = vmov 8   ;;  %v3981_v35 = vld [vmem:[%s8373_s0 + $0x1] ss:$8 sm:$0xf] }
   0x7   :  { %8656 = vst [vmem:[#allocation4_spill] sm:$0xff] %v4136_v13  ;;  %8657 = vst [vmem:[#allocation5_spill] sm:$0xff] %v4143_v15  ;;  %v4148_v16 = vrot.slane %v23_v7, %v4136_v13  ;;  %v4155_v19 = vrot.slane %v23_v7, %v4143_v15  ;;  %v4162_v21 = vrot.slane %v23_v7, %v4150_v17  ;;  %v4169_v23 = vsub.s32 7, %v31_v5  ;;  %v3982_v36 = vld [vmem:[%s8373_s0 + $0x1] ss:$8 sm:$0xf0] }
   0x8   :  { %86 = vrot.lane.b32.xlu1 %v4131_v11, %s4054_s2  ;;  %8658 = vst [vmem:[#allocation6_spill] sm:$0xff] %v4150_v17  ;;  %8659 = vst [vmem:[#allocation7_spill] sm:$0xff] %v4157_v20  ;;  %v4167_v22 = vrot.slane %v23_v7, %v4157_v20  ;;  %v707_v39 = vor.u32 %v3982_v36, %v3981_v35  ;;  %v4071_v46 = vmov 11   ;;  %v4073_v26 = vmov 12  }
   0x9   :  { %8660 = vst [vmem:[#allocation8_spill] sm:$0xff] %v4169_v23  ;;  %v4176_v24 = vrot.slane %v23_v7, %v4169_v23 }
   0xa   :  { %90 = vrot.lane.b32.xlu0 %v4134_v12, %s4054_s2  ;;  %v4303_v42 = vrot.slane %v707_v39, %v4127_v10  ;;  %v4314_v45 = vrot.slane %v707_v39, %v4143_v15  ;;  %v4325_v49 = vrot.slane %v707_v39, %v4157_v20  ;;  %v4336_v52 = vrot.slane %v707_v39, %v4169_v23 }
   0xb   :  { %4027 = vset.pattern.permute.xlu0 %v4055_v18  ;;  %v4349_v55 = vrot.slane %v707_v39, %v4123_v8  ;;  %v4360_v58 = vrot.slane %v707_v39, %v4125_v9  ;;  %v4371_v61 = vrot.slane %v707_v39, %v4136_v13  ;;  %v4382_v1 = vrot.slane %v707_v39, %v4150_v17 }
   0xc   :  { %88 = vrot.lane.b32.xlu1 %v4141_v14, %s4054_s2  ;;  %8663 = vst [vmem:[#allocation11_spill] sm:$0xff] %v4303_v42  ;;  %8664 = vst [vmem:[#allocation12_spill] sm:$0xff] %v4314_v45  ;;  %v4072_v18 = vmov 10   ;;  %v4074_v39 = vmov 13  }
   0xd   :  { %8665 = vst [vmem:[#allocation13_spill] sm:$0xff] %v4325_v49  ;;  %8666 = vst [vmem:[#allocation14_spill] sm:$0xff] %v4336_v52 }
   0xe   :  { %94 = vrot.lane.b32.xlu0 %v4148_v16, %s4054_s2  ;;  %8668 = vst [vmem:[#allocation16_spill] sm:$0xff] %v4349_v55  ;;  %8669 = vst [vmem:[#allocation17_spill] sm:$0xff] %v4360_v58 }
   0xf   :  { %8670 = vst [vmem:[#allocation18_spill] sm:$0xff] %v4371_v61  ;;  %8671 = vst [vmem:[#allocation19_spill] sm:$0xff] %v4382_v1 }
  0x10   :  { %92 = vrot.lane.b32.xlu1 %v4155_v19, %s4054_s2 }
  0x12   :  { %98 = vrot.lane.b32.xlu0 %v4162_v21, %s4054_s2 }
  0x14   :  { %96 = vrot.lane.b32.xlu1 %v4167_v22, %s4054_s2 }
  0x16   :  { %114 = vperm.xlu0 %4027, %v4121_v6  }
  0x18   :  { %100 = vrot.lane.b32.xlu1 %v4176_v24, %s4054_s2 }
  0x1a   :  { %169 = vrot.lane.b32.xlu0 %v4134_v12, %s4056_s1 }
  0x1b   :  { %4028 = vset.pattern.permute.xlu0 %v4057_v25 }
  0x1c   :  { %165 = vrot.lane.b32.xlu1 %v4131_v11, %s4056_s1 }
  0x1e   :  { %173 = vrot.lane.b32.xlu0 %v4148_v16, %s4056_s1 }
  0x20   :  { %167 = vrot.lane.b32.xlu1 %v4141_v14, %s4056_s1 }
  0x22   :  { %177 = vrot.lane.b32.xlu0 %v4162_v21, %s4056_s1 }
  0x24   :  { %171 = vrot.lane.b32.xlu1 %v4155_v19, %s4056_s1 }
  0x26   :  { %191 = vperm.xlu0 %4028, %v4121_v6  }
  0x28   :  { %175 = vrot.lane.b32.xlu1 %v4167_v22, %s4056_s1 }
  0x2a   :  { %246 = vrot.lane.b32.xlu0 %v4134_v12, %s4059_s20 }
  0x2b   :  { %4029 = vset.pattern.permute.xlu0 %v4060_v27 }
  0x2c   :  { %179 = vrot.lane.b32.xlu1 %v4176_v24, %s4056_s1 }
  0x2e   :  { %250 = vrot.lane.b32.xlu0 %v4148_v16, %s4059_s20 }
  0x30   :  { %242 = vrot.lane.b32.xlu1 %v4131_v11, %s4059_s20 }
  0x32   :  { %254 = vrot.lane.b32.xlu0 %v4162_v21, %s4059_s20 }
  0x34   :  { %244 = vrot.lane.b32.xlu1 %v4141_v14, %s4059_s20 }
  0x36   :  { %268 = vperm.xlu0 %4029, %v4121_v6  }
  0x38   :  { %248 = vrot.lane.b32.xlu1 %v4155_v19, %s4059_s20 }
  0x3a   :  { %323 = vrot.lane.b32.xlu0 %v4134_v12, %s4061_s21 }
  0x3b   :  { %4030 = vset.pattern.permute.xlu0 %v4062_v28 }
  0x3c   :  { %252 = vrot.lane.b32.xlu1 %v4167_v22, %s4059_s20 }
  0x3e   :  { %327 = vrot.lane.b32.xlu0 %v4148_v16, %s4061_s21 }
  0x40   :  { %256 = vrot.lane.b32.xlu1 %v4176_v24, %s4059_s20 }
  0x42   :  { %331 = vrot.lane.b32.xlu0 %v4162_v21, %s4061_s21 }
  0x44   :  { %319 = vrot.lane.b32.xlu1 %v4131_v11, %s4061_s21 }
  0x46   :  { %345 = vperm.xlu0 %4030, %v4121_v6  }
  0x48   :  { %321 = vrot.lane.b32.xlu1 %v4141_v14, %s4061_s21 }
  0x4a   :  { %400 = vrot.lane.b32.xlu0 %v4134_v12, %s4063_s22 }
  0x4b   :  { %4031 = vset.pattern.permute.xlu0 %v4064_v29 }
  0x4c   :  { %325 = vrot.lane.b32.xlu1 %v4155_v19, %s4061_s21 }
  0x4e   :  { %404 = vrot.lane.b32.xlu0 %v4148_v16, %s4063_s22 }
  0x50   :  { %329 = vrot.lane.b32.xlu1 %v4167_v22, %s4061_s21 }
  0x52   :  { %408 = vrot.lane.b32.xlu0 %v4162_v21, %s4063_s22 }
  0x54   :  { %333 = vrot.lane.b32.xlu1 %v4176_v24, %s4061_s21 }
  0x56   :  { %422 = vperm.xlu0 %4031, %v4121_v6  }
  0x58   :  { %396 = vrot.lane.b32.xlu1 %v4131_v11, %s4063_s22 }
  0x5a   :  { %477 = vrot.lane.b32.xlu0 %v4134_v12, %s4065_s23 }
  0x5b   :  { %4032 = vset.pattern.permute.xlu0 %v4066_v30 }
  0x5c   :  { %398 = vrot.lane.b32.xlu1 %v4141_v14, %s4063_s22 }
  0x5e   :  { %481 = vrot.lane.b32.xlu0 %v4148_v16, %s4065_s23 }
  0x60   :  { %402 = vrot.lane.b32.xlu1 %v4155_v19, %s4063_s22 }
  0x62   :  { %485 = vrot.lane.b32.xlu0 %v4162_v21, %s4065_s23 }
  0x64   :  { %406 = vrot.lane.b32.xlu1 %v4167_v22, %s4063_s22 }
  0x66   :  { %499 = vperm.xlu0 %4032, %v4121_v6  }
  0x68   :  { %410 = vrot.lane.b32.xlu1 %v4176_v24, %s4063_s22 }
  0x6a   :  { %554 = vrot.lane.b32.xlu0 %v4134_v12, %s4067_s24 }
  0x6b   :  { %4033 = vset.pattern.permute.xlu0 %v4068_v31 }
  0x6c   :  { %473 = vrot.lane.b32.xlu1 %v4131_v11, %s4065_s23 }
  0x6e   :  { %558 = vrot.lane.b32.xlu0 %v4148_v16, %s4067_s24 }
  0x70   :  { %475 = vrot.lane.b32.xlu1 %v4141_v14, %s4065_s23 }
  0x72   :  { %562 = vrot.lane.b32.xlu0 %v4162_v21, %s4067_s24 }
  0x74   :  { %479 = vrot.lane.b32.xlu1 %v4155_v19, %s4065_s23 }
  0x76   :  { %576 = vperm.xlu0 %4033, %v4121_v6  }
  0x78   :  { %483 = vrot.lane.b32.xlu1 %v4167_v22, %s4065_s23 }
  0x7a   :  { %v4271_v32 = vpop.permute.xlu1 %86  ;;  %631 = vrot.lane.b32.xlu0 %v4134_v12, %s4069_s25 }
  0x7b   :  { %4034 = vset.pattern.permute.xlu0 %v4070_v33 }
  0x7c   :  { %487 = vrot.lane.b32.xlu1 %v4176_v24, %s4065_s23 }
  0x7e   :  { %v4277_v34 = vpop.permute.xlu1 %88  ;;  %635 = vrot.lane.b32.xlu0 %v4148_v16, %s4069_s25 }
  0x80   :  { %550 = vrot.lane.b32.xlu1 %v4131_v11, %s4067_s24 }
  0x81   :  { %v4289_v37 = vpop.permute.xlu0 %18 }
  0x82   :  { %8661 = vst [vmem:[#allocation9_spill] sm:$0xff] %v4289_v37  ;;  %v4291_v38 = vpop.permute.xlu1 %92  ;;  %639 = vrot.lane.b32.xlu0 %v4162_v21, %s4069_s25 }
  0x84   :  { %552 = vrot.lane.b32.xlu1 %v4141_v14, %s4067_s24 }
  0x85   :  { %v4297_v40 = vpop.permute.xlu0 %26 }
  0x86   :  { %8662 = vst [vmem:[#allocation10_spill] sm:$0xff] %v4297_v40  ;;  %v4299_v41 = vpop.permute.xlu1 %96  ;;  %653 = vperm.xlu0 %4034, %v4121_v6  }
  0x88   :  { %556 = vrot.lane.b32.xlu1 %v4155_v19, %s4067_s24 }
  0x89   :  { %v4307_v43 = vpop.permute.xlu0 %90 }
  0x8a   :  { %v4309_v44 = vpop.permute.xlu1 %100  ;;  %771 = vrot.lane.b32.xlu0 %v4303_v42, %s4054_s2 }
  0x8b   :  { %4037 = vset.pattern.permute.xlu0 %v4071_v46 }
  0x8c   :  { %560 = vrot.lane.b32.xlu1 %v4167_v22, %s4067_s24 }
  0x8d   :  { %v4318_v47 = vpop.permute.xlu0 %94 }
  0x8e   :  { %v4320_v48 = vpop.permute.xlu1 %165  ;;  %775 = vrot.lane.b32.xlu0 %v4314_v45, %s4054_s2 }
  0x90   :  { %564 = vrot.lane.b32.xlu1 %v4176_v24, %s4067_s24 }
  0x91   :  { %v4329_v50 = vpop.permute.xlu0 %98 }
  0x92   :  { %v4331_v51 = vpop.permute.xlu1 %167  ;;  %779 = vrot.lane.b32.xlu0 %v4325_v49, %s4054_s2 }
  0x94   :  { %627 = vrot.lane.b32.xlu1 %v4131_v11, %s4069_s25 }
  0x95   :  { %v4340_v53 = vpop.permute.xlu0 %114 }
  0x96   :  { %8667 = vst [vmem:[#allocation15_spill] sm:$0xff] %v4340_v53  ;;  %v4342_v54 = vpop.permute.xlu1 %171  ;;  %783 = vrot.lane.b32.xlu0 %v4336_v52, %s4054_s2 }
  0x98   :  { %629 = vrot.lane.b32.xlu1 %v4141_v14, %s4069_s25 }
  0x99   :  { %v4351_v56 = vpop.permute.xlu0 %169 }
  0x9a   :  { %v4353_v57 = vpop.permute.xlu1 %175  ;;  %845 = vrot.lane.b32.xlu0 %v4349_v55, %s4056_s1 }
  0x9c   :  { %633 = vrot.lane.b32.xlu1 %v4155_v19, %s4069_s25 }
  0x9d   :  { %v4362_v59 = vpop.permute.xlu0 %173 }
  0x9e   :  { %v4364_v60 = vpop.permute.xlu1 %179  ;;  %849 = vrot.lane.b32.xlu0 %v4360_v58, %s4056_s1 }
  0xa0   :  { %637 = vrot.lane.b32.xlu1 %v4167_v22, %s4069_s25 }
  0xa1   :  { %v4373_v62 = vpop.permute.xlu0 %177 }
  0xa2   :  { %v4375_v63 = vpop.permute.xlu1 %242  ;;  %853 = vrot.lane.b32.xlu0 %v4371_v61, %s4056_s1 }
  0xa4   :  { %641 = vrot.lane.b32.xlu1 %v4176_v24, %s4069_s25 }
  0xa5   :  { %v4384_v2 = vpop.permute.xlu0 %191 }
  0xa6   :  { %8672 = vst [vmem:[#allocation20_spill] sm:$0xff] %v4384_v2  ;;  %v4386_v3 = vpop.permute.xlu1 %244  ;;  %857 = vrot.lane.b32.xlu0 %v4382_v1, %s4056_s1 }
  0xa8   :  { %709 = vperm.xlu1 %4035, %v4121_v6  }
  0xa9   :  { %v4391_v4 = vpop.permute.xlu0 %246 }
  0xaa   :  { %v4393_v5 = vpop.permute.xlu1 %248  ;;  %870 = vperm.xlu0 %4037, %v4121_v6  }
  0xac   :  { %769 = vrot.lane.b32.xlu1 %v4349_v55, %s4054_s2 }
  0xad   :  { %v4398_v7 = vpop.permute.xlu0 %250  ;;  %4036 = vset.pattern.permute.xlu1 %v4072_v18 }
  0xae   :  { %v4400_v25 = vpop.permute.xlu1 %252  ;;  %925 = vrot.lane.b32.xlu0 %v4360_v58, %s4059_s20 }
  0xaf   :  { %4038 = vset.pattern.permute.xlu0 %v4073_v26 }
  0xb0   :  { %773 = vrot.lane.b32.xlu1 %v4360_v58, %s4054_s2 }
  0xb1   :  { %v4406_v27 = vpop.permute.xlu0 %254 }
  0xb2   :  { %v4408_v28 = vpop.permute.xlu1 %256  ;;  %929 = vrot.lane.b32.xlu0 %v4371_v61, %s4059_s20 }
  0xb4   :  { %777 = vrot.lane.b32.xlu1 %v4371_v61, %s4054_s2 }
  0xb5   :  { %v4414_v29 = vpop.permute.xlu0 %268 }
  0xb6   :  { %8673 = vst [vmem:[#allocation21_spill] sm:$0xff] %v4414_v29  ;;  %v4416_v30 = vpop.permute.xlu1 %319  ;;  %933 = vrot.lane.b32.xlu0 %v4382_v1, %s4059_s20 }
  0xb7   :  { %8674 = vst [vmem:[#allocation22_spill] sm:$0xff] %v4416_v30  ;;  %v4075_v30 = vmov 18  }
  0xb8   :  { %781 = vrot.lane.b32.xlu1 %v4382_v1, %s4054_s2 }
  0xb9   :  { %v4422_v31 = vpop.permute.xlu0 %323 }
  0xba   :  { %8675 = vst [vmem:[#allocation23_spill] sm:$0xff] %v4422_v31  ;;  %v4424_v33 = vpop.permute.xlu1 %321  ;;  %946 = vperm.xlu0 %4038, %v4121_v6  }
  0xbb   :  { %8676 = vst [vmem:[#allocation24_spill] sm:$0xff] %v4424_v33  ;;  %v4076_v33 = vmov 14  }
  0xbc   :  { %794 = vperm.xlu1 %4036, %v4121_v6  }
  0xbd   :  { %v4428_v35 = vpop.permute.xlu0 %327 }
  0xbe   :  { %8677 = vst [vmem:[#allocation25_spill] sm:$0xff] %v4428_v35  ;;  %v4430_v36 = vpop.permute.xlu1 %325  ;;  %1001 = vrot.lane.b32.xlu0 %v4360_v58, %s4061_s21 }
  0xbf   :  { %8678 = vst [vmem:[#allocation26_spill] sm:$0xff] %v4430_v36  ;;  %4039 = vset.pattern.permute.xlu0 %v4074_v39 }
  0xc0   :  { %847 = vrot.lane.b32.xlu1 %v4303_v42, %s4056_s1 }
  0xc1   :  { %v4436_v46 = vpop.permute.xlu0 %331  ;;  %4044 = vset.pattern.permute.xlu1 %v4075_v30 }
  0xc2   :  { %8679 = vst [vmem:[#allocation27_spill] sm:$0xff] %v4436_v46  ;;  %v4438_v18 = vpop.permute.xlu1 %329  ;;  %1005 = vrot.lane.b32.xlu0 %v4371_v61, %s4061_s21 }
  0xc3   :  { %8680 = vst [vmem:[#allocation28_spill] sm:$0xff] %v4438_v18 }
  0xc4   :  { %851 = vrot.lane.b32.xlu1 %v4314_v45, %s4056_s1 }
  0xc5   :  { %v4444_v26 = vpop.permute.xlu0 %345 }
  0xc6   :  { %8681 = vst [vmem:[#allocation29_spill] sm:$0xff] %v4444_v26  ;;  %v4446_v0 = vpop.permute.xlu1 %333  ;;  %1009 = vrot.lane.b32.xlu0 %v4382_v1, %s4061_s21 }
  0xc7   :  { %8682 = vst [vmem:[#allocation30_spill] sm:$0xff] %v4446_v0 }
  0xc8   :  { %855 = vrot.lane.b32.xlu1 %v4325_v49, %s4056_s1 }
  0xc9   :  { %v4452_v39 = vpop.permute.xlu0 %400 }
  0xca   :  { %8683 = vst [vmem:[#allocation31_spill] sm:$0xff] %v4452_v39  ;;  %v4454_v36 = vpop.permute.xlu1 %396  ;;  %1022 = vperm.xlu0 %4039, %v4121_v6  }
  0xcb   :  { %8684 = vst [vmem:[#allocation32_spill] sm:$0xff] %v4454_v36 }
  0xcc   :  { %859 = vrot.lane.b32.xlu1 %v4336_v52, %s4056_s1 }
  0xcd   :  { %v4459_v26 = vpop.permute.xlu0 %404 }
  0xce   :  { %8685 = vst [vmem:[#allocation33_spill] sm:$0xff] %v4459_v26  ;;  %v4461_v0 = vpop.permute.xlu1 %398  ;;  %1077 = vrot.lane.b32.xlu0 %v4360_v58, %s4063_s22 }
  0xcf   :  { %8686 = vst [vmem:[#allocation34_spill] sm:$0xff] %v4461_v0  ;;  %4040 = vset.pattern.permute.xlu0 %v4076_v33 }
  0xd0   :  { %921 = vrot.lane.b32.xlu1 %v4349_v55, %s4059_s20 }
  0xd1   :  { %v4467_v36 = vpop.permute.xlu0 %408 }
  0xd2   :  { %8687 = vst [vmem:[#allocation35_spill] sm:$0xff] %v4467_v36  ;;  %v4469_v39 = vpop.permute.xlu1 %402  ;;  %1081 = vrot.lane.b32.xlu0 %v4371_v61, %s4063_s22 }
  0xd3   :  { %8688 = vst [vmem:[#allocation36_spill] sm:$0xff] %v4469_v39 }
  0xd4   :  { %923 = vrot.lane.b32.xlu1 %v4303_v42, %s4059_s20 }
  0xd5   :  { %v4475_v30 = vpop.permute.xlu0 %422 }
  0xd6   :  { %8689 = vst [vmem:[#allocation37_spill] sm:$0xff] %v4475_v30  ;;  %v4477_v0 = vpop.permute.xlu1 %406  ;;  %1085 = vrot.lane.b32.xlu0 %v4382_v1, %s4063_s22 }
  0xd7   :  { %8690 = vst [vmem:[#allocation38_spill] sm:$0xff] %v4477_v0  ;;  %v4077_v0 = vmov 15  }
  0xd8   :  { %927 = vrot.lane.b32.xlu1 %v4314_v45, %s4059_s20 }
  0xd9   :  { %v4483_v33 = vpop.permute.xlu0 %477 }
  0xda   :  { %8691 = vst [vmem:[#allocation39_spill] sm:$0xff] %v4483_v33  ;;  %v4485_v36 = vpop.permute.xlu1 %410  ;;  %1098 = vperm.xlu0 %4040, %v4121_v6  }
  0xdb   :  { %8692 = vst [vmem:[#allocation40_spill] sm:$0xff] %v4485_v36 }
  0xdc   :  { %931 = vrot.lane.b32.xlu1 %v4325_v49, %s4059_s20 }
  0xdd   :  { %v4490_v39 = vpop.permute.xlu0 %481 }
  0xde   :  { %8693 = vst [vmem:[#allocation41_spill] sm:$0xff] %v4490_v39  ;;  %v4492_v30 = vpop.permute.xlu1 %473  ;;  %1153 = vrot.lane.b32.xlu0 %v4360_v58, %s4065_s23 }
  0xdf   :  { %8694 = vst [vmem:[#allocation42_spill] sm:$0xff] %v4492_v30  ;;  %4041 = vset.pattern.permute.xlu0 %v4077_v0 }
  0xe0   :  { %935 = vrot.lane.b32.xlu1 %v4336_v52, %s4059_s20 }
  0xe1   :  { %v4498_v33 = vpop.permute.xlu0 %485 }
  0xe2   :  { %8695 = vst [vmem:[#allocation43_spill] sm:$0xff] %v4498_v33  ;;  %v4500_v36 = vpop.permute.xlu1 %475  ;;  %1157 = vrot.lane.b32.xlu0 %v4371_v61, %s4065_s23 }
  0xe3   :  { %8696 = vst [vmem:[#allocation44_spill] sm:$0xff] %v4500_v36 }
  0xe4   :  { %997 = vrot.lane.b32.xlu1 %v4349_v55, %s4061_s21 }
  0xe5   :  { %v4506_v39 = vpop.permute.xlu0 %499 }
  0xe6   :  { %8697 = vst [vmem:[#allocation45_spill] sm:$0xff] %v4506_v39  ;;  %v4508_v30 = vpop.permute.xlu1 %479  ;;  %1161 = vrot.lane.b32.xlu0 %v4382_v1, %s4065_s23 }
  0xe7   :  { %8698 = vst [vmem:[#allocation46_spill] sm:$0xff] %v4508_v30  ;;  %v4078_v30 = vmov 16  }
  0xe8   :  { %999 = vrot.lane.b32.xlu1 %v4303_v42, %s4061_s21 }
  0xe9   :  { %v4514_v0 = vpop.permute.xlu0 %554 }
  0xea   :  { %8699 = vst [vmem:[#allocation47_spill] sm:$0xff] %v4514_v0  ;;  %v4516_v33 = vpop.permute.xlu1 %483  ;;  %1174 = vperm.xlu0 %4041, %v4121_v6  }
  0xeb   :  { %8700 = vst [vmem:[#allocation48_spill] sm:$0xff] %v4516_v33 }
  0xec   :  { %1003 = vrot.lane.b32.xlu1 %v4314_v45, %s4061_s21 }
  0xed   :  { %v4521_v36 = vpop.permute.xlu0 %558 }
  0xee   :  { %8701 = vst [vmem:[#allocation49_spill] sm:$0xff] %v4521_v36  ;;  %v4523_v39 = vpop.permute.xlu1 %487  ;;  %1229 = vrot.lane.b32.xlu0 %v4360_v58, %s4067_s24 }
  0xef   :  { %8702 = vst [vmem:[#allocation50_spill] sm:$0xff] %v4523_v39  ;;  %4042 = vset.pattern.permute.xlu0 %v4078_v30 }
  0xf0   :  { %1007 = vrot.lane.b32.xlu1 %v4325_v49, %s4061_s21 }
  0xf1   :  { %v4529_v0 = vpop.permute.xlu0 %562 }
  0xf2   :  { %8703 = vst [vmem:[#allocation51_spill] sm:$0xff] %v4529_v0  ;;  %v4531_v33 = vpop.permute.xlu1 %550  ;;  %1233 = vrot.lane.b32.xlu0 %v4371_v61, %s4067_s24 }
  0xf3   :  { %8704 = vst [vmem:[#allocation52_spill] sm:$0xff] %v4531_v33 }
  0xf4   :  { %1011 = vrot.lane.b32.xlu1 %v4336_v52, %s4061_s21 }
  0xf5   :  { %v4537_v36 = vpop.permute.xlu0 %576 }
  0xf6   :  { %8705 = vst [vmem:[#allocation53_spill] sm:$0xff] %v4537_v36  ;;  %v4539_v39 = vpop.permute.xlu1 %552  ;;  %1237 = vrot.lane.b32.xlu0 %v4382_v1, %s4067_s24 }
  0xf7   :  { %8706 = vst [vmem:[#allocation54_spill] sm:$0xff] %v4539_v39  ;;  %v4079_v39 = vmov 17  }
  0xf8   :  { %1073 = vrot.lane.b32.xlu1 %v4349_v55, %s4063_s22 }
  0xf9   :  { %v4545_v30 = vpop.permute.xlu0 %631 }
  0xfa   :  { %8707 = vst [vmem:[#allocation55_spill] sm:$0xff] %v4545_v30  ;;  %v4547_v0 = vpop.permute.xlu1 %556  ;;  %1250 = vperm.xlu0 %4042, %v4121_v6  }
  0xfb   :  { %8708 = vst [vmem:[#allocation56_spill] sm:$0xff] %v4547_v0  ;;  %v3983_v0 = vld [vmem:[%s8373_s0 + $0x2] ss:$8 sm:$0xf] }
  0xfc   :  { %1075 = vrot.lane.b32.xlu1 %v4303_v42, %s4063_s22 }
  0xfd   :  { %v4552_v33 = vpop.permute.xlu0 %635 }
  0xfe   :  { %8709 = vst [vmem:[#allocation57_spill] sm:$0xff] %v4552_v33  ;;  %1305 = vrot.lane.b32.xlu0 %v4360_v58, %s4069_s25  ;;  %v4556_v36 = vpop.permute.xlu1 %560  ;;  %v3984_v58 = vld [vmem:[%s8373_s0 + $0x2] ss:$8 sm:$0xf0] }
  0xff   :  { %8710 = vst [vmem:[#allocation58_spill] sm:$0xff] %v4556_v36  ;;  %4043 = vset.pattern.permute.xlu0 %v4079_v39 }
 0x100   :  { %1079 = vrot.lane.b32.xlu1 %v4314_v45, %s4063_s22 }
 0x101   :  { %v4560_v30 = vpop.permute.xlu0 %639 }
 0x102   :  { %8711 = vst [vmem:[#allocation59_spill] sm:$0xff] %v4560_v30  ;;  %1309 = vrot.lane.b32.xlu0 %v4371_v61, %s4069_s25  ;;  %v4572_v39 = vpop.permute.xlu1 %564  ;;  %v1380_v30 = vor.u32 %v3984_v58, %v3983_v0  ;;  %v4080_v0 = vmov 20  }
 0x103   :  { %8712 = vst [vmem:[#allocation60_spill] sm:$0xff] %v4572_v39 }
 0x104   :  { %1083 = vrot.lane.b32.xlu1 %v4325_v49, %s4063_s22  ;;  %v4584_v36 = vrot.slane %v1380_v30, %v4127_v10  ;;  %v4595_v58 = vrot.slane %v1380_v30, %v4143_v15 }
 0x105   :  { %v4574_v33 = vpop.permute.xlu0 %653 }
 0x106   :  { %8713 = vst [vmem:[#allocation61_spill] sm:$0xff] %v4574_v33  ;;  %1313 = vrot.lane.b32.xlu0 %v4382_v1, %s4069_s25  ;;  %v4586_v26 = vpop.permute.xlu1 %627 }
 0x107   :  { %8715 = vst [vmem:[#allocation63_spill] sm:$0xff] %v4586_v26 }
 0x108   :  { %1087 = vrot.lane.b32.xlu1 %v4336_v52, %s4063_s22 }
 0x109   :  { %v4580_v61 = vpop.permute.xlu0 %771 }
 0x10a   :  { %8714 = vst [vmem:[#allocation62_spill] sm:$0xff] %v4580_v61  ;;  %1326 = vperm.xlu0 %4043, %v4121_v6   ;;  %v4599_v61 = vpop.permute.xlu1 %629 }
 0x10b   :  { %8717 = vst [vmem:[#allocation65_spill] sm:$0xff] %v4599_v61 }
 0x10c   :  { %1149 = vrot.lane.b32.xlu1 %v4349_v55, %s4065_s23 }
 0x10d   :  { %v4590_v33 = vpop.permute.xlu0 %775 }
 0x10e   :  { %8716 = vst [vmem:[#allocation64_spill] sm:$0xff] %v4590_v33  ;;  %1444 = vrot.lane.b32.xlu0 %v4584_v36, %s4054_s2  ;;  %v4606_v33 = vrot.slane %v1380_v30, %v4157_v20  ;;  %v4617_v61 = vpop.permute.xlu1 %633 }
 0x10f   :  { %4046 = vset.pattern.permute.xlu0 %v4080_v0  ;;  %v4615_v0 = vrot.slane %v1380_v30, %v4169_v23  ;;  %8720 = vst [vmem:[#allocation68_spill] sm:$0xff] %v4617_v61 }
 0x110   :  { %1151 = vrot.lane.b32.xlu1 %v4303_v42, %s4065_s23 }
 0x111   :  { %v4601_v1 = vpop.permute.xlu0 %779 }
 0x112   :  { %8718 = vst [vmem:[#allocation66_spill] sm:$0xff] %v4601_v1  ;;  %1448 = vrot.lane.b32.xlu0 %v4595_v58, %s4054_s2  ;;  %v4630_v39 = vpop.permute.xlu1 %637 }
 0x113   :  { %8722 = vst [vmem:[#allocation70_spill] sm:$0xff] %v4630_v39 }
 0x114   :  { %1155 = vrot.lane.b32.xlu1 %v4314_v45, %s4065_s23 }
 0x115   :  { %v4610_v26 = vpop.permute.xlu0 %783 }
 0x116   :  { %8719 = vst [vmem:[#allocation67_spill] sm:$0xff] %v4610_v26  ;;  %1452 = vrot.lane.b32.xlu0 %v4606_v33, %s4054_s2  ;;  %v4628_v26 = vrot.slane %v1380_v30, %v4123_v8  ;;  %v4645_v35 = vpop.permute.xlu1 %641 }
 0x117   :  { %8726 = vst [vmem:[#allocation74_spill] sm:$0xff] %v4645_v35 }
 0x118   :  { %1159 = vrot.lane.b32.xlu1 %v4325_v49, %s4065_s23 }
 0x119   :  { %v4621_v1 = vpop.permute.xlu0 %845 }
 0x11a   :  { %8721 = vst [vmem:[#allocation69_spill] sm:$0xff] %v4621_v1  ;;  %1456 = vrot.lane.b32.xlu0 %v4615_v0, %s4054_s2  ;;  %v4639_v1 = vrot.slane %v1380_v30, %v4125_v9 }
 0x11c   :  { %1163 = vrot.lane.b32.xlu1 %v4336_v52, %s4065_s23  ;;  %8724 = vst [vmem:[#allocation72_spill] sm:$0xff] %v4639_v1 }
 0x11d   :  { %v4632_v31 = vpop.permute.xlu0 %849 }
 0x11e   :  { %8723 = vst [vmem:[#allocation71_spill] sm:$0xff] %v4632_v31  ;;  %1518 = vrot.lane.b32.xlu0 %v4628_v26, %s4056_s1  ;;  %v4650_v31 = vrot.slane %v1380_v30, %v4136_v13 }
 0x120   :  { %1225 = vrot.lane.b32.xlu1 %v4349_v55, %s4067_s24  ;;  %8727 = vst [vmem:[#allocation75_spill] sm:$0xff] %v4650_v31 }
 0x121   :  { %v4641_v61 = vpop.permute.xlu0 %853 }
 0x122   :  { %8725 = vst [vmem:[#allocation73_spill] sm:$0xff] %v4641_v61  ;;  %1522 = vrot.lane.b32.xlu0 %v4639_v1, %s4056_s1  ;;  %v4661_v61 = vrot.slane %v1380_v30, %v4150_v17 }
 0x124   :  { %1227 = vrot.lane.b32.xlu1 %v4303_v42, %s4067_s24  ;;  %8730 = vst [vmem:[#allocation78_spill] sm:$0xff] %v4661_v61 }
 0x125   :  { %v4652_v39 = vpop.permute.xlu0 %857 }
 0x126   :  { %8728 = vst [vmem:[#allocation76_spill] sm:$0xff] %v4652_v39  ;;  %1526 = vrot.lane.b32.xlu0 %v4650_v31, %s4056_s1 }
 0x127   :  { %v4656_v18 = vpop.permute.xlu1 %709 }
 0x128   :  { %8729 = vst [vmem:[#allocation77_spill] sm:$0xff] %v4656_v18  ;;  %1231 = vrot.lane.b32.xlu1 %v4314_v45, %s4067_s24 }
 0x129   :  { %v4663_v35 = vpop.permute.xlu0 %870 }
 0x12a   :  { %8731 = vst [vmem:[#allocation79_spill] sm:$0xff] %v4663_v35  ;;  %1530 = vrot.lane.b32.xlu0 %v4661_v61, %s4056_s1 }
 0x12b   :  { %v4667_v46 = vpop.permute.xlu1 %769 }
 0x12c   :  { %8732 = vst [vmem:[#allocation80_spill] sm:$0xff] %v4667_v46  ;;  %1235 = vrot.lane.b32.xlu1 %v4325_v49, %s4067_s24  ;;  %v4081_v46 = vmov 21  }
 0x12d   :  { %v4671_v39 = vpop.permute.xlu0 %925 }
 0x12e   :  { %8733 = vst [vmem:[#allocation81_spill] sm:$0xff] %v4671_v39  ;;  %1543 = vperm.xlu0 %4046, %v4121_v6  }
 0x12f   :  { %v4674_v18 = vpop.permute.xlu1 %773 }
 0x130   :  { %8734 = vst [vmem:[#allocation82_spill] sm:$0xff] %v4674_v18  ;;  %1239 = vrot.lane.b32.xlu1 %v4336_v52, %s4067_s24 }
 0x131   :  { %v4678_v30 = vpop.permute.xlu0 %929 }
 0x132   :  { %8735 = vst [vmem:[#allocation83_spill] sm:$0xff] %v4678_v30  ;;  %1598 = vrot.lane.b32.xlu0 %v4639_v1, %s4059_s20 }
 0x133   :  { %v4682_v35 = vpop.permute.xlu1 %777  ;;  %4047 = vset.pattern.permute.xlu0 %v4081_v46 }
 0x134   :  { %8736 = vst [vmem:[#allocation84_spill] sm:$0xff] %v4682_v35  ;;  %1301 = vrot.lane.b32.xlu1 %v4349_v55, %s4069_s25 }
 0x135   :  { %v4686_v39 = vpop.permute.xlu0 %933 }
 0x136   :  { %8737 = vst [vmem:[#allocation85_spill] sm:$0xff] %v4686_v39  ;;  %1602 = vrot.lane.b32.xlu0 %v4650_v31, %s4059_s20 }
 0x137   :  { %v4690_v18 = vpop.permute.xlu1 %781 }
 0x138   :  { %8738 = vst [vmem:[#allocation86_spill] sm:$0xff] %v4690_v18  ;;  %1303 = vrot.lane.b32.xlu1 %v4303_v42, %s4069_s25 }
 0x139   :  { %v4694_v30 = vpop.permute.xlu0 %946 }
 0x13a   :  { %8739 = vst [vmem:[#allocation87_spill] sm:$0xff] %v4694_v30  ;;  %1606 = vrot.lane.b32.xlu0 %v4661_v61, %s4059_s20 }
 0x13b   :  { %v4698_v35 = vpop.permute.xlu1 %794 }
 0x13c   :  { %8740 = vst [vmem:[#allocation88_spill] sm:$0xff] %v4698_v35  ;;  %1307 = vrot.lane.b32.xlu1 %v4314_v45, %s4069_s25  ;;  %v4082_v35 = vmov 22  }
 0x13d   :  { %v4702_v46 = vpop.permute.xlu0 %1001 }
 0x13e   :  { %8741 = vst [vmem:[#allocation89_spill] sm:$0xff] %v4702_v46  ;;  %1619 = vperm.xlu0 %4047, %v4121_v6  }
 0x13f   :  { %v4705_v39 = vpop.permute.xlu1 %847 }
 0x140   :  { %8742 = vst [vmem:[#allocation90_spill] sm:$0xff] %v4705_v39  ;;  %1311 = vrot.lane.b32.xlu1 %v4325_v49, %s4069_s25  ;;  %v77_v49 = vmul.f32 %v4176_v24, %v4297_v40 }
 0x141   :  { %v4709_v18 = vpop.permute.xlu0 %1005 }
 0x142   :  { %8743 = vst [vmem:[#allocation91_spill] sm:$0xff] %v4709_v18  ;;  %1674 = vrot.lane.b32.xlu0 %v4639_v1, %s4061_s21 }
 0x143   :  { %v4713_v30 = vpop.permute.xlu1 %851  ;;  %4048 = vset.pattern.permute.xlu0 %v4082_v35  ;;  %v4083_v35 = vmov 19  }
 0x144   :  { %8744 = vst [vmem:[#allocation92_spill] sm:$0xff] %v4713_v30  ;;  %1315 = vrot.lane.b32.xlu1 %v4336_v52, %s4069_s25 }
 0x145   :  { %v4717_v46 = vpop.permute.xlu0 %1009 }
 0x146   :  { %8745 = vst [vmem:[#allocation93_spill] sm:$0xff] %v4717_v46  ;;  %1678 = vrot.lane.b32.xlu0 %v4650_v31, %s4061_s21 }
 0x147   :  { %v4721_v39 = vpop.permute.xlu1 %855 }
 0x148   :  { %8746 = vst [vmem:[#allocation94_spill] sm:$0xff] %v4721_v39  ;;  %1382 = vperm.xlu1 %4044, %v4121_v6   ;;  %v4084_v39 = vmov 23  }
 0x149   :  { %v4724_v18 = vpop.permute.xlu0 %1022 }
 0x14a   :  { %8747 = vst [vmem:[#allocation95_spill] sm:$0xff] %v4724_v18  ;;  %1682 = vrot.lane.b32.xlu0 %v4661_v61, %s4061_s21 }
 0x14b   :  { %v4728_v30 = vpop.permute.xlu1 %859 }
 0x14c   :  { %8748 = vst [vmem:[#allocation96_spill] sm:$0xff] %v4728_v30  ;;  %1442 = vrot.lane.b32.xlu1 %v4628_v26, %s4054_s2 }
 0x14d   :  { %4045 = vset.pattern.permute.xlu1 %v4083_v35  ;;  %v4732_v46 = vpop.permute.xlu0 %1077 }
 0x14e   :  { %8749 = vst [vmem:[#allocation97_spill] sm:$0xff] %v4732_v46  ;;  %1695 = vperm.xlu0 %4048, %v4121_v6  }
 0x14f   :  { %v4735_v52 = vpop.permute.xlu1 %921 }
 0x150   :  { %8750 = vst [vmem:[#allocation98_spill] sm:$0xff] %v4735_v52  ;;  %1446 = vrot.lane.b32.xlu1 %v4639_v1, %s4054_s2 }
 0x151   :  { %v4739_v18 = vpop.permute.xlu0 %1081 }
 0x152   :  { %8751 = vst [vmem:[#allocation99_spill] sm:$0xff] %v4739_v18  ;;  %1750 = vrot.lane.b32.xlu0 %v4639_v1, %s4063_s22 }
 0x153   :  { %v4743_v30 = vpop.permute.xlu1 %923  ;;  %4049 = vset.pattern.permute.xlu0 %v4084_v39 }
 0x154   :  { %8752 = vst [vmem:[#allocation100_spill] sm:$0xff] %v4743_v30  ;;  %1450 = vrot.lane.b32.xlu1 %v4650_v31, %s4054_s2  ;;  %v4085_v30 = vmov 24  }
 0x155   :  { %v4747_v35 = vpop.permute.xlu0 %1085 }
 0x156   :  { %8753 = vst [vmem:[#allocation101_spill] sm:$0xff] %v4747_v35  ;;  %1754 = vrot.lane.b32.xlu0 %v4650_v31, %s4063_s22 }
 0x157   :  { %v4751_v46 = vpop.permute.xlu1 %927 }
 0x158   :  { %8754 = vst [vmem:[#allocation102_spill] sm:$0xff] %v4751_v46  ;;  %1454 = vrot.lane.b32.xlu1 %v4661_v61, %s4054_s2 }
 0x159   :  { %v4755_v18 = vpop.permute.xlu0 %1098 }
 0x15a   :  { %8755 = vst [vmem:[#allocation103_spill] sm:$0xff] %v4755_v18  ;;  %1758 = vrot.lane.b32.xlu0 %v4661_v61, %s4063_s22 }
 0x15b   :  { %v4759_v52 = vpop.permute.xlu1 %931 }
 0x15c   :  { %8756 = vst [vmem:[#allocation104_spill] sm:$0xff] %v4759_v52  ;;  %1467 = vperm.xlu1 %4045, %v4121_v6   ;;  %v8784_v52 = vlaneseq }
 0x15d   :  { %v4762_v39 = vpop.permute.xlu0 %1153 }
 0x15e   :  { %8757 = vst [vmem:[#allocation105_spill] sm:$0xff] %v4762_v39  ;;  %1771 = vperm.xlu0 %4049, %v4121_v6  }
 0x15f   :  { %v4765_v35 = vpop.permute.xlu1 %935 }
 0x160   :  { %8758 = vst [vmem:[#allocation106_spill] sm:$0xff] %v4765_v35  ;;  %1520 = vrot.lane.b32.xlu1 %v4584_v36, %s4056_s1 }
 0x161   :  { %v4769_v46 = vpop.permute.xlu0 %1157 }
 0x162   :  { %8759 = vst [vmem:[#allocation107_spill] sm:$0xff] %v4769_v46  ;;  %1826 = vrot.lane.b32.xlu0 %v4639_v1, %s4065_s23 }
 0x163   :  { %v4773_v18 = vpop.permute.xlu1 %997  ;;  %4050 = vset.pattern.permute.xlu0 %v4085_v30 }
 0x164   :  { %8760 = vst [vmem:[#allocation108_spill] sm:$0xff] %v4773_v18  ;;  %1524 = vrot.lane.b32.xlu1 %v4595_v58, %s4056_s1 }
 0x165   :  { %v4777_v39 = vpop.permute.xlu0 %1161 }
 0x166   :  { %8761 = vst [vmem:[#allocation109_spill] sm:$0xff] %v4777_v39  ;;  %1830 = vrot.lane.b32.xlu0 %v4650_v31, %s4065_s23 }
 0x167   :  { %v4781_v35 = vpop.permute.xlu1 %999 }
 0x168   :  { %8762 = vst [vmem:[#allocation110_spill] sm:$0xff] %v4781_v35  ;;  %1528 = vrot.lane.b32.xlu1 %v4606_v33, %s4056_s1 }
 0x169   :  { %v4785_v46 = vpop.permute.xlu0 %1174 }
 0x16a   :  { %8763 = vst [vmem:[#allocation111_spill] sm:$0xff] %v4785_v46  ;;  %1834 = vrot.lane.b32.xlu0 %v4661_v61, %s4065_s23 }
 0x16b   :  { %v4789_v18 = vpop.permute.xlu1 %1003 }
 0x16c   :  { %8764 = vst [vmem:[#allocation112_spill] sm:$0xff] %v4789_v18  ;;  %1532 = vrot.lane.b32.xlu1 %v4615_v0, %s4056_s1  ;;  %v4086_v18 = vmov 25  }
 0x16d   :  { %v4793_v30 = vpop.permute.xlu0 %1229 }
 0x16e   :  { %8765 = vst [vmem:[#allocation113_spill] sm:$0xff] %v4793_v30  ;;  %1847 = vperm.xlu0 %4050, %v4121_v6  }
 0x16f   :  { %v4796_v39 = vpop.permute.xlu1 %1007 }
 0x170   :  { %8766 = vst [vmem:[#allocation114_spill] sm:$0xff] %v4796_v39  ;;  %1594 = vrot.lane.b32.xlu1 %v4628_v26, %s4059_s20 }
 0x171   :  { %v4800_v35 = vpop.permute.xlu0 %1233 }
 0x172   :  { %8767 = vst [vmem:[#allocation115_spill] sm:$0xff] %v4800_v35  ;;  %1902 = vrot.lane.b32.xlu0 %v4639_v1, %s4067_s24 }
 0x173   :  { %v4804_v46 = vpop.permute.xlu1 %1011  ;;  %4051 = vset.pattern.permute.xlu0 %v4086_v18 }
 0x174   :  { %8768 = vst [vmem:[#allocation116_spill] sm:$0xff] %v4804_v46  ;;  %1596 = vrot.lane.b32.xlu1 %v4584_v36, %s4059_s20 }
 0x175   :  { %v4808_v30 = vpop.permute.xlu0 %1237 }
 0x176   :  { %8769 = vst [vmem:[#allocation117_spill] sm:$0xff] %v4808_v30  ;;  %1906 = vrot.lane.b32.xlu0 %v4650_v31, %s4067_s24 }
 0x177   :  { %v4812_v39 = vpop.permute.xlu1 %1073 }
 0x178   :  { %8770 = vst [vmem:[#allocation118_spill] sm:$0xff] %v4812_v39  ;;  %1600 = vrot.lane.b32.xlu1 %v4595_v58, %s4059_s20 }
 0x179   :  { %v4816_v35 = vpop.permute.xlu0 %1250 }
 0x17a   :  { %8771 = vst [vmem:[#allocation119_spill] sm:$0xff] %v4816_v35  ;;  %1910 = vrot.lane.b32.xlu0 %v4661_v61, %s4067_s24 }
 0x17b   :  { %v4820_v46 = vpop.permute.xlu1 %1075 }
 0x17c   :  { %8772 = vst [vmem:[#allocation120_spill] sm:$0xff] %v4820_v46  ;;  %1604 = vrot.lane.b32.xlu1 %v4606_v33, %s4059_s20  ;;  %v4087_v46 = vmov 26  }
 0x17d   :  { %v4824_v18 = vpop.permute.xlu0 %1305 }
 0x17e   :  { %8773 = vst [vmem:[#allocation121_spill] sm:$0xff] %v4824_v18  ;;  %1923 = vperm.xlu0 %4051, %v4121_v6  }
 0x17f   :  { %v4827_v30 = vpop.permute.xlu1 %1079 }
 0x180   :  { %8774 = vst [vmem:[#allocation122_spill] sm:$0xff] %v4827_v30  ;;  %1608 = vrot.lane.b32.xlu1 %v4615_v0, %s4059_s20 }
 0x181   :  { %v4831_v39 = vpop.permute.xlu0 %1309 }
 0x182   :  { %8775 = vst [vmem:[#allocation123_spill] sm:$0xff] %v4831_v39  ;;  %1978 = vrot.lane.b32.xlu0 %v4639_v1, %s4069_s25  ;;  %v3985_v1 = vld [vmem:[%s8373_s0 + $0x3] ss:$8 sm:$0xf] }
 0x183   :  { %v4835_v35 = vpop.permute.xlu1 %1083  ;;  %4052 = vset.pattern.permute.xlu0 %v4087_v46  ;;  %v3986_v46 = vld [vmem:[%s8373_s0 + $0x3] ss:$8 sm:$0xf0] }
 0x184   :  { %8776 = vst [vmem:[#allocation124_spill] sm:$0xff] %v4835_v35  ;;  %1670 = vrot.lane.b32.xlu1 %v4628_v26, %s4061_s21 }
 0x185   :  { %v4839_v18 = vpop.permute.xlu0 %1313 }
 0x186   :  { %8777 = vst [vmem:[#allocation125_spill] sm:$0xff] %v4839_v18  ;;  %1982 = vrot.lane.b32.xlu0 %v4650_v31, %s4069_s25  ;;  %v2053_v31 = vor.u32 %v3986_v46, %v3985_v1 }
 0x187   :  { %v4843_v30 = vpop.permute.xlu1 %1087 }
 0x188   :  { %8778 = vst [vmem:[#allocation126_spill] sm:$0xff] %v4843_v30  ;;  %1672 = vrot.lane.b32.xlu1 %v4584_v36, %s4061_s21  ;;  %v4869_v35 = vrot.slane %v2053_v31, %v4125_v9  ;;  %v4913_v45 = vrot.slane %v2053_v31, %v4123_v8  ;;  %v4916_v42 = vrot.slane %v2053_v31, %v4127_v10 }
 0x189   :  { %v4847_v39 = vpop.permute.xlu0 %1326  ;;  %v4929_v24 = vrot.slane %v2053_v31, %v4157_v20  ;;  %v4932_v55 = vrot.slane %v2053_v31, %v4169_v23  ;;  %v75_v10 = vmul.f32 %v4167_v22, %v4297_v40 }
 0x18a   :  { %8779 = vst [vmem:[#allocation127_spill] sm:$0xff] %v4847_v39  ;;  %1986 = vrot.lane.b32.xlu0 %v4661_v61, %s4069_s25  ;;  %8783 = vst [vmem:[#allocation131_spill] sm:$0xff] %v4869_v35  ;;  %v4872_v61 = vand.u32 127, %v8784_v52 }
 0x18b   :  { %v4857_v18 = vpop.permute.xlu1 %1149  ;;  %8792 = vst [vmem:[#allocation139_spill] sm:$0xff] %v4913_v45 }
 0x18c   :  { %8780 = vst [vmem:[#allocation128_spill] sm:$0xff] %v4857_v18  ;;  %1676 = vrot.lane.b32.xlu1 %v4595_v58, %s4061_s21  ;;  %vm104_vm0 = vcmp.lt.s32.totalorder %v4872_v61, 127  ;;  %vm181_vm1 = vcmp.lt.s32.totalorder %v4872_v61, 126  ;;  %vm258_vm2 = vcmp.lt.s32.totalorder %v4872_v61, 96  ;;  %vm335_vm3 = vcmp.lt.s32.totalorder %v4872_v61, 95 }
 0x18d   :  { %v4861_v30 = vpop.permute.xlu0 %1444  ;;  %v106_v20 = vsel %vm104_vm0, %v4299_v41, %v4329_v50  ;;  %vm412_vm4 = vcmp.lt.s32.totalorder %v4872_v61, 94  ;;  %vm489_vm5 = vcmp.lt.s32.totalorder %v4872_v61, 64  ;;  %vm566_vm6 = vcmp.lt.s32.totalorder %v4872_v61, 63 }
 0x18e   :  { %8781 = vst [vmem:[#allocation129_spill] sm:$0xff] %v4861_v30  ;;  %1999 = vperm.xlu0 %4052, %v4121_v6   ;;  %v4883_v6 = vrot.slane %v2053_v31, %v4136_v13  ;;  %v4899_v30 = vrot.slane %v2053_v31, %v4150_v17  ;;  %vm643_vm7 = vcmp.lt.s32.totalorder %v4872_v61, 62 }
 0x18f   :  { %v4864_v39 = vpop.permute.xlu1 %1151 }
 0x190   :  { %8782 = vst [vmem:[#allocation130_spill] sm:$0xff] %v4864_v39  ;;  %1680 = vrot.lane.b32.xlu1 %v4606_v33, %s4061_s21  ;;  %8787 = vst [vmem:[#allocation134_spill] sm:$0xff] %v4883_v6 }
 0x191   :  { %v4874_v18 = vpop.permute.xlu0 %1448  ;;  %8790 = vst [vmem:[#allocation137_spill] sm:$0xff] %v4899_v30 }
 0x192   :  { %8785 = vst [vmem:[#allocation132_spill] sm:$0xff] %v4874_v18  ;;  %2115 = vrot.lane.b32.xlu0 %v4869_v35, %s4054_s2  ;;  %v111_v18 = vsel %vm104_vm0, %v4271_v32, %v4277_v34 }
 0x193   :  { %v4878_v1 = vpop.permute.xlu1 %1155 }
 0x194   :  { %8786 = vst [vmem:[#allocation133_spill] sm:$0xff] %v4878_v1  ;;  %1684 = vrot.lane.b32.xlu1 %v4615_v0, %s4061_s21  ;;  %v70_v1 = vmul.f32 %v4131_v11, %v4297_v40  ;;  %v4919_v11 = vrot.slane %v2053_v31, %v4143_v15  ;;  %v105_v15 = vsel %vm104_vm0, %v4329_v50, %v4309_v44 }
 0x195   :  { %v4886_v46 = vpop.permute.xlu0 %1452  ;;  %v85_v50 = vadd.f32 %v77_v49, %v4289_v37  ;;  %v140_v49 = vrot.slane %v106_v20, %v4123_v8 }
 0x196   :  { %8788 = vst [vmem:[#allocation135_spill] sm:$0xff] %v4886_v46  ;;  %2119 = vrot.lane.b32.xlu0 %v4883_v6, %s4054_s2  ;;  %v71_v46 = vmul.f32 %v4141_v14, %v4297_v40  ;;  %v120_v14 = vrot.slane %v111_v18, %v4123_v8  ;;  %v72_v18 = vmul.f32 %v4134_v12, %v4297_v40 }
 0x197   :  { %v4890_v52 = vpop.permute.xlu1 %1159  ;;  %v78_v31 = vadd.f32 %v70_v1, %v4289_v37  ;;  %v109_v12 = vsel %vm104_vm0, %v4307_v43, %v4291_v38  ;;  %v112_v1 = vsel %vm104_vm0, %v4309_v44, %v4271_v32 }
 0x198   :  { %8789 = vst [vmem:[#allocation136_spill] sm:$0xff] %v4890_v52  ;;  %1746 = vrot.lane.b32.xlu1 %v4628_v26, %s4063_s22  ;;  %v76_v52 = vmul.f32 %v4162_v21, %v4297_v40  ;;  %v74_v21 = vmul.f32 %v4148_v16, %v4297_v40  ;;  %v73_v16 = vmul.f32 %v4155_v19, %v4297_v40 }
 0x199   :  { %v4908_v39 = vpop.permute.xlu0 %1456  ;;  %v79_v23 = vadd.f32 %v71_v46, %v4289_v37  ;;  %v110_v19 = vsel %vm104_vm0, %v4277_v34, %v4307_v43  ;;  %v107_v46 = vsel %vm104_vm0, %v4318_v47, %v4299_v41  ;;  %v108_v34 = vsel %vm104_vm0, %v4291_v38, %v4318_v47 }
 0x19a   :  { %8791 = vst [vmem:[#allocation138_spill] sm:$0xff] %v4908_v39  ;;  %2123 = vrot.lane.b32.xlu0 %v4899_v30, %s4054_s2  ;;  %v84_v22 = vadd.f32 %v76_v52, %v4289_v37  ;;  %v144_v43 = vrot.slane %v105_v15, %v4123_v8  ;;  %v82_v32 = vadd.f32 %v74_v21, %v4289_v37 }
 0x19b   :  { %v4926_v39 = vpop.permute.xlu1 %1163  ;;  %v188_v52 = vsel %vm181_vm1, %v4320_v48, %v4331_v51  ;;  %v83_v41 = vadd.f32 %v75_v10, %v4289_v37  ;;  %v80_v40 = vadd.f32 %v72_v18, %v4289_v37  ;;  %v124_v15 = vrot.slane %v110_v19, %v4123_v8 }
 0x19c   :  { %8793 = vst [vmem:[#allocation140_spill] sm:$0xff] %v4926_v39  ;;  %1748 = vrot.lane.b32.xlu1 %v4584_v36, %s4063_s22  ;;  %v128_v38 = vrot.slane %v109_v12, %v4123_v8  ;;  %v148_v47 = vrot.slane %v112_v1, %v4123_v8  ;;  %v81_v20 = vadd.f32 %v73_v16, %v4289_v37 }
 0x19d   :  { %v4953_v39 = vpop.permute.xlu0 %1518  ;;  %v149_v10 = vmul.f32 %v120_v14, %v4340_v53  ;;  %v182_v18 = vsel %vm181_vm1, %v4373_v62, %v4364_v60  ;;  %v197_v12 = vrot.slane %v188_v52, %v4123_v8  ;;  %v150_v16 = vmul.f32 %v124_v15, %v4340_v53 }
 0x19e   :  { %8794 = vst [vmem:[#allocation141_spill] sm:$0xff] %v4953_v39  ;;  %2183 = vrot.lane.b32.xlu0 %v4913_v45, %s4056_s1  ;;  %v132_v39 = vrot.slane %v108_v34, %v4123_v8  ;;  %v187_v19 = vsel %vm181_vm1, %v4331_v51, %v4351_v56  ;;  %v155_v1 = vmul.f32 %v144_v43, %v4340_v53 }
 0x19f   :  { %v4981_v44 = vpop.permute.xlu1 %1225  ;;  %v156_v34 = vmul.f32 %v148_v47, %v4340_v53  ;;  %v154_v15 = vmul.f32 %v140_v49, %v4340_v53  ;;  %v186_v51 = vsel %vm181_vm1, %v4351_v56, %v4342_v54  ;;  %v221_v43 = vrot.slane %v182_v18, %v4123_v8 }
 0x1a0   :  { %8795 = vst [vmem:[#allocation142_spill] sm:$0xff] %v4981_v44  ;;  %1752 = vrot.lane.b32.xlu1 %v4595_v58, %s4063_s22  ;;  %v136_v44 = vrot.slane %v107_v46, %v4123_v8  ;;  %v183_v46 = vsel %vm181_vm1, %v4353_v57, %v4373_v62  ;;  %v151_v37 = vmul.f32 %v128_v38, %v4340_v53 }
 0x1a1   :  { %v4996_v21 = vpop.permute.xlu0 %1522  ;;  %v152_v62 = vmul.f32 %v132_v39, %v4340_v53  ;;  %v157_v47 = vadd.f32 %v149_v10, %v78_v31  ;;  %v184_v49 = vsel %vm181_vm1, %v4362_v59, %v4353_v57  ;;  %v189_v56 = vsel %vm181_vm1, %v4364_v60, %v4320_v48 }
 0x1a2   :  { %8796 = vst [vmem:[#allocation143_spill] sm:$0xff] %v4996_v21  ;;  %2187 = vrot.lane.b32.xlu0 %v4869_v35, %s4056_s1  ;;  %v153_v52 = vmul.f32 %v136_v44, %v4340_v53  ;;  %v201_v44 = vrot.slane %v187_v19, %v4123_v8  ;;  %v158_v38 = vadd.f32 %v150_v16, %v79_v23 }
 0x1a3   :  { %v5014_v14 = vpop.permute.xlu1 %1227  ;;  %v185_v39 = vsel %vm181_vm1, %v4342_v54, %v4362_v59  ;;  %v217_v31 = vrot.slane %v183_v46, %v4123_v8  ;;  %v163_v10 = vadd.f32 %v155_v1, %v84_v22  ;;  %v205_v57 = vrot.slane %v186_v51, %v4123_v8 }
 0x1a4   :  { %1756 = vrot.lane.b32.xlu1 %v4606_v33, %s4063_s22  ;;  %v226_v19 = vmul.f32 %v197_v12, %v4384_v2  ;;  %v227_v48 = vmul.f32 %v201_v44, %v4384_v2  ;;  %v164_v60 = vadd.f32 %v156_v34, %v85_v50  ;;  %v213_v23 = vrot.slane %v184_v49, %v4123_v8 }
 0x1a5   :  { %v5032_v21 = vpop.permute.xlu0 %1526  ;;  %v225_v16 = vrot.slane %v189_v56, %v4123_v8  ;;  %v265_v54 = vsel %vm258_vm2, %v4375_v63, %v4386_v3  ;;  %v232_v59 = vmul.f32 %v221_v43, %v4384_v2  ;;  %v209_v12 = vrot.slane %v185_v39, %v4123_v8  ;;  %v3987_v56 = vld [vmem:[%s8373_s0 + $0x4] ss:$8 sm:$0xf] }
 0x1a6   :  { %8797 = vst [vmem:[#allocation144_spill] sm:$0xff] %v5032_v21  ;;  %2191 = vrot.lane.b32.xlu0 %v4883_v6, %s4056_s1  ;;  %v161_v50 = vadd.f32 %v153_v52, %v82_v32  ;;  %v162_v1 = vadd.f32 %v154_v15, %v83_v41  ;;  %v159_v46 = vadd.f32 %v151_v37, %v80_v40  ;;  %v3988_v37 = vld [vmem:[%s8373_s0 + $0x4] ss:$8 sm:$0xf0] }
 0x1a7   :  { %v5050_v18 = vpop.permute.xlu1 %1231  ;;  %v233_v34 = vmul.f32 %v225_v16, %v4384_v2  ;;  %v230_v51 = vmul.f32 %v213_v23, %v4384_v2  ;;  %v231_v44 = vmul.f32 %v217_v31, %v4384_v2  ;;  %v228_v43 = vmul.f32 %v205_v57, %v4384_v2 }
 0x1a8   :  { %1760 = vrot.lane.b32.xlu1 %v4615_v0, %s4063_s22  ;;  %v234_v40 = vadd.f32 %v226_v19, %v157_v47  ;;  %v235_v32 = vadd.f32 %v227_v48, %v158_v38  ;;  %v274_v41 = vrot.slane %v265_v54, %v4123_v8  ;;  %v160_v52 = vadd.f32 %v152_v62, %v81_v20 }
 0x1a9   :  { %v5064_v22 = vpop.permute.xlu0 %1530  ;;  %v259_v15 = vsel %vm258_vm2, %v4406_v27, %v4408_v28  ;;  %v266_v39 = vsel %vm258_vm2, %v4408_v28, %v4375_v63  ;;  %v240_v31 = vadd.f32 %v232_v59, %v163_v10  ;;  %v229_v47 = vmul.f32 %v209_v12, %v4384_v2 }
 0x1aa   :  { %8798 = vst [vmem:[#allocation145_spill] sm:$0xff] %v5064_v22  ;;  %2195 = vrot.lane.b32.xlu0 %v4899_v30, %s4056_s1  ;;  %v264_v20 = vsel %vm258_vm2, %v4386_v3, %v4391_v4  ;;  %v263_v62 = vsel %vm258_vm2, %v4391_v4, %v4393_v5  ;;  %v260_v63 = vsel %vm258_vm2, %v4400_v25, %v4406_v27 }
 0x1ab   :  { %v5074_v49 = vpop.permute.xlu1 %1235  ;;  %v5110_v28 = vor.u32 %v3988_v37, %v3987_v56  ;;  %v241_v10 = vadd.f32 %v233_v34, %v164_v60  ;;  %v238_v57 = vadd.f32 %v230_v51, %v161_v50  ;;  %v239_v19 = vadd.f32 %v231_v44, %v162_v1  ;;  %v8803_v56 = vld [vmem:[#allocation27_spill] sm:$0xff]  ;;  %v8804_v37 = vld [vmem:[#allocation28_spill] sm:$0xff] }
 0x1ac   :  { %1822 = vrot.lane.b32.xlu1 %v4628_v26, %s4065_s23  ;;  %v5112_v48 = vadd.f32 %v228_v43, %v159_v46  ;;  %v262_v4 = vsel %vm258_vm2, %v4393_v5, %v4398_v7  ;;  %v261_v27 = vsel %vm258_vm2, %v4398_v7, %v4400_v25  ;;  %v298_v23 = vrot.slane %v259_v15, %v4123_v8  ;;  %v8805_v15 = vld [vmem:[#allocation25_spill] sm:$0xff] }
 0x1ad   :  { %v5094_v38 = vpop.permute.xlu0 %1543  ;;  %8800 = vst [vmem:[#allocation147_spill] sm:$0xff] %v5110_v28  ;;  %v302_v60 = vrot.slane %v266_v39, %v4123_v8  ;;  %v278_v16 = vrot.slane %v264_v20, %v4123_v8  ;;  %v282_v54 = vrot.slane %v263_v62, %v4123_v8  ;;  %v294_v59 = vrot.slane %v260_v63, %v4123_v8  ;;  %v8807_v62 = vld [vmem:[#allocation24_spill] sm:$0xff] }
 0x1ae   :  { %8799 = vst [vmem:[#allocation146_spill] sm:$0xff] %v5094_v38  ;;  %2255 = vrot.lane.b32.xlu0 %v4913_v45, %s4059_s20  ;;  %v5131_v12 = vadd.f32 %v229_v47, %v160_v52  ;;  %v5140_v7 = vrot.slane %v5110_v28, %v4123_v8  ;;  %v5144_v25 = vrot.slane %v5110_v28, %v4125_v9 }
 0x1af   :  { %v5114_v3 = vpop.permute.xlu1 %1239  ;;  %v5148_v50 = vrot.slane %v5110_v28, %v4136_v13  ;;  %v5152_v1 = vrot.slane %v5110_v28, %v4150_v17  ;;  %v286_v46 = vrot.slane %v262_v4, %v4123_v8  ;;  %v290_v34 = vrot.slane %v261_v27, %v4123_v8  ;;  %v8808_v4 = vld [vmem:[#allocation22_spill] sm:$0xff] }
 0x1b0   :  { %1824 = vrot.lane.b32.xlu1 %v4584_v36, %s4065_s23  ;;  %v303_v51 = vmul.f32 %v274_v41, %v4414_v29  ;;  %v304_v44 = vmul.f32 %v278_v16, %v4414_v29  ;;  %v337_v52 = vsel %vm335_vm3, %v8804_v37, %v8803_v56  ;;  %v338_v39 = vsel %vm335_vm3, %v8805_v15, %v8804_v37  ;;  %v8806_v41 = vld [vmem:[#allocation23_spill] sm:$0xff] }
 0x1b1   :  { %v5133_v5 = vpop.permute.xlu0 %1598  ;;  %8802 = vst [vmem:[#allocation149_spill] sm:$0xff] %v5152_v1  ;;  %v309_v47 = vmul.f32 %v298_v23, %v4414_v29  ;;  %v310_v20 = vmul.f32 %v302_v60, %v4414_v29  ;;  %v341_v63 = vsel %vm335_vm3, %v8807_v62, %v8806_v41  ;;  %v342_v27 = vsel %vm335_vm3, %v8808_v4, %v8807_v62  ;;  %v8810_v60 = vld [vmem:[#allocation30_spill] sm:$0xff] }
 0x1b2   :  { %8801 = vst [vmem:[#allocation148_spill] sm:$0xff] %v5133_v5  ;;  %2259 = vrot.lane.b32.xlu0 %v4869_v35, %s4059_s20  ;;  %v307_v16 = vmul.f32 %v290_v34, %v4414_v29  ;;  %v308_v37 = vmul.f32 %v294_v59, %v4414_v29  ;;  %v336_v2 = vsel %vm335_vm3, %v8803_v56, %v8810_v60  ;;  %v8811_v59 = vld [vmem:[#allocation26_spill] sm:$0xff] }
 0x1b3   :  { %v5158_v43 = vpop.permute.xlu1 %1301  ;;  %v343_v53 = vsel %vm335_vm3, %v8810_v60, %v8808_v4  ;;  %v305_v17 = vmul.f32 %v282_v54, %v4414_v29  ;;  %v306_v62 = vmul.f32 %v286_v46, %v4414_v29  ;;  %v339_v34 = vsel %vm335_vm3, %v8811_v59, %v8805_v15  ;;  %v8833_v5 = vld [vmem:[#allocation50_spill] sm:$0xff] }
 0x1b4   :  { %1828 = vrot.lane.b32.xlu1 %v4595_v58, %s4065_s23  ;;  %v340_v56 = vsel %vm335_vm3, %v8806_v41, %v8811_v59  ;;  %v367_v13 = vrot.slane %v338_v39, %v4123_v8  ;;  %v371_v4 = vrot.slane %v337_v52, %v4123_v8  ;;  %v311_v46 = vadd.f32 %v303_v51, %v234_v40  ;;  %v8813_v51 = vld [vmem:[#allocation29_spill] sm:$0xff] }
 0x1b5   :  { %v5182_v23 = vpop.permute.xlu0 %1602  ;;  %v312_v60 = vadd.f32 %v304_v44, %v235_v32  ;;  %v351_v29 = vrot.slane %v342_v27, %v4123_v8  ;;  %v355_v9 = vrot.slane %v341_v63, %v4123_v8  ;;  %v317_v15 = vadd.f32 %v309_v47, %v240_v31  ;;  %v8814_v47 = vld [vmem:[#allocation33_spill] sm:$0xff] }
 0x1b6   :  { %8809 = vst [vmem:[#allocation27_spill] sm:$0xff] %v5182_v23  ;;  %2263 = vrot.lane.b32.xlu0 %v4883_v6, %s4059_s20  ;;  %v318_v28 = vadd.f32 %v310_v20, %v241_v10  ;;  %v375_v41 = vrot.slane %v336_v2, %v4123_v8  ;;  %v379_v39 = vrot.slane %v343_v53, %v4123_v8  ;;  %v8815_v20 = vld [vmem:[#allocation36_spill] sm:$0xff] }
 0x1b7   :  { %v5206_v54 = vpop.permute.xlu1 %1303  ;;  %v359_v40 = vrot.slane %v340_v56, %v4123_v8  ;;  %v363_v32 = vrot.slane %v339_v34, %v4123_v8  ;;  %v380_v44 = vmul.f32 %v351_v29, %v8813_v51  ;;  %v381_v63 = vmul.f32 %v355_v9, %v8813_v51  ;;  %v8816_v29 = vld [vmem:[#allocation31_spill] sm:$0xff]  ;;  %v8818_v56 = vld [vmem:[#allocation32_spill] sm:$0xff] }
 0x1b8   :  { %1832 = vrot.lane.b32.xlu1 %v4606_v33, %s4065_s23  ;;  %v315_v27 = vadd.f32 %v307_v16, %v238_v57  ;;  %v316_v31 = vadd.f32 %v308_v37, %v239_v19  ;;  %v384_v10 = vmul.f32 %v367_v13, %v8813_v51  ;;  %v385_v2 = vmul.f32 %v371_v4, %v8813_v51  ;;  %v8817_v16 = vld [vmem:[#allocation34_spill] sm:$0xff] }
 0x1b9   :  { %v5215_v52 = vpop.permute.xlu0 %1606  ;;  %v416_v59 = vsel %vm412_vm4, %v8815_v20, %v8814_v47  ;;  %v417_v9 = vsel %vm412_vm4, %v8816_v29, %v8815_v20  ;;  %v382_v34 = vmul.f32 %v359_v40, %v8813_v51  ;;  %v383_v57 = vmul.f32 %v363_v32, %v8813_v51 }
 0x1ba   :  { %8812 = vst [vmem:[#allocation28_spill] sm:$0xff] %v5215_v52  ;;  %2267 = vrot.lane.b32.xlu0 %v4899_v30, %s4059_s20  ;;  %v386_v13 = vmul.f32 %v375_v41, %v8813_v51  ;;  %v387_v19 = vmul.f32 %v379_v39, %v8813_v51  ;;  %v418_v37 = vsel %vm412_vm4, %v8817_v16, %v8816_v29 }
 0x1bb   :  { %v5225_v53 = vpop.permute.xlu1 %1307  ;;  %v419_v4 = vsel %vm412_vm4, %v8818_v56, %v8817_v16  ;;  %v388_v32 = vadd.f32 %v380_v44, %v311_v46  ;;  %v389_v20 = vadd.f32 %v381_v63, %v312_v60  ;;  %v313_v52 = vadd.f32 %v305_v17, %v5112_v48  ;;  %v8820_v44 = vld [vmem:[#allocation35_spill] sm:$0xff]  ;;  %v8821_v63 = vld [vmem:[#allocation38_spill] sm:$0xff] }
 0x1bc   :  { %1836 = vrot.lane.b32.xlu1 %v4615_v0, %s4065_s23  ;;  %v314_v41 = vadd.f32 %v306_v62, %v5131_v12  ;;  %v436_v39 = vrot.slane %v417_v9, %v4123_v8  ;;  %v440_v29 = vrot.slane %v416_v59, %v4123_v8  ;;  %v5257_v51 = vadd.f32 %v384_v10, %v315_v27 }
 0x1bd   :  { %v5249_v40 = vpop.permute.xlu0 %1619  ;;  %v5259_v23 = vadd.f32 %v385_v2, %v316_v31  ;;  %v428_v46 = vrot.slane %v419_v4, %v4123_v8  ;;  %v432_v17 = vrot.slane %v418_v37, %v4123_v8  ;;  %v390_v48 = vadd.f32 %v382_v34, %v313_v52  ;;  %v8823_v52 = vld [vmem:[#allocation37_spill] sm:$0xff]  ;;  %v8826_v34 = vld [vmem:[#allocation44_spill] sm:$0xff] }
 0x1be   :  { %8819 = vst [vmem:[#allocation25_spill] sm:$0xff] %v5249_v40  ;;  %2327 = vrot.lane.b32.xlu0 %v4913_v45, %s4061_s21  ;;  %v391_v12 = vadd.f32 %v383_v57, %v314_v41  ;;  %v5268_v62 = vadd.f32 %v386_v13, %v317_v15  ;;  %v5270_v60 = vadd.f32 %v387_v19, %v318_v28  ;;  %v8824_v15 = vld [vmem:[#allocation40_spill] sm:$0xff]  ;;  %v8827_v13 = vld [vmem:[#allocation42_spill] sm:$0xff] }
 0x1bf   :  { %v5262_v16 = vpop.permute.xlu1 %1311  ;;  %v414_v27 = vsel %vm412_vm4, %v8821_v63, %v8820_v44  ;;  %v415_v31 = vsel %vm412_vm4, %v8814_v47, %v8821_v63  ;;  %v457_v2 = vmul.f32 %v428_v46, %v8823_v52  ;;  %v458_v59 = vmul.f32 %v432_v17, %v8823_v52  ;;  %v8825_v47 = vld [vmem:[#allocation39_spill] sm:$0xff]  ;;  %v8828_v17 = vld [vmem:[#allocation41_spill] sm:$0xff] }
 0x1c0   :  { %1898 = vrot.lane.b32.xlu1 %v4628_v26, %s4067_s24  ;;  %v413_v28 = vsel %vm412_vm4, %v8820_v44, %v8824_v15  ;;  %v420_v9 = vsel %vm412_vm4, %v8824_v15, %v8818_v56  ;;  %v495_v57 = vsel %vm489_vm5, %v8826_v34, %v8825_v47  ;;  %v496_v19 = vsel %vm489_vm5, %v8827_v13, %v8826_v34  ;;  %v8829_v44 = vld [vmem:[#allocation46_spill] sm:$0xff]  ;;  %v8831_v34 = vld [vmem:[#allocation48_spill] sm:$0xff] }
 0x1c1   :  { %v5280_v10 = vpop.permute.xlu0 %1674  ;;  %v459_v37 = vmul.f32 %v436_v39, %v8823_v52  ;;  %v460_v4 = vmul.f32 %v440_v29, %v8823_v52  ;;  %v444_v56 = vrot.slane %v415_v31, %v4123_v8  ;;  %v448_v46 = vrot.slane %v414_v27, %v4123_v8  ;;  %v8830_v31 = vld [vmem:[#allocation43_spill] sm:$0xff] }
 0x1c2   :  { %8822 = vst [vmem:[#allocation23_spill] sm:$0xff] %v5280_v10  ;;  %2331 = vrot.lane.b32.xlu0 %v4869_v35, %s4061_s21  ;;  %v493_v63 = vsel %vm489_vm5, %v8829_v44, %v8828_v17  ;;  %v494_v15 = vsel %vm489_vm5, %v8825_v47, %v8829_v44  ;;  %v452_v39 = vrot.slane %v413_v28, %v4123_v8 }
 0x1c3   :  { %v5304_v41 = vpop.permute.xlu1 %1315  ;;  %v456_v29 = vrot.slane %v420_v9, %v4123_v8  ;;  %v491_v27 = vsel %vm489_vm5, %v8831_v34, %v8830_v31  ;;  %v492_v40 = vsel %vm489_vm5, %v8828_v17, %v8831_v34  ;;  %v505_v47 = vrot.slane %v496_v19, %v4123_v8 }
 0x1c4   :  { %1900 = vrot.lane.b32.xlu1 %v4584_v36, %s4067_s24  ;;  %v509_v44 = vrot.slane %v495_v57, %v4123_v8  ;;  %v490_v28 = vsel %vm489_vm5, %v8830_v31, %v8833_v5  ;;  %v497_v9 = vsel %vm489_vm5, %v8833_v5, %v8827_v13  ;;  %v465_v17 = vadd.f32 %v457_v2, %v388_v32  ;;  %v8836_v13 = vld [vmem:[#allocation45_spill] sm:$0xff] }
 0x1c5   :  { %v5328_v10 = vpop.permute.xlu0 %1678  ;;  %v466_v34 = vadd.f32 %v458_v59, %v389_v20  ;;  %v517_v19 = vrot.slane %v493_v63, %v4123_v8  ;;  %v461_v38 = vmul.f32 %v444_v56, %v8823_v52  ;;  %v462_v31 = vmul.f32 %v448_v46, %v8823_v52  ;;  %v8837_v46 = vld [vmem:[#allocation47_spill] sm:$0xff]  ;;  %v8838_v63 = vld [vmem:[#allocation54_spill] sm:$0xff] }
 0x1c6   :  { %8832 = vst [vmem:[#allocation24_spill] sm:$0xff] %v5328_v10  ;;  %2335 = vrot.lane.b32.xlu0 %v4883_v6, %s4061_s21  ;;  %v513_v10 = vrot.slane %v494_v15, %v4123_v8  ;;  %v521_v22 = vrot.slane %v492_v40, %v4123_v8  ;;  %v525_v21 = vrot.slane %v491_v27, %v4123_v8  ;;  %v8839_v27 = vld [vmem:[#allocation52_spill] sm:$0xff] }
 0x1c7   :  { %v5344_v57 = vpop.permute.xlu1 %1382  ;;  %v463_v5 = vmul.f32 %v452_v39, %v8823_v52  ;;  %v464_v32 = vmul.f32 %v456_v29, %v8823_v52  ;;  %v529_v20 = vrot.slane %v490_v28, %v4123_v8  ;;  %v533_v2 = vrot.slane %v497_v9, %v4123_v8 }
 0x1c8   :  { %8834 = vst [vmem:[#allocation22_spill] sm:$0xff] %v5344_v57  ;;  %1904 = vrot.lane.b32.xlu1 %v4595_v58, %s4067_s24  ;;  %v534_v56 = vmul.f32 %v505_v47, %v8836_v13  ;;  %v535_v40 = vmul.f32 %v509_v44, %v8836_v13  ;;  %v572_v15 = vsel %vm566_vm6, %v8838_v63, %v8837_v46 }
 0x1c9   :  { %v5357_v59 = vpop.permute.xlu0 %1682  ;;  %v573_v39 = vsel %vm566_vm6, %v8839_v27, %v8838_v63  ;;  %v467_v29 = vadd.f32 %v459_v37, %v390_v48  ;;  %v468_v28 = vadd.f32 %v460_v4, %v391_v12  ;;  %v536_v9 = vmul.f32 %v513_v10, %v8836_v13 }
 0x1ca   :  { %8835 = vst [vmem:[#allocation30_spill] sm:$0xff] %v5357_v59  ;;  %2339 = vrot.lane.b32.xlu0 %v4899_v30, %s4061_s21  ;;  %v537_v47 = vmul.f32 %v517_v19, %v8836_v13  ;;  %v469_v52 = vadd.f32 %v461_v38, %v5257_v51  ;;  %v470_v59 = vadd.f32 %v462_v31, %v5259_v23  ;;  %v8842_v31 = vld [vmem:[#allocation49_spill] sm:$0xff] }
 0x1cb   :  { %v5373_v44 = vpop.permute.xlu1 %1442  ;;  %v538_v57 = vmul.f32 %v521_v22, %v8836_v13  ;;  %v539_v1 = vmul.f32 %v525_v21, %v8836_v13  ;;  %v540_v48 = vmul.f32 %v529_v20, %v8836_v13  ;;  %v541_v12 = vmul.f32 %v533_v2, %v8836_v13  ;;  %v8843_v20 = vld [vmem:[#allocation56_spill] sm:$0xff]  ;;  %v8858_v13 = vld [vmem:[#allocation74_spill] sm:$0xff] }
 0x1cc   :  { %8840 = vst [vmem:[#allocation26_spill] sm:$0xff] %v5373_v44  ;;  %1908 = vrot.lane.b32.xlu1 %v4606_v33, %s4067_s24  ;;  %v582_v10 = vrot.slane %v573_v39, %v4123_v8  ;;  %v586_v37 = vrot.slane %v572_v15, %v4123_v8  ;;  %v471_v38 = vadd.f32 %v463_v5, %v5268_v62  ;;  %v8846_v5 = vld [vmem:[#allocation58_spill] sm:$0xff] }
 0x1cd   :  { %v5385_v4 = vpop.permute.xlu0 %1695  ;;  %v472_v23 = vadd.f32 %v464_v32, %v5270_v60  ;;  %v542_v22 = vadd.f32 %v534_v56, %v465_v17  ;;  %v543_v51 = vadd.f32 %v535_v40, %v466_v34  ;;  %v544_v21 = vadd.f32 %v536_v9, %v467_v29  ;;  %v8845_v34 = vld [vmem:[#allocation51_spill] sm:$0xff]  ;;  %v8849_v29 = vld [vmem:[#allocation60_spill] sm:$0xff] }
 0x1ce   :  { %8841 = vst [vmem:[#allocation33_spill] sm:$0xff] %v5385_v4  ;;  %2399 = vrot.lane.b32.xlu0 %v4913_v45, %s4063_s22  ;;  %v545_v19 = vadd.f32 %v537_v47, %v468_v28  ;;  %v570_v2 = vsel %vm566_vm6, %v8843_v20, %v8842_v31  ;;  %v571_v63 = vsel %vm566_vm6, %v8837_v46, %v8843_v20  ;;  %v8847_v46 = vld [vmem:[#allocation53_spill] sm:$0xff]  ;;  %v8855_v20 = vld [vmem:[#allocation68_spill] sm:$0xff] }
 0x1cf   :  { %v5399_v62 = vpop.permute.xlu1 %1446  ;;  %v546_v60 = vadd.f32 %v538_v57, %v469_v52  ;;  %v547_v17 = vadd.f32 %v539_v1, %v470_v59  ;;  %v568_v32 = vsel %vm566_vm6, %v8846_v5, %v8845_v34  ;;  %v569_v56 = vsel %vm566_vm6, %v8842_v31, %v8846_v5  ;;  %v8857_v5 = vld [vmem:[#allocation70_spill] sm:$0xff] }
 0x1d0   :  { %8844 = vst [vmem:[#allocation36_spill] sm:$0xff] %v5399_v62  ;;  %1912 = vrot.lane.b32.xlu1 %v4615_v0, %s4067_s24  ;;  %v548_v40 = vadd.f32 %v540_v48, %v471_v38  ;;  %v549_v15 = vadd.f32 %v541_v12, %v472_v23  ;;  %v611_v39 = vmul.f32 %v582_v10, %v8847_v46  ;;  %v8850_v12 = vld [vmem:[#allocation55_spill] sm:$0xff]  ;;  %v8851_v10 = vld [vmem:[#allocation65_spill] sm:$0xff] }
 0x1d1   :  { %v612_v52 = vmul.f32 %v586_v37, %v8847_v46  ;;  %v5413_v1 = vpop.permute.xlu0 %1750  ;;  %v590_v57 = vrot.slane %v571_v63, %v4123_v8  ;;  %v594_v59 = vrot.slane %v570_v2, %v4123_v8  ;;  %v567_v28 = vsel %vm566_vm6, %v8845_v34, %v8849_v29  ;;  %v8852_v38 = vld [vmem:[#allocation63_spill] sm:$0xff] }
 0x1d2   :  { %8848 = vst [vmem:[#allocation31_spill] sm:$0xff] %v5413_v1  ;;  %v574_v9 = vsel %vm566_vm6, %v8849_v29, %v8839_v27  ;;  %2403 = vrot.lane.b32.xlu0 %v4869_v35, %s4063_s22  ;;  %v598_v47 = vrot.slane %v569_v56, %v4123_v8  ;;  %v602_v48 = vrot.slane %v568_v32, %v4123_v8  ;;  %v8854_v27 = vld [vmem:[#allocation57_spill] sm:$0xff]  ;;  %v8856_v34 = vld [vmem:[#allocation59_spill] sm:$0xff] }
 0x1d3   :  { %v649_v37 = vsel %vm643_vm7, %v8851_v10, %v8850_v12  ;;  %v650_v23 = vsel %vm643_vm7, %v8852_v38, %v8851_v10  ;;  %v5437_v31 = vpop.permute.xlu1 %1450  ;;  %v647_v2 = vsel %vm643_vm7, %v8855_v20, %v8854_v27  ;;  %v648_v63 = vsel %vm643_vm7, %v8850_v12, %v8855_v20 }
 0x1d4   :  { %8853 = vst [vmem:[#allocation34_spill] sm:$0xff] %v5437_v31  ;;  %v645_v32 = vsel %vm643_vm7, %v8857_v5, %v8856_v34  ;;  %v646_v56 = vsel %vm643_vm7, %v8854_v27, %v8857_v5  ;;  %1974 = vrot.lane.b32.xlu1 %v4628_v26, %s4069_s25  ;;  %v606_v29 = vrot.slane %v567_v28, %v4123_v8 }
 0x1d5   :  { %v610_v10 = vrot.slane %v574_v9, %v4123_v8  ;;  %v644_v12 = vsel %vm643_vm7, %v8856_v34, %v8858_v13  ;;  %v651_v20 = vsel %vm643_vm7, %v8858_v13, %v8852_v38  ;;  %v5467_v1 = vpop.permute.xlu0 %1754  ;;  %v613_v27 = vmul.f32 %v590_v57, %v8847_v46 }
 0x1d6   :  { %8859 = vst [vmem:[#allocation32_spill] sm:$0xff] %v5467_v1  ;;  %v614_v5 = vmul.f32 %v594_v59, %v8847_v46  ;;  %v659_v28 = vrot.slane %v650_v23, %v4123_v8  ;;  %v663_v9 = vrot.slane %v649_v37, %v4123_v8  ;;  %2407 = vrot.lane.b32.xlu0 %v4883_v6, %s4063_s22 }
 0x1d7   :  { %v667_v34 = vrot.slane %v648_v63, %v4123_v8  ;;  %v671_v4 = vrot.slane %v647_v2, %v4123_v8  ;;  %v675_v31 = vrot.slane %v646_v56, %v4123_v8  ;;  %v679_v13 = vrot.slane %v645_v32, %v4123_v8  ;;  %v5479_v38 = vpop.permute.xlu1 %1454 }
 0x1d8   :  { %8860 = vst [vmem:[#allocation35_spill] sm:$0xff] %v5479_v38  ;;  %v615_v57 = vmul.f32 %v598_v47, %v8847_v46  ;;  %v616_v59 = vmul.f32 %v602_v48, %v8847_v46  ;;  %v683_v23 = vrot.slane %v644_v12, %v4123_v8  ;;  %v687_v37 = vrot.slane %v651_v20, %v4123_v8  ;;  %v8862_v47 = vld [vmem:[#allocation61_spill] sm:$0xff] }
 0x1d9   :  { %1976 = vrot.lane.b32.xlu1 %v4584_v36, %s4069_s25  ;;  %v619_v63 = vadd.f32 %v611_v39, %v542_v22  ;;  %v620_v1 = vadd.f32 %v612_v52, %v543_v51  ;;  %v617_v2 = vmul.f32 %v606_v29, %v8847_v46  ;;  %v618_v56 = vmul.f32 %v610_v10, %v8847_v46  ;;  %v5489_v32 = vpop.permute.xlu0 %1758 }
 0x1da   :  { %8861 = vst [vmem:[#allocation38_spill] sm:$0xff] %v5489_v32  ;;  %v621_v38 = vadd.f32 %v613_v27, %v544_v21  ;;  %v622_v62 = vadd.f32 %v614_v5, %v545_v19  ;;  %v688_v44 = vmul.f32 %v659_v28, %v8862_v47  ;;  %v689_v48 = vmul.f32 %v663_v9, %v8862_v47  ;;  %v8864_v5 = vld [vmem:[#allocation77_spill] sm:$0xff]  ;;  %v8865_v28 = vld [vmem:[#allocation16_spill] sm:$0xff] }
 0x1db   :  { %2411 = vrot.lane.b32.xlu0 %v4899_v30, %s4063_s22  ;;  %v690_v12 = vmul.f32 %v667_v34, %v8862_v47  ;;  %v691_v22 = vmul.f32 %v671_v4, %v8862_v47  ;;  %v692_v51 = vmul.f32 %v675_v31, %v8862_v47  ;;  %v693_v39 = vmul.f32 %v679_v13, %v8862_v47  ;;  %v5499_v52 = vpop.permute.xlu1 %1467  ;;  %v8866_v31 = vld [vmem:[#allocation11_spill] sm:$0xff]  ;;  %v8896_v32 = vld [vmem:[#allocation96_spill] sm:$0xff] }
 0x1dc   :  { %8863 = vst [vmem:[#allocation40_spill] sm:$0xff] %v5499_v52  ;;  %v623_v29 = vadd.f32 %v615_v57, %v546_v60  ;;  %v624_v21 = vadd.f32 %v616_v59, %v547_v17  ;;  %v694_v19 = vmul.f32 %v683_v23, %v8862_v47  ;;  %v695_v10 = vmul.f32 %v687_v37, %v8862_v47  ;;  %v8868_v17 = vld [vmem:[#allocation17_spill] sm:$0xff]  ;;  %v8869_v59 = vld [vmem:[#allocation12_spill] sm:$0xff] }
 0x1dd   :  { %1980 = vrot.lane.b32.xlu1 %v4595_v58, %s4069_s25  ;;  %v625_v20 = vadd.f32 %v617_v2, %v548_v40  ;;  %v626_v27 = vadd.f32 %v618_v56, %v549_v15  ;;  %v753_v4 = vmul.f32 %v8865_v28, %v8864_v5  ;;  %v754_v9 = vmul.f32 %v8866_v31, %v8864_v5  ;;  %v5509_v34 = vpop.permute.xlu0 %1771 }
 0x1de   :  { %8867 = vst [vmem:[#allocation39_spill] sm:$0xff] %v5509_v34  ;;  %v696_v13 = vadd.f32 %v688_v44, %v619_v63  ;;  %v697_v60 = vadd.f32 %v689_v48, %v620_v1  ;;  %v755_v57 = vmul.f32 %v8868_v17, %v8864_v5  ;;  %v756_v23 = vmul.f32 %v8869_v59, %v8864_v5  ;;  %v8871_v44 = vld [vmem:[#allocation18_spill] sm:$0xff]  ;;  %v8872_v63 = vld [vmem:[#allocation13_spill] sm:$0xff] }
 0x1df   :  { %2471 = vrot.lane.b32.xlu0 %v4913_v45, %s4065_s23  ;;  %v698_v40 = vadd.f32 %v690_v12, %v621_v38  ;;  %v699_v15 = vadd.f32 %v691_v22, %v622_v62  ;;  %v700_v37 = vadd.f32 %v692_v51, %v623_v29  ;;  %v701_v2 = vadd.f32 %v693_v39, %v624_v21  ;;  %v5517_v56 = vpop.permute.xlu1 %1520  ;;  %v8873_v38 = vld [vmem:[#allocation19_spill] sm:$0xff]  ;;  %v8874_v12 = vld [vmem:[#allocation14_spill] sm:$0xff]  ;;  %v8877_v29 = vld [vmem:[#allocation80_spill] sm:$0xff] }
 0x1e0   :  { %8870 = vst [vmem:[#allocation44_spill] sm:$0xff] %v5517_v56  ;;  %v702_v28 = vadd.f32 %v694_v19, %v625_v20  ;;  %v703_v31 = vadd.f32 %v695_v10, %v626_v27  ;;  %v757_v1 = vmul.f32 %v8871_v44, %v8864_v5  ;;  %v758_v48 = vmul.f32 %v8872_v63, %v8864_v5  ;;  %v8876_v39 = vld [vmem:[#allocation62_spill] sm:$0xff]  ;;  %v8878_v19 = vld [vmem:[#allocation67_spill] sm:$0xff]  ;;  %v8882_v63 = vld [vmem:[#allocation84_spill] sm:$0xff] }
 0x1e1   :  { %1984 = vrot.lane.b32.xlu1 %v4606_v33, %s4069_s25  ;;  %v761_v17 = vadd.f32 %v753_v4, %v696_v13  ;;  %v762_v59 = vadd.f32 %v754_v9, %v697_v60  ;;  %v759_v62 = vmul.f32 %v8873_v38, %v8864_v5  ;;  %v760_v22 = vmul.f32 %v8874_v12, %v8864_v5  ;;  %v5529_v51 = vpop.permute.xlu0 %1826  ;;  %v8879_v4 = vld [vmem:[#allocation64_spill] sm:$0xff]  ;;  %v8880_v9 = vld [vmem:[#allocation82_spill] sm:$0xff] }
 0x1e2   :  { %8875 = vst [vmem:[#allocation42_spill] sm:$0xff] %v5529_v51  ;;  %v791_v21 = vsel %vm104_vm0, %v8877_v29, %v8876_v39  ;;  %v792_v10 = vsel %vm104_vm0, %v8878_v19, %v8877_v29  ;;  %v763_v20 = vadd.f32 %v755_v57, %v698_v40  ;;  %v764_v27 = vadd.f32 %v756_v23, %v699_v15  ;;  %v8881_v44 = vld [vmem:[#allocation66_spill] sm:$0xff] }
 0x1e3   :  { %2475 = vrot.lane.b32.xlu0 %v4869_v35, %s4065_s23  ;;  %v789_v13 = vsel %vm104_vm0, %v8880_v9, %v8879_v4  ;;  %v790_v60 = vsel %vm104_vm0, %v8876_v39, %v8880_v9  ;;  %v787_v38 = vsel %vm104_vm0, %v8882_v63, %v8881_v44  ;;  %v788_v57 = vsel %vm104_vm0, %v8879_v4, %v8882_v63  ;;  %v5557_v23 = vpop.permute.xlu1 %1524  ;;  %v8884_v40 = vld [vmem:[#allocation86_spill] sm:$0xff] }
 0x1e4   :  { %8883 = vst [vmem:[#allocation41_spill] sm:$0xff] %v5557_v23  ;;  %v785_v15 = vsel %vm104_vm0, %v8884_v40, %v8878_v19  ;;  %v786_v12 = vsel %vm104_vm0, %v8881_v44, %v8884_v40  ;;  %v5567_v39 = vadd.f32 %v757_v1, %v700_v37  ;;  %v5569_v29 = vadd.f32 %v758_v48, %v701_v2  ;;  %v8892_v40 = vld [vmem:[#allocation92_spill] sm:$0xff]  ;;  %v8894_v34 = vld [vmem:[#allocation94_spill] sm:$0xff] }
 0x1e5   :  { %1988 = vrot.lane.b32.xlu1 %v4615_v0, %s4069_s25  ;;  %v800_v4 = vrot.slane %v791_v21, %v4123_v8  ;;  %v828_v9 = vrot.slane %v792_v10, %v4123_v8  ;;  %v5575_v63 = vadd.f32 %v759_v62, %v702_v28  ;;  %v5577_v47 = vadd.f32 %v760_v22, %v703_v31  ;;  %v5579_v19 = vpop.permute.xlu0 %1830  ;;  %v8886_v62 = vld [vmem:[#allocation71_spill] sm:$0xff]  ;;  %v8887_v31 = vld [vmem:[#allocation90_spill] sm:$0xff]  ;;  %v8888_v21 = vld [vmem:[#allocation69_spill] sm:$0xff] }
 0x1e6   :  { %8885 = vst [vmem:[#allocation46_spill] sm:$0xff] %v5579_v19  ;;  %v804_v46 = vrot.slane %v790_v60, %v4123_v8  ;;  %v808_v37 = vrot.slane %v789_v13, %v4123_v8  ;;  %v812_v2 = vrot.slane %v788_v57, %v4123_v8  ;;  %v816_v1 = vrot.slane %v787_v38, %v4123_v8  ;;  %v8890_v60 = vld [vmem:[#allocation88_spill] sm:$0xff]  ;;  %v8891_v57 = vld [vmem:[#allocation73_spill] sm:$0xff] }
 0x1e7   :  { %2479 = vrot.lane.b32.xlu0 %v4883_v6, %s4065_s23  ;;  %v820_v48 = vrot.slane %v786_v12, %v4123_v8  ;;  %v824_v28 = vrot.slane %v785_v15, %v4123_v8  ;;  %v866_v22 = vsel %vm181_vm1, %v8887_v31, %v8886_v62  ;;  %v867_v10 = vsel %vm181_vm1, %v8888_v21, %v8887_v31  ;;  %v5597_v13 = vpop.permute.xlu1 %1528 }
 0x1e8   :  { %8889 = vst [vmem:[#allocation43_spill] sm:$0xff] %v5597_v13  ;;  %v829_v44 = vmul.f32 %v800_v4, %v8890_v60  ;;  %v830_v38 = vmul.f32 %v804_v46, %v8890_v60  ;;  %v864_v15 = vsel %vm181_vm1, %v8892_v40, %v8891_v57  ;;  %v865_v12 = vsel %vm181_vm1, %v8886_v62, %v8892_v40  ;;  %v8893_v4 = vld [vmem:[#allocation76_spill] sm:$0xff] }
 0x1e9   :  { %2111 = vrot.lane.b32.xlu1 %v4913_v45, %s4054_s2  ;;  %v831_v31 = vmul.f32 %v808_v37, %v8890_v60  ;;  %v832_v5 = vmul.f32 %v812_v2, %v8890_v60  ;;  %v862_v46 = vsel %vm181_vm1, %v8894_v34, %v8893_v4  ;;  %v863_v19 = vsel %vm181_vm1, %v8891_v57, %v8894_v34  ;;  %v5621_v51 = vpop.permute.xlu0 %1834 }
 0x1ea   :  { %8895 = vst [vmem:[#allocation48_spill] sm:$0xff] %v5621_v51  ;;  %v876_v62 = vrot.slane %v867_v10, %v4123_v8  ;;  %v880_v40 = vrot.slane %v866_v22, %v4123_v8  ;;  %v861_v37 = vsel %vm181_vm1, %v8893_v4, %v8896_v32  ;;  %v868_v2 = vsel %vm181_vm1, %v8896_v32, %v8888_v21 }
 0x1eb   :  { %2483 = vrot.lane.b32.xlu0 %v4899_v30, %s4065_s23  ;;  %v884_v34 = vrot.slane %v865_v12, %v4123_v8  ;;  %v888_v57 = vrot.slane %v864_v15, %v4123_v8  ;;  %v833_v10 = vmul.f32 %v816_v1, %v8890_v60  ;;  %v834_v22 = vmul.f32 %v820_v48, %v8890_v60  ;;  %v5639_v51 = vpop.permute.xlu1 %1532 }
 0x1ec   :  { %8897 = vst [vmem:[#allocation50_spill] sm:$0xff] %v5639_v51  ;;  %v892_v4 = vrot.slane %v863_v19, %v4123_v8  ;;  %v896_v13 = vrot.slane %v862_v46, %v4123_v8  ;;  %v835_v23 = vmul.f32 %v824_v28, %v8890_v60  ;;  %v836_v32 = vmul.f32 %v828_v9, %v8890_v60  ;;  %v8899_v51 = vld [vmem:[#allocation79_spill] sm:$0xff]  ;;  %v8901_v28 = vld [vmem:[#allocation100_spill] sm:$0xff] }
 0x1ed   :  { %2113 = vrot.lane.b32.xlu1 %v4916_v42, %s4054_s2  ;;  %v837_v21 = vadd.f32 %v829_v44, %v761_v17  ;;  %v838_v12 = vadd.f32 %v830_v38, %v762_v59  ;;  %v900_v15 = vrot.slane %v861_v37, %v4123_v8  ;;  %v904_v1 = vrot.slane %v868_v2, %v4123_v8  ;;  %v5649_v48 = vpop.permute.xlu0 %1847  ;;  %v8900_v59 = vld [vmem:[#allocation81_spill] sm:$0xff]  ;;  %v8902_v38 = vld [vmem:[#allocation98_spill] sm:$0xff] }
 0x1ee   :  { %8898 = vst [vmem:[#allocation47_spill] sm:$0xff] %v5649_v48  ;;  %v905_v52 = vmul.f32 %v876_v62, %v8899_v51  ;;  %v906_v19 = vmul.f32 %v880_v40, %v8899_v51  ;;  %v839_v46 = vadd.f32 %v831_v31, %v763_v20  ;;  %v840_v56 = vadd.f32 %v832_v5, %v764_v27  ;;  %v8904_v27 = vld [vmem:[#allocation83_spill] sm:$0xff]  ;;  %v8905_v31 = vld [vmem:[#allocation102_spill] sm:$0xff] }
 0x1ef   :  { %2543 = vrot.lane.b32.xlu0 %v4913_v45, %s4067_s24  ;;  %v907_v9 = vmul.f32 %v884_v34, %v8899_v51  ;;  %v908_v17 = vmul.f32 %v888_v57, %v8899_v51  ;;  %v942_v44 = vsel %vm258_vm2, %v8901_v28, %v8900_v59  ;;  %v943_v62 = vsel %vm258_vm2, %v8902_v38, %v8901_v28  ;;  %v5665_v40 = vpop.permute.xlu1 %1594 }
 0x1f0   :  { %8903 = vst [vmem:[#allocation54_spill] sm:$0xff] %v5665_v40  ;;  %v909_v5 = vmul.f32 %v892_v4, %v8899_v51  ;;  %v910_v20 = vmul.f32 %v896_v13, %v8899_v51  ;;  %v940_v37 = vsel %vm258_vm2, %v8905_v31, %v8904_v27  ;;  %v941_v2 = vsel %vm258_vm2, %v8900_v59, %v8905_v31 }
 0x1f1   :  { %2117 = vrot.lane.b32.xlu1 %v4919_v11, %s4054_s2  ;;  %v841_v34 = vadd.f32 %v833_v10, %v5567_v39  ;;  %v842_v57 = vadd.f32 %v834_v22, %v5569_v29  ;;  %v911_v4 = vmul.f32 %v900_v15, %v8899_v51  ;;  %v912_v13 = vmul.f32 %v904_v1, %v8899_v51  ;;  %v5683_v28 = vpop.permute.xlu0 %1902  ;;  %v8921_v51 = vld [vmem:[#allocation116_spill] sm:$0xff] }
 0x1f2   :  { %8906 = vst [vmem:[#allocation52_spill] sm:$0xff] %v5683_v28  ;;  %v843_v60 = vadd.f32 %v835_v23, %v5575_v63  ;;  %v844_v48 = vadd.f32 %v836_v32, %v5577_v47  ;;  %v952_v40 = vrot.slane %v943_v62, %v4123_v8  ;;  %v956_v59 = vrot.slane %v942_v44, %v4123_v8 }
 0x1f3   :  { %2547 = vrot.lane.b32.xlu0 %v4869_v35, %s4067_s24  ;;  %v913_v39 = vadd.f32 %v905_v52, %v837_v21  ;;  %v914_v10 = vadd.f32 %v906_v19, %v838_v12  ;;  %v960_v29 = vrot.slane %v941_v2, %v4123_v8  ;;  %v964_v22 = vrot.slane %v940_v37, %v4123_v8  ;;  %v5693_v15 = vpop.permute.xlu1 %1596  ;;  %v8907_v52 = vld [vmem:[#allocation85_spill] sm:$0xff]  ;;  %v8908_v21 = vld [vmem:[#allocation104_spill] sm:$0xff] }
 0x1f4   :  { %v915_v1 = vadd.f32 %v907_v9, %v839_v46  ;;  %v916_v31 = vadd.f32 %v908_v17, %v840_v56  ;;  %v5695_v23 = vadd.f32 %v909_v5, %v841_v34  ;;  %v5697_v47 = vadd.f32 %v910_v20, %v842_v57  ;;  %v8910_v46 = vld [vmem:[#allocation87_spill] sm:$0xff]  ;;  %v8913_v20 = vld [vmem:[#allocation110_spill] sm:$0xff]  ;;  %v8914_v37 = vld [vmem:[#allocation108_spill] sm:$0xff] }
 0x1f5   :  { %2121 = vrot.lane.b32.xlu1 %v4929_v24, %s4054_s2  ;;  %v5701_v63 = vadd.f32 %v911_v4, %v843_v60  ;;  %v5703_v32 = vadd.f32 %v912_v13, %v844_v48  ;;  %v938_v12 = vsel %vm258_vm2, %v8908_v21, %v8907_v52  ;;  %v939_v56 = vsel %vm258_vm2, %v8904_v27, %v8908_v21  ;;  %v5713_v19 = vpop.permute.xlu0 %1906  ;;  %v8911_v60 = vld [vmem:[#allocation106_spill] sm:$0xff]  ;;  %v8916_v4 = vld [vmem:[#allocation91_spill] sm:$0xff]  ;;  %v8917_v13 = vld [vmem:[#allocation112_spill] sm:$0xff] }
 0x1f6   :  { %8909 = vst [vmem:[#allocation49_spill] sm:$0xff] %v5713_v19  ;;  %v981_v9 = vmul.f32 %v952_v40, %v8910_v46  ;;  %v982_v17 = vmul.f32 %v956_v59, %v8910_v46  ;;  %v937_v48 = vsel %vm258_vm2, %v8907_v52, %v8911_v60  ;;  %v944_v44 = vsel %vm258_vm2, %v8911_v60, %v8902_v38  ;;  %v8912_v40 = vld [vmem:[#allocation89_spill] sm:$0xff] }
 0x1f7   :  { %2551 = vrot.lane.b32.xlu0 %v4883_v6, %s4067_s24  ;;  %v983_v62 = vmul.f32 %v960_v29, %v8910_v46  ;;  %v984_v5 = vmul.f32 %v964_v22, %v8910_v46  ;;  %v1018_v27 = vsel %vm335_vm3, %v8913_v20, %v8912_v40  ;;  %v1019_v2 = vsel %vm335_vm3, %v8914_v37, %v8913_v20  ;;  %v5737_v34 = vpop.permute.xlu1 %1600  ;;  %v8918_v21 = vld [vmem:[#allocation93_spill] sm:$0xff] }
 0x1f8   :  { %8915 = vst [vmem:[#allocation56_spill] sm:$0xff] %v5737_v34  ;;  %v968_v38 = vrot.slane %v939_v56, %v4123_v8  ;;  %v972_v57 = vrot.slane %v938_v12, %v4123_v8  ;;  %v1016_v59 = vsel %vm335_vm3, %v8917_v13, %v8916_v4  ;;  %v1017_v29 = vsel %vm335_vm3, %v8912_v40, %v8917_v13  ;;  %v8919_v56 = vld [vmem:[#allocation114_spill] sm:$0xff] }
 0x1f9   :  { %2125 = vrot.lane.b32.xlu1 %v4932_v55, %s4054_s2  ;;  %v976_v22 = vrot.slane %v937_v48, %v4123_v8  ;;  %v980_v52 = vrot.slane %v944_v44, %v4123_v8  ;;  %v1014_v12 = vsel %vm335_vm3, %v8919_v56, %v8918_v21  ;;  %v1015_v60 = vsel %vm335_vm3, %v8916_v4, %v8919_v56  ;;  %v5761_v20 = vpop.permute.xlu0 %1910 }
 0x1fa   :  { %8920 = vst [vmem:[#allocation51_spill] sm:$0xff] %v5761_v20  ;;  %v1028_v40 = vrot.slane %v1019_v2, %v4123_v8  ;;  %v1032_v13 = vrot.slane %v1018_v27, %v4123_v8  ;;  %v1013_v48 = vsel %vm335_vm3, %v8918_v21, %v8921_v51  ;;  %v1020_v44 = vsel %vm335_vm3, %v8921_v51, %v8914_v37 }
 0x1fb   :  { %2555 = vrot.lane.b32.xlu0 %v4899_v30, %s4067_s24  ;;  %v989_v4 = vadd.f32 %v981_v9, %v913_v39  ;;  %v990_v56 = vadd.f32 %v982_v17, %v914_v10  ;;  %v1036_v20 = vrot.slane %v1017_v29, %v4123_v8  ;;  %v1040_v2 = vrot.slane %v1016_v59, %v4123_v8  ;;  %v5777_v27 = vpop.permute.xlu1 %1604  ;;  %v8925_v59 = vld [vmem:[#allocation97_spill] sm:$0xff]  ;;  %v8926_v29 = vld [vmem:[#allocation120_spill] sm:$0xff] }
 0x1fc   :  { %8922 = vst [vmem:[#allocation58_spill] sm:$0xff] %v5777_v27  ;;  %v991_v19 = vadd.f32 %v983_v62, %v915_v1  ;;  %v992_v28 = vadd.f32 %v984_v5, %v916_v31  ;;  %v1044_v21 = vrot.slane %v1015_v60, %v4123_v8  ;;  %v1048_v34 = vrot.slane %v1014_v12, %v4123_v8  ;;  %v8924_v62 = vld [vmem:[#allocation95_spill] sm:$0xff] }
 0x1fd   :  { %2185 = vrot.lane.b32.xlu1 %v4916_v42, %s4056_s1  ;;  %v985_v51 = vmul.f32 %v968_v38, %v8910_v46  ;;  %v986_v39 = vmul.f32 %v972_v57, %v8910_v46  ;;  %v1052_v10 = vrot.slane %v1013_v48, %v4123_v8  ;;  %v1056_v9 = vrot.slane %v1020_v44, %v4123_v8  ;;  %v5787_v17 = vpop.permute.xlu0 %1923  ;;  %v8929_v48 = vld [vmem:[#allocation99_spill] sm:$0xff] }
 0x1fe   :  { %8923 = vst [vmem:[#allocation60_spill] sm:$0xff] %v5787_v17  ;;  %v987_v1 = vmul.f32 %v976_v22, %v8910_v46  ;;  %v988_v31 = vmul.f32 %v980_v52, %v8910_v46  ;;  %v1057_v5 = vmul.f32 %v1028_v40, %v8924_v62  ;;  %v1058_v37 = vmul.f32 %v1032_v13, %v8924_v62  ;;  %v8927_v22 = vld [vmem:[#allocation118_spill] sm:$0xff] }
 0x1ff   :  { %2615 = vrot.lane.b32.xlu0 %v4913_v45, %s4069_s25  ;;  %v1059_v38 = vmul.f32 %v1036_v20, %v8924_v62  ;;  %v1060_v57 = vmul.f32 %v1040_v2, %v8924_v62  ;;  %v1094_v12 = vsel %vm412_vm4, %v8926_v29, %v8925_v59  ;;  %v1095_v52 = vsel %vm412_vm4, %v8927_v22, %v8926_v29  ;;  %v5805_v60 = vpop.permute.xlu1 %1608  ;;  %v8930_v20 = vld [vmem:[#allocation122_spill] sm:$0xff] }
 0x200   :  { %8928 = vst [vmem:[#allocation55_spill] sm:$0xff] %v5805_v60  ;;  %v1061_v40 = vmul.f32 %v1044_v21, %v8924_v62  ;;  %v1062_v13 = vmul.f32 %v1048_v34, %v8924_v62  ;;  %v1092_v44 = vsel %vm412_vm4, %v8930_v20, %v8929_v48  ;;  %v1093_v2 = vsel %vm412_vm4, %v8925_v59, %v8930_v20 }
 0x201   :  { %2189 = vrot.lane.b32.xlu1 %v4919_v11, %s4056_s1  ;;  %v993_v29 = vadd.f32 %v985_v51, %v5695_v23  ;;  %v994_v46 = vadd.f32 %v986_v39, %v5697_v47  ;;  %v1063_v21 = vmul.f32 %v1052_v10, %v8924_v62  ;;  %v1064_v34 = vmul.f32 %v1056_v9, %v8924_v62  ;;  %v5823_v45 = vpop.permute.xlu0 %1978  ;;  %v8944_v62 = vld [vmem:[#allocation140_spill] sm:$0xff] }
 0x202   :  { %v995_v17 = vadd.f32 %v987_v1, %v5701_v63  ;;  %v996_v60 = vadd.f32 %v988_v31, %v5703_v32  ;;  %v1104_v27 = vrot.slane %v1095_v52, %v4123_v8  ;;  %v1108_v59 = vrot.slane %v1094_v12, %v4123_v8  ;;  %v8931_v12 = vld [vmem:[#allocation101_spill] sm:$0xff]  ;;  %v8932_v52 = vld [vmem:[#allocation124_spill] sm:$0xff] }
 0x203   :  { %2619 = vrot.lane.b32.xlu0 %v4869_v35, %s4069_s25  ;;  %v1065_v23 = vadd.f32 %v1057_v5, %v989_v4  ;;  %v1066_v51 = vadd.f32 %v1058_v37, %v990_v56  ;;  %v1112_v47 = vrot.slane %v1093_v2, %v4123_v8  ;;  %v1116_v39 = vrot.slane %v1092_v44, %v4123_v8  ;;  %v5833_v10 = vpop.permute.xlu1 %1670  ;;  %v8935_v37 = vld [vmem:[#allocation126_spill] sm:$0xff] }
 0x204   :  { %v1067_v9 = vadd.f32 %v1059_v38, %v991_v19  ;;  %v1068_v20 = vadd.f32 %v1060_v57, %v992_v28  ;;  %v1069_v63 = vadd.f32 %v1061_v40, %v993_v29  ;;  %v1070_v1 = vadd.f32 %v1062_v13, %v994_v46  ;;  %v8934_v28 = vld [vmem:[#allocation103_spill] sm:$0xff]  ;;  %v8937_v40 = vld [vmem:[#allocation130_spill] sm:$0xff] }
 0x205   :  { %2193 = vrot.lane.b32.xlu1 %v4929_v24, %s4056_s1  ;;  %v1071_v32 = vadd.f32 %v1063_v21, %v995_v17  ;;  %v1072_v31 = vadd.f32 %v1064_v34, %v996_v60  ;;  %v1090_v4 = vsel %vm412_vm4, %v8932_v52, %v8931_v12  ;;  %v1091_v56 = vsel %vm412_vm4, %v8929_v48, %v8932_v52  ;;  %v5845_v5 = vpop.permute.xlu0 %1982  ;;  %v8938_v48 = vld [vmem:[#allocation128_spill] sm:$0xff]  ;;  %v8939_v21 = vld [vmem:[#allocation107_spill] sm:$0xff]  ;;  %v8940_v34 = vld [vmem:[#allocation133_spill] sm:$0xff] }
 0x206   :  { %8933 = vst [vmem:[#allocation65_spill] sm:$0xff] %v5845_v5  ;;  %v1133_v19 = vmul.f32 %v1104_v27, %v8934_v28  ;;  %v1134_v46 = vmul.f32 %v1108_v59, %v8934_v28  ;;  %v1089_v17 = vsel %vm412_vm4, %v8931_v12, %v8935_v37  ;;  %v1096_v38 = vsel %vm412_vm4, %v8935_v37, %v8927_v22  ;;  %v8936_v27 = vld [vmem:[#allocation105_spill] sm:$0xff] }
 0x207   :  { %2623 = vrot.lane.b32.xlu0 %v4883_v6, %s4069_s25  ;;  %v1135_v57 = vmul.f32 %v1112_v47, %v8934_v28  ;;  %v1136_v60 = vmul.f32 %v1116_v39, %v8934_v28  ;;  %v1170_v13 = vsel %vm489_vm5, %v8937_v40, %v8936_v27  ;;  %v1171_v44 = vsel %vm489_vm5, %v8938_v48, %v8937_v40  ;;  %v5869_v2 = vpop.permute.xlu1 %1672  ;;  %v8941_v52 = vld [vmem:[#allocation109_spill] sm:$0xff] }
 0x208   :  { %v1120_v22 = vrot.slane %v1091_v56, %v4123_v8  ;;  %v1124_v29 = vrot.slane %v1090_v4, %v4123_v8  ;;  %v1168_v59 = vsel %vm489_vm5, %v8940_v34, %v8939_v21  ;;  %v1169_v47 = vsel %vm489_vm5, %v8936_v27, %v8940_v34  ;;  %v8942_v56 = vld [vmem:[#allocation136_spill] sm:$0xff] }
 0x209   :  { %2197 = vrot.lane.b32.xlu1 %v4932_v55, %s4056_s1  ;;  %v1128_v39 = vrot.slane %v1089_v17, %v4123_v8  ;;  %v1132_v12 = vrot.slane %v1096_v38, %v4123_v8  ;;  %v1166_v4 = vsel %vm489_vm5, %v8942_v56, %v8941_v52  ;;  %v1167_v37 = vsel %vm489_vm5, %v8939_v21, %v8942_v56  ;;  %v5893_v40 = vpop.permute.xlu0 %1986 }
 0x20a   :  { %8943 = vst [vmem:[#allocation63_spill] sm:$0xff] %v5893_v40  ;;  %v1180_v27 = vrot.slane %v1171_v44, %v4123_v8  ;;  %v1184_v34 = vrot.slane %v1170_v13, %v4123_v8  ;;  %v1165_v17 = vsel %vm489_vm5, %v8941_v52, %v8944_v62  ;;  %v1172_v38 = vsel %vm489_vm5, %v8944_v62, %v8938_v48 }
 0x20b   :  { %2627 = vrot.lane.b32.xlu0 %v4899_v30, %s4069_s25  ;;  %v1141_v21 = vadd.f32 %v1133_v19, %v1065_v23  ;;  %v1142_v56 = vadd.f32 %v1134_v46, %v1066_v51  ;;  %v1188_v6 = vrot.slane %v1169_v47, %v4123_v8  ;;  %v1192_v44 = vrot.slane %v1168_v59, %v4123_v8  ;;  %v5909_v13 = vpop.permute.xlu1 %1676 }
 0x20c   :  { %v1137_v35 = vmul.f32 %v1120_v22, %v8934_v28  ;;  %v1138_v52 = vmul.f32 %v1124_v29, %v8934_v28  ;;  %v1196_v40 = vrot.slane %v1167_v37, %v4123_v8  ;;  %v1200_v5 = vrot.slane %v1166_v4, %v4123_v8  ;;  %v8946_v29 = vld [vmem:[#allocation111_spill] sm:$0xff] }
 0x20d   :  { %2257 = vrot.lane.b32.xlu1 %v4916_v42, %s4059_s20  ;;  %v1139_v62 = vmul.f32 %v1128_v39, %v8934_v28  ;;  %v1140_v23 = vmul.f32 %v1132_v12, %v8934_v28  ;;  %v1204_v51 = vrot.slane %v1165_v17, %v4123_v8  ;;  %v1208_v19 = vrot.slane %v1172_v38, %v4123_v8  ;;  %v5921_v46 = vpop.permute.xlu0 %1999  ;;  %v8947_v12 = vld [vmem:[#allocation113_spill] sm:$0xff]  ;;  %v8948_v17 = vld [vmem:[#allocation142_spill] sm:$0xff] }
 0x20e   :  { %8945 = vst [vmem:[#allocation57_spill] sm:$0xff] %v5921_v46  ;;  %v1143_v48 = vadd.f32 %v1135_v57, %v1067_v9  ;;  %v1144_v22 = vadd.f32 %v1136_v60, %v1068_v20  ;;  %v1209_v59 = vmul.f32 %v1180_v27, %v8946_v29  ;;  %v1210_v47 = vmul.f32 %v1184_v34, %v8946_v29 }
 0x20f   :  { %2748 = vrot.lane.b32.xlu0 %v5140_v7, %s4054_s2  ;;  %v1211_v4 = vmul.f32 %v1188_v6, %v8946_v29  ;;  %v1212_v39 = vmul.f32 %v1192_v44, %v8946_v29  ;;  %v1246_v37 = vsel %vm566_vm6, %v5014_v14, %v8947_v12  ;;  %v1247_v9 = vsel %vm566_vm6, %v8948_v17, %v5014_v14  ;;  %v5937_v20 = vpop.permute.xlu1 %1680 }
 0x210   :  { %v1145_v57 = vadd.f32 %v1137_v35, %v1069_v63  ;;  %v1146_v60 = vadd.f32 %v1138_v52, %v1070_v1  ;;  %v1213_v27 = vmul.f32 %v1196_v40, %v8946_v29  ;;  %v1214_v6 = vmul.f32 %v1200_v5, %v8946_v29  ;;  %v8949_v40 = vld [vmem:[#allocation115_spill] sm:$0xff] }
 0x211   :  { %2261 = vrot.lane.b32.xlu1 %v4919_v11, %s4059_s20  ;;  %v1147_v34 = vadd.f32 %v1139_v62, %v1071_v32  ;;  %v1148_v38 = vadd.f32 %v1140_v23, %v1072_v31  ;;  %v1215_v44 = vmul.f32 %v1204_v51, %v8946_v29  ;;  %v1216_v28 = vmul.f32 %v1208_v19, %v8946_v29  ;;  %v5945_v30 = vpop.permute.xlu0 %2115  ;;  %v8950_v62 = vld [vmem:[#allocation117_spill] sm:$0xff] }
 0x212   :  { %v1217_v14 = vadd.f32 %v1209_v59, %v1141_v21  ;;  %v1218_v46 = vadd.f32 %v1210_v47, %v1142_v56  ;;  %v1256_v35 = vrot.slane %v1247_v9, %v4123_v8  ;;  %v1260_v63 = vrot.slane %v1246_v37, %v4123_v8  ;;  %v8951_v47 = vld [vmem:[#allocation119_spill] sm:$0xff]  ;;  %v8952_v9 = vld [vmem:[#allocation121_spill] sm:$0xff] }
 0x213   :  { %2752 = vrot.lane.b32.xlu0 %v5144_v25, %s4054_s2  ;;  %v1219_v1 = vadd.f32 %v1211_v4, %v1143_v48  ;;  %v1220_v5 = vadd.f32 %v1212_v39, %v1144_v22  ;;  %v1244_v32 = vsel %vm566_vm6, %v5050_v18, %v8949_v40  ;;  %v1245_v31 = vsel %vm566_vm6, %v8947_v12, %v5050_v18  ;;  %v5959_v21 = vpop.permute.xlu1 %1684 }
 0x214   :  { %v1221_v56 = vadd.f32 %v1213_v27, %v1145_v57  ;;  %v1222_v52 = vadd.f32 %v1214_v6, %v1146_v60  ;;  %v1242_v23 = vsel %vm566_vm6, %v5074_v49, %v8950_v62  ;;  %v1243_v51 = vsel %vm566_vm6, %v8949_v40, %v5074_v49  ;;  %v8953_v6 = vld [vmem:[#allocation123_spill] sm:$0xff] }
 0x215   :  { %2265 = vrot.lane.b32.xlu1 %v4929_v24, %s4059_s20  ;;  %v1223_v19 = vadd.f32 %v1215_v44, %v1147_v34  ;;  %v1224_v48 = vadd.f32 %v1216_v28, %v1148_v38  ;;  %v1241_v18 = vsel %vm566_vm6, %v8950_v62, %v5114_v3  ;;  %v1248_v22 = vsel %vm566_vm6, %v5114_v3, %v8948_v17  ;;  %v5979_v59 = vpop.permute.xlu0 %2119 }
 0x216   :  { %v1285_v4 = vmul.f32 %v1256_v35, %v8951_v47  ;;  %v1286_v49 = vmul.f32 %v1260_v63, %v8951_v47  ;;  %v1264_v39 = vrot.slane %v1245_v31, %v4123_v8  ;;  %v1268_v28 = vrot.slane %v1244_v32, %v4123_v8 }
 0x217   :  { %2756 = vrot.lane.b32.xlu0 %v5148_v50, %s4054_s2  ;;  %v1272_v12 = vrot.slane %v1243_v51, %v4123_v8  ;;  %v1276_v37 = vrot.slane %v1242_v23, %v4123_v8  ;;  %v1322_v3 = vsel %vm643_vm7, %v5206_v54, %v8952_v9  ;;  %v1323_v17 = vsel %vm643_vm7, %v5158_v43, %v5206_v54  ;;  %v5997_v57 = vpop.permute.xlu1 %1746  ;;  %v8954_v54 = vld [vmem:[#allocation125_spill] sm:$0xff] }
 0x218   :  { %v1280_v60 = vrot.slane %v1241_v18, %v4123_v8  ;;  %v1284_v27 = vrot.slane %v1248_v22, %v4123_v8  ;;  %v1320_v34 = vsel %vm643_vm7, %v5225_v53, %v8953_v6  ;;  %v1321_v38 = vsel %vm643_vm7, %v8952_v9, %v5225_v53  ;;  %v8955_v23 = vld [vmem:[#allocation149_spill] sm:$0xff] }
 0x219   :  { %2269 = vrot.lane.b32.xlu1 %v4932_v55, %s4059_s20  ;;  %v1318_v44 = vsel %vm643_vm7, %v5262_v16, %v8954_v54  ;;  %v1319_v35 = vsel %vm643_vm7, %v8953_v6, %v5262_v16  ;;  %v1317_v63 = vsel %vm643_vm7, %v8954_v54, %v5304_v41  ;;  %v1324_v53 = vsel %vm643_vm7, %v5304_v41, %v5158_v43  ;;  %v6027_v40 = vpop.permute.xlu0 %2123 }
 0x21a   :  { %v1287_v32 = vmul.f32 %v1264_v39, %v8951_v47  ;;  %v1288_v31 = vmul.f32 %v1268_v28, %v8951_v47  ;;  %v1332_v62 = vrot.slane %v1323_v17, %v4123_v8  ;;  %v1336_v16 = vrot.slane %v1322_v3, %v4123_v8 }
 0x21b   :  { %2760 = vrot.lane.b32.xlu0 %v8955_v23, %s4054_s2  ;;  %v1289_v51 = vmul.f32 %v1272_v12, %v8951_v47  ;;  %v1290_v18 = vmul.f32 %v1276_v37, %v8951_v47  ;;  %v1340_v22 = vrot.slane %v1321_v38, %v4123_v8  ;;  %v1344_v43 = vrot.slane %v1320_v34, %v4123_v8  ;;  %v6039_v41 = vpop.permute.xlu1 %1748 }
 0x21c   :  { %v1348_v39 = vrot.slane %v1319_v35, %v4123_v8  ;;  %v1352_v28 = vrot.slane %v1318_v44, %v4123_v8  ;;  %v1356_v9 = vrot.slane %v1317_v63, %v4123_v8  ;;  %v1360_v3 = vrot.slane %v1324_v53, %v4123_v8  ;;  %v8957_v35 = vld [vmem:[#allocation127_spill] sm:$0xff] }
 0x21d   :  { %2329 = vrot.lane.b32.xlu1 %v4916_v42, %s4061_s21  ;;  %v1293_v12 = vadd.f32 %v1285_v4, %v1217_v14  ;;  %v1294_v17 = vadd.f32 %v1286_v49, %v1218_v46  ;;  %v1291_v37 = vmul.f32 %v1280_v60, %v8951_v47  ;;  %v1292_v6 = vmul.f32 %v1284_v27, %v8951_v47  ;;  %v6049_v34 = vpop.permute.xlu0 %2183 }
 0x21e   :  { %8956 = vst [vmem:[#allocation68_spill] sm:$0xff] %v6049_v34  ;;  %v1295_v38 = vadd.f32 %v1287_v32, %v1219_v1  ;;  %v1296_v54 = vadd.f32 %v1288_v31, %v1220_v5  ;;  %v1361_v29 = vmul.f32 %v1332_v62, %v8957_v35  ;;  %v1362_v44 = vmul.f32 %v1336_v16, %v8957_v35 }
 0x21f   :  { %2820 = vrot.lane.b32.xlu0 %v5140_v7, %s4056_s1  ;;  %v1297_v63 = vadd.f32 %v1289_v51, %v1221_v56  ;;  %v1298_v53 = vadd.f32 %v1290_v18, %v1222_v52  ;;  %v1363_v14 = vmul.f32 %v1340_v22, %v8957_v35  ;;  %v1364_v46 = vmul.f32 %v1344_v43, %v8957_v35  ;;  %v6057_v4 = vpop.permute.xlu1 %1752  ;;  %v8958_v52 = vld [vmem:[#allocation22_spill] sm:$0xff]  ;;  %v8960_v18 = vld [vmem:[#allocation72_spill] sm:$0xff] }
 0x220   :  { %v1365_v49 = vmul.f32 %v1348_v39, %v8957_v35  ;;  %v1366_v1 = vmul.f32 %v1352_v28, %v8957_v35  ;;  %v1367_v5 = vmul.f32 %v1356_v9, %v8957_v35  ;;  %v1368_v60 = vmul.f32 %v1360_v3, %v8957_v35 }
 0x221   :  { %2333 = vrot.lane.b32.xlu1 %v4919_v11, %s4061_s21  ;;  %v1299_v27 = vadd.f32 %v1291_v37, %v1223_v19  ;;  %v1300_v56 = vadd.f32 %v1292_v6, %v1224_v48  ;;  %v1426_v32 = vmul.f32 %v4628_v26, %v8958_v52  ;;  %v1427_v31 = vmul.f32 %v4584_v36, %v8958_v52  ;;  %v6069_v62 = vpop.permute.xlu0 %2187  ;;  %v8961_v26 = vld [vmem:[#allocation75_spill] sm:$0xff]  ;;  %v8962_v37 = vld [vmem:[#allocation78_spill] sm:$0xff] }
 0x222   :  { %8959 = vst [vmem:[#allocation59_spill] sm:$0xff] %v6069_v62  ;;  %v1369_v16 = vadd.f32 %v1361_v29, %v1293_v12  ;;  %v1370_v51 = vadd.f32 %v1362_v44, %v1294_v17  ;;  %v1428_v22 = vmul.f32 %v8960_v18, %v8958_v52  ;;  %v1429_v43 = vmul.f32 %v4595_v58, %v8958_v52  ;;  %v8965_v44 = vld [vmem:[#allocation26_spill] sm:$0xff] }
 0x223   :  { %2824 = vrot.lane.b32.xlu0 %v5144_v25, %s4056_s1  ;;  %v1371_v19 = vadd.f32 %v1363_v14, %v1295_v38  ;;  %v1372_v48 = vadd.f32 %v1364_v46, %v1296_v54  ;;  %v1430_v39 = vmul.f32 %v8961_v26, %v8958_v52  ;;  %v1431_v36 = vmul.f32 %v4606_v33, %v8958_v52  ;;  %v6081_v28 = vpop.permute.xlu1 %1756  ;;  %v8964_v33 = vld [vmem:[#allocation129_spill] sm:$0xff]  ;;  %v8971_v18 = vld [vmem:[#allocation34_spill] sm:$0xff] }
 0x224   :  { %v1373_v29 = vadd.f32 %v1365_v49, %v1297_v63  ;;  %v1374_v9 = vadd.f32 %v1366_v1, %v1298_v53  ;;  %v1375_v3 = vadd.f32 %v1367_v5, %v1299_v27  ;;  %v1376_v12 = vadd.f32 %v1368_v60, %v1300_v56  ;;  %v8966_v53 = vld [vmem:[#allocation138_spill] sm:$0xff]  ;;  %v8967_v1 = vld [vmem:[#allocation36_spill] sm:$0xff]  ;;  %v8968_v5 = vld [vmem:[#allocation35_spill] sm:$0xff] }
 0x225   :  { %2337 = vrot.lane.b32.xlu1 %v4929_v24, %s4061_s21  ;;  %v1434_v58 = vadd.f32 %v1426_v32, %v1369_v16  ;;  %v1435_v17 = vadd.f32 %v1427_v31, %v1370_v51  ;;  %v1432_v6 = vmul.f32 %v8962_v37, %v8958_v52  ;;  %v1433_v38 = vmul.f32 %v4615_v0, %v8958_v52  ;;  %v6089_v54 = vpop.permute.xlu0 %2191  ;;  %v8969_v60 = vld [vmem:[#allocation135_spill] sm:$0xff]  ;;  %v8970_v16 = vld [vmem:[#allocation132_spill] sm:$0xff] }
 0x226   :  { %8963 = vst [vmem:[#allocation70_spill] sm:$0xff] %v6089_v54  ;;  %v1464_v63 = vsel %vm104_vm0, %v8965_v44, %v8964_v33  ;;  %v1465_v14 = vsel %vm104_vm0, %v8966_v53, %v8965_v44  ;;  %v1436_v46 = vadd.f32 %v1428_v22, %v1371_v19  ;;  %v1437_v49 = vadd.f32 %v1429_v43, %v1372_v48  ;;  %v8974_v44 = vld [vmem:[#allocation44_spill] sm:$0xff] }
 0x227   :  { %2828 = vrot.lane.b32.xlu0 %v5148_v50, %s4056_s1  ;;  %v1463_v0 = vsel %vm104_vm0, %v8964_v33, %v8967_v1  ;;  %v1459_v27 = vsel %vm104_vm0, %v8969_v60, %v8968_v5  ;;  %v1438_v56 = vadd.f32 %v1430_v39, %v1373_v29  ;;  %v1439_v32 = vadd.f32 %v1431_v36, %v1374_v9  ;;  %v6109_v31 = vpop.permute.xlu1 %1760  ;;  %v8973_v33 = vld [vmem:[#allocation143_spill] sm:$0xff] }
 0x228   :  { %v1462_v51 = vsel %vm104_vm0, %v8967_v1, %v8970_v16  ;;  %v1460_v22 = vsel %vm104_vm0, %v8971_v18, %v8969_v60  ;;  %v1461_v43 = vsel %vm104_vm0, %v8970_v16, %v8971_v18  ;;  %v1458_v19 = vsel %vm104_vm0, %v8968_v5, %v8966_v53  ;;  %v8975_v1 = vld [vmem:[#allocation141_spill] sm:$0xff] }
 0x229   :  { %2341 = vrot.lane.b32.xlu1 %v4932_v55, %s4061_s21  ;;  %v1473_v48 = vrot.slane %v1464_v63, %v4123_v8  ;;  %v1501_v26 = vrot.slane %v1465_v14, %v4123_v8  ;;  %v1440_v39 = vadd.f32 %v1432_v6, %v1375_v3  ;;  %v1441_v36 = vadd.f32 %v1433_v38, %v1376_v12  ;;  %v6131_v29 = vpop.permute.xlu0 %2195  ;;  %v8978_v16 = vld [vmem:[#allocation41_spill] sm:$0xff] }
 0x22a   :  { %8972 = vst [vmem:[#allocation74_spill] sm:$0xff] %v6131_v29  ;;  %v1477_v9 = vrot.slane %v1463_v0, %v4123_v8  ;;  %v1493_v37 = vrot.slane %v1459_v27, %v4123_v8  ;;  %v1539_v53 = vsel %vm181_vm1, %v8974_v44, %v8973_v33  ;;  %v1540_v63 = vsel %vm181_vm1, %v8975_v1, %v8974_v44  ;;  %v8976_v0 = vld [vmem:[#allocation40_spill] sm:$0xff]  ;;  %v8982_v29 = vld [vmem:[#allocation50_spill] sm:$0xff] }
 0x22b   :  { %2832 = vrot.lane.b32.xlu0 %v8955_v23, %s4056_s1  ;;  %v1481_v3 = vrot.slane %v1462_v51, %v4123_v8  ;;  %v1485_v12 = vrot.slane %v1461_v43, %v4123_v8  ;;  %v1489_v6 = vrot.slane %v1460_v22, %v4123_v8  ;;  %v1497_v38 = vrot.slane %v1458_v19, %v4123_v8  ;;  %v6149_v14 = vpop.permute.xlu1 %1822  ;;  %v8977_v27 = vld [vmem:[#allocation144_spill] sm:$0xff]  ;;  %v8979_v19 = vld [vmem:[#allocation145_spill] sm:$0xff] }
 0x22c   :  { %v1502_v5 = vmul.f32 %v1473_v48, %v8976_v0  ;;  %v1503_v60 = vmul.f32 %v1477_v9, %v8976_v0  ;;  %v1537_v18 = vsel %vm181_vm1, %v8978_v16, %v8977_v27  ;;  %v1538_v51 = vsel %vm181_vm1, %v8973_v33, %v8978_v16  ;;  %v8980_v48 = vld [vmem:[#allocation43_spill] sm:$0xff] }
 0x22d   :  { %2401 = vrot.lane.b32.xlu1 %v4916_v42, %s4063_s22  ;;  %v1549_v22 = vrot.slane %v1540_v63, %v4123_v8  ;;  %v1553_v43 = vrot.slane %v1539_v53, %v4123_v8  ;;  %v1535_v9 = vsel %vm181_vm1, %v8980_v48, %v8979_v19  ;;  %v1536_v44 = vsel %vm181_vm1, %v8977_v27, %v8980_v48  ;;  %v6173_v52 = vpop.permute.xlu0 %2255 }
 0x22e   :  { %8981 = vst [vmem:[#allocation16_spill] sm:$0xff] %v6173_v52  ;;  %v1504_v33 = vmul.f32 %v1481_v3, %v8976_v0  ;;  %v1505_v16 = vmul.f32 %v1485_v12, %v8976_v0  ;;  %v1506_v63 = vmul.f32 %v1489_v6, %v8976_v0  ;;  %v1507_v53 = vmul.f32 %v1493_v37, %v8976_v0  ;;  %v8983_v52 = vld [vmem:[#allocation146_spill] sm:$0xff] }
 0x22f   :  { %2892 = vrot.lane.b32.xlu0 %v5140_v7, %s4059_s20  ;;  %v1557_v35 = vrot.slane %v1538_v51, %v4123_v8  ;;  %v1561_v47 = vrot.slane %v1537_v18, %v4123_v8  ;;  %v1534_v27 = vsel %vm181_vm1, %v8979_v19, %v8982_v29  ;;  %v1541_v3 = vsel %vm181_vm1, %v8982_v29, %v8975_v1  ;;  %v6191_v12 = vpop.permute.xlu1 %1824 }
 0x230   :  { %v1565_v37 = vrot.slane %v1536_v44, %v4123_v8  ;;  %v1569_v6 = vrot.slane %v1535_v9, %v4123_v8  ;;  %v1508_v51 = vmul.f32 %v1497_v38, %v8976_v0  ;;  %v1509_v18 = vmul.f32 %v1501_v26, %v8976_v0 }
 0x231   :  { %2405 = vrot.lane.b32.xlu1 %v4919_v11, %s4063_s22  ;;  %v1510_v48 = vadd.f32 %v1502_v5, %v1434_v58  ;;  %v1511_v19 = vadd.f32 %v1503_v60, %v1435_v17  ;;  %v1578_v54 = vmul.f32 %v1549_v22, %v8983_v52  ;;  %v1579_v34 = vmul.f32 %v1553_v43, %v8983_v52  ;;  %v6201_v29 = vpop.permute.xlu0 %2259  ;;  %v8985_v43 = vld [vmem:[#allocation54_spill] sm:$0xff] }
 0x232   :  { %v1512_v1 = vadd.f32 %v1504_v33, %v1436_v46  ;;  %v1513_v62 = vadd.f32 %v1505_v16, %v1437_v49  ;;  %v1573_v44 = vrot.slane %v1534_v27, %v4123_v8  ;;  %v1577_v9 = vrot.slane %v1541_v3, %v4123_v8  ;;  %v8984_v49 = vld [vmem:[#allocation148_spill] sm:$0xff]  ;;  %v8986_v27 = vld [vmem:[#allocation27_spill] sm:$0xff] }
 0x233   :  { %2896 = vrot.lane.b32.xlu0 %v5144_v25, %s4059_s20  ;;  %v1580_v26 = vmul.f32 %v1557_v35, %v8983_v52  ;;  %v1581_v58 = vmul.f32 %v1561_v47, %v8983_v52  ;;  %v1514_v17 = vadd.f32 %v1506_v63, %v1438_v56  ;;  %v1515_v38 = vadd.f32 %v1507_v53, %v1439_v32  ;;  %v6209_v5 = vpop.permute.xlu1 %1828  ;;  %v8987_v3 = vld [vmem:[#allocation56_spill] sm:$0xff] }
 0x234   :  { %v1582_v60 = vmul.f32 %v1565_v37, %v8983_v52  ;;  %v1583_v46 = vmul.f32 %v1569_v6, %v8983_v52  ;;  %v1615_v22 = vsel %vm258_vm2, %v5693_v15, %v8984_v49  ;;  %v1616_v35 = vsel %vm258_vm2, %v8985_v43, %v5693_v15 }
 0x235   :  { %2409 = vrot.lane.b32.xlu1 %v4929_v24, %s4063_s22  ;;  %v1586_v47 = vadd.f32 %v1578_v54, %v1510_v48  ;;  %v1587_v56 = vadd.f32 %v1579_v34, %v1511_v19  ;;  %v1516_v32 = vadd.f32 %v1508_v51, %v1440_v39  ;;  %v1517_v33 = vadd.f32 %v1509_v18, %v1441_v36  ;;  %v6223_v16 = vpop.permute.xlu0 %2263  ;;  %v8988_v39 = vld [vmem:[#allocation28_spill] sm:$0xff]  ;;  %v8989_v36 = vld [vmem:[#allocation58_spill] sm:$0xff] }
 0x236   :  { %v1584_v63 = vmul.f32 %v1573_v44, %v8983_v52  ;;  %v1585_v53 = vmul.f32 %v1577_v9, %v8983_v52  ;;  %v1613_v37 = vsel %vm258_vm2, %v8987_v3, %v8986_v27  ;;  %v1614_v15 = vsel %vm258_vm2, %v8984_v49, %v8987_v3  ;;  %v8996_v52 = vld [vmem:[#allocation33_spill] sm:$0xff] }
 0x237   :  { %2900 = vrot.lane.b32.xlu0 %v5148_v50, %s4059_s20  ;;  %v1625_v34 = vrot.slane %v1616_v35, %v4123_v8  ;;  %v1629_v54 = vrot.slane %v1615_v22, %v4123_v8  ;;  %v1611_v6 = vsel %vm258_vm2, %v8989_v36, %v8988_v39  ;;  %v1612_v51 = vsel %vm258_vm2, %v8986_v27, %v8989_v36  ;;  %v6247_v18 = vpop.permute.xlu1 %1832  ;;  %v8990_v35 = vld [vmem:[#allocation55_spill] sm:$0xff]  ;;  %v8992_v27 = vld [vmem:[#allocation25_spill] sm:$0xff] }
 0x238   :  { %v1588_v48 = vadd.f32 %v1580_v26, %v1512_v1  ;;  %v1589_v19 = vadd.f32 %v1581_v58, %v1513_v62  ;;  %v1590_v44 = vadd.f32 %v1582_v60, %v1514_v17  ;;  %v1591_v9 = vadd.f32 %v1583_v46, %v1515_v38  ;;  %v8991_v17 = vld [vmem:[#allocation23_spill] sm:$0xff] }
 0x239   :  { %2413 = vrot.lane.b32.xlu1 %v4932_v55, %s4063_s22  ;;  %v1633_v49 = vrot.slane %v1614_v15, %v4123_v8  ;;  %v1637_v22 = vrot.slane %v1613_v37, %v4123_v8  ;;  %v1610_v3 = vsel %vm258_vm2, %v8988_v39, %v8990_v35  ;;  %v1617_v1 = vsel %vm258_vm2, %v8990_v35, %v8985_v43  ;;  %v6261_v62 = vpop.permute.xlu0 %2267 }
 0x23a   :  { %v1641_v26 = vrot.slane %v1612_v51, %v4123_v8  ;;  %v1645_v58 = vrot.slane %v1611_v6, %v4123_v8  ;;  %v1691_v38 = vsel %vm335_vm3, %v5869_v2, %v8991_v17  ;;  %v1692_v60 = vsel %vm335_vm3, %v5833_v10, %v5869_v2  ;;  %v8993_v51 = vld [vmem:[#allocation24_spill] sm:$0xff] }
 0x23b   :  { %2904 = vrot.lane.b32.xlu0 %v8955_v23, %s4059_s20  ;;  %v1592_v46 = vadd.f32 %v1584_v63, %v1516_v32  ;;  %v1593_v43 = vadd.f32 %v1585_v53, %v1517_v33  ;;  %v1654_v37 = vmul.f32 %v1625_v34, %v8992_v27  ;;  %v1655_v15 = vmul.f32 %v1629_v54, %v8992_v27  ;;  %v6277_v39 = vpop.permute.xlu1 %1836  ;;  %v8994_v53 = vld [vmem:[#allocation30_spill] sm:$0xff] }
 0x23c   :  { %v1649_v36 = vrot.slane %v1610_v3, %v4123_v8  ;;  %v1653_v6 = vrot.slane %v1617_v1, %v4123_v8  ;;  %v1689_v2 = vsel %vm335_vm3, %v5909_v13, %v8993_v51  ;;  %v1690_v32 = vsel %vm335_vm3, %v8991_v17, %v5909_v13 }
 0x23d   :  { %2473 = vrot.lane.b32.xlu1 %v4916_v42, %s4065_s23  ;;  %v1701_v33 = vrot.slane %v1692_v60, %v4123_v8  ;;  %v1705_v63 = vrot.slane %v1691_v38, %v4123_v8  ;;  %v1687_v34 = vsel %vm335_vm3, %v5937_v20, %v8994_v53  ;;  %v1688_v54 = vsel %vm335_vm3, %v8993_v51, %v5937_v20  ;;  %v6301_v35 = vpop.permute.xlu0 %2327 }
 0x23e   :  { %8995 = vst [vmem:[#allocation11_spill] sm:$0xff] %v6301_v35  ;;  %v1656_v13 = vmul.f32 %v1633_v49, %v8992_v27  ;;  %v1657_v3 = vmul.f32 %v1637_v22, %v8992_v27  ;;  %v1658_v1 = vmul.f32 %v1641_v26, %v8992_v27  ;;  %v1659_v17 = vmul.f32 %v1645_v58, %v8992_v27 }
 0x23f   :  { %2964 = vrot.lane.b32.xlu0 %v5140_v7, %s4061_s21  ;;  %v1709_v38 = vrot.slane %v1690_v32, %v4123_v8  ;;  %v1713_v60 = vrot.slane %v1689_v2, %v4123_v8  ;;  %v1686_v20 = vsel %vm335_vm3, %v8994_v53, %v5959_v21  ;;  %v1693_v49 = vsel %vm335_vm3, %v5959_v21, %v5833_v10  ;;  %v6319_v22 = vpop.permute.xlu1 %1898 }
 0x240   :  { %v1662_v26 = vadd.f32 %v1654_v37, %v1586_v47  ;;  %v1663_v58 = vadd.f32 %v1655_v15, %v1587_v56  ;;  %v1717_v51 = vrot.slane %v1688_v54, %v4123_v8  ;;  %v1721_v32 = vrot.slane %v1687_v34, %v4123_v8 }
 0x241   :  { %2477 = vrot.lane.b32.xlu1 %v4919_v11, %s4065_s23  ;;  %v1660_v2 = vmul.f32 %v1649_v36, %v8992_v27  ;;  %v1661_v53 = vmul.f32 %v1653_v6, %v8992_v27  ;;  %v1730_v0 = vmul.f32 %v1701_v33, %v8996_v52  ;;  %v1731_v35 = vmul.f32 %v1705_v63, %v8996_v52  ;;  %v6329_v10 = vpop.permute.xlu0 %2331 }
 0x242   :  { %v1664_v21 = vadd.f32 %v1656_v13, %v1588_v48  ;;  %v1665_v47 = vadd.f32 %v1657_v3, %v1589_v19  ;;  %v1725_v56 = vrot.slane %v1686_v20, %v4123_v8  ;;  %v1729_v37 = vrot.slane %v1693_v49, %v4123_v8  ;;  %v8997_v19 = vld [vmem:[#allocation31_spill] sm:$0xff]  ;;  %v8998_v20 = vld [vmem:[#allocation32_spill] sm:$0xff] }
 0x243   :  { %2968 = vrot.lane.b32.xlu0 %v5144_v25, %s4061_s21  ;;  %v1666_v15 = vadd.f32 %v1658_v1, %v1590_v44  ;;  %v1667_v34 = vadd.f32 %v1659_v17, %v1591_v9  ;;  %v1732_v36 = vmul.f32 %v1709_v38, %v8996_v52  ;;  %v1733_v6 = vmul.f32 %v1713_v60, %v8996_v52  ;;  %v6337_v33 = vpop.permute.xlu1 %1900 }
 0x244   :  { %v1734_v63 = vmul.f32 %v1717_v51, %v8996_v52  ;;  %v1735_v48 = vmul.f32 %v1721_v32, %v8996_v52  ;;  %v1767_v54 = vsel %vm412_vm4, %v6039_v41, %v8997_v19  ;;  %v1768_v44 = vsel %vm412_vm4, %v5997_v57, %v6039_v41 }
 0x245   :  { %2481 = vrot.lane.b32.xlu1 %v4929_v24, %s4065_s23  ;;  %v1668_v9 = vadd.f32 %v1660_v2, %v1592_v46  ;;  %v1669_v13 = vadd.f32 %v1661_v53, %v1593_v43  ;;  %v1738_v3 = vadd.f32 %v1730_v0, %v1662_v26  ;;  %v1739_v1 = vadd.f32 %v1731_v35, %v1663_v58  ;;  %v6351_v17 = vpop.permute.xlu0 %2335  ;;  %v8999_v43 = vld [vmem:[#allocation38_spill] sm:$0xff] }
 0x246   :  { %v1736_v38 = vmul.f32 %v1725_v56, %v8996_v52  ;;  %v1737_v60 = vmul.f32 %v1729_v37, %v8996_v52  ;;  %v1765_v49 = vsel %vm412_vm4, %v6057_v4, %v8998_v20  ;;  %v1766_v41 = vsel %vm412_vm4, %v8997_v19, %v6057_v4  ;;  %v9000_v37 = vld [vmem:[#allocation42_spill] sm:$0xff] }
 0x247   :  { %2972 = vrot.lane.b32.xlu0 %v5148_v50, %s4061_s21  ;;  %v1777_v0 = vrot.slane %v1768_v44, %v4123_v8  ;;  %v1781_v46 = vrot.slane %v1767_v54, %v4123_v8  ;;  %v1763_v35 = vsel %vm412_vm4, %v6081_v28, %v8999_v43  ;;  %v1764_v26 = vsel %vm412_vm4, %v8998_v20, %v6081_v28  ;;  %v1905_v58 = vpop.permute.xlu1 %1904 }
 0x248   :  { %v1740_v51 = vadd.f32 %v1732_v36, %v1664_v21  ;;  %v1741_v4 = vadd.f32 %v1733_v6, %v1665_v47  ;;  %v1742_v32 = vadd.f32 %v1734_v63, %v1666_v15  ;;  %v1743_v2 = vadd.f32 %v1735_v48, %v1667_v34  ;;  %v9001_v34 = vld [vmem:[#allocation46_spill] sm:$0xff]  ;;  %v9002_v48 = vld [vmem:[#allocation39_spill] sm:$0xff] }
 0x249   :  { %2485 = vrot.lane.b32.xlu1 %v4932_v55, %s4065_s23  ;;  %v1785_v53 = vrot.slane %v1766_v41, %v4123_v8  ;;  %v1789_v56 = vrot.slane %v1765_v49, %v4123_v8  ;;  %v1843_v19 = vsel %vm489_vm5, %v6191_v12, %v9000_v37  ;;  %v1844_v28 = vsel %vm489_vm5, %v6149_v14, %v6191_v12  ;;  %v6387_v21 = vpop.permute.xlu0 %2339  ;;  %v9003_v41 = vld [vmem:[#allocation48_spill] sm:$0xff] }
 0x24a   :  { %v1793_v47 = vrot.slane %v1764_v26, %v4123_v8  ;;  %v1797_v15 = vrot.slane %v1763_v35, %v4123_v8  ;;  %v1841_v36 = vsel %vm489_vm5, %v6209_v5, %v9001_v34  ;;  %v1842_v6 = vsel %vm489_vm5, %v9000_v37, %v6209_v5 }
 0x24b   :  { %2976 = vrot.lane.b32.xlu0 %v8955_v23, %s4061_s21  ;;  %v6401_v12 = vadd.f32 %v1736_v38, %v1668_v9  ;;  %v6403_v63 = vadd.f32 %v1737_v60, %v1669_v13  ;;  %v1806_v54 = vmul.f32 %v1777_v0, %v9002_v48  ;;  %v1807_v44 = vmul.f32 %v1781_v46, %v9002_v48  ;;  %v1909_v20 = vpop.permute.xlu1 %1908 }
 0x24c   :  { %v1762_v49 = vsel %vm412_vm4, %v8999_v43, %v6109_v31  ;;  %v1769_v5 = vsel %vm412_vm4, %v6109_v31, %v5997_v57  ;;  %v1853_v9 = vrot.slane %v1844_v28, %v4123_v8  ;;  %v1857_v13 = vrot.slane %v1843_v19, %v4123_v8 }
 0x24d   :  { %2545 = vrot.lane.b32.xlu1 %v4916_v42, %s4067_s24  ;;  %v1861_v38 = vrot.slane %v1842_v6, %v4123_v8  ;;  %v1865_v60 = vrot.slane %v1841_v36, %v4123_v8  ;;  %v1839_v0 = vsel %vm489_vm5, %v6247_v18, %v9003_v41  ;;  %v1840_v57 = vsel %vm489_vm5, %v9001_v34, %v6247_v18  ;;  %v6429_v31 = vpop.permute.xlu0 %2399 }
 0x24e   :  { %9004 = vst [vmem:[#allocation17_spill] sm:$0xff] %v6429_v31  ;;  %v1808_v46 = vmul.f32 %v1785_v53, %v9002_v48  ;;  %v1809_v43 = vmul.f32 %v1789_v56, %v9002_v48  ;;  %v1810_v35 = vmul.f32 %v1793_v47, %v9002_v48  ;;  %v1811_v26 = vmul.f32 %v1797_v15, %v9002_v48  ;;  %v9005_v56 = vld [vmem:[#allocation52_spill] sm:$0xff]  ;;  %v9089_v31 = vld [vmem:[#allocation15_spill] sm:$0xff] }
 0x24f   :  { %3036 = vrot.lane.b32.xlu0 %v5140_v7, %s4063_s22  ;;  %v1814_v37 = vadd.f32 %v1806_v54, %v1738_v3  ;;  %v1815_v19 = vadd.f32 %v1807_v44, %v1739_v1  ;;  %v1801_v28 = vrot.slane %v1762_v49, %v4123_v8  ;;  %v1805_v36 = vrot.slane %v1769_v5, %v4123_v8  ;;  %v6439_v18 = vpop.permute.xlu1 %1912  ;;  %v9006_v1 = vld [vmem:[#allocation47_spill] sm:$0xff] }
 0x250   :  { %v1869_v34 = vrot.slane %v1840_v57, %v4123_v8  ;;  %v1873_v53 = vrot.slane %v1839_v0, %v4123_v8  ;;  %v1919_v47 = vsel %vm566_vm6, %v6337_v33, %v9005_v56  ;;  %v1920_v3 = vsel %vm566_vm6, %v6319_v22, %v6337_v33 }
 0x251   :  { %2549 = vrot.lane.b32.xlu1 %v4919_v11, %s4067_s24  ;;  %v1882_v15 = vmul.f32 %v1853_v9, %v9006_v1  ;;  %v1883_v6 = vmul.f32 %v1857_v13, %v9006_v1  ;;  %v1884_v54 = vmul.f32 %v1861_v38, %v9006_v1  ;;  %v1885_v44 = vmul.f32 %v1865_v60, %v9006_v1  ;;  %v6457_v49 = vpop.permute.xlu0 %2403  ;;  %v9007_v9 = vld [vmem:[#allocation49_spill] sm:$0xff] }
 0x252   :  { %v1816_v5 = vadd.f32 %v1808_v46, %v1740_v51  ;;  %v1817_v0 = vadd.f32 %v1809_v43, %v1741_v4  ;;  %v1818_v57 = vadd.f32 %v1810_v35, %v1742_v32  ;;  %v1819_v52 = vadd.f32 %v1811_v26, %v1743_v2 }
 0x253   :  { %3040 = vrot.lane.b32.xlu0 %v5144_v25, %s4063_s22  ;;  %v1929_v33 = vrot.slane %v1920_v3, %v4123_v8  ;;  %v1933_v27 = vrot.slane %v1919_v47, %v4123_v8  ;;  %v1917_v13 = vsel %vm566_vm6, %v1905_v58, %v9007_v9  ;;  %v1918_v38 = vsel %vm566_vm6, %v9005_v56, %v1905_v58  ;;  %v6469_v60 = vpop.permute.xlu1 %1974  ;;  %v9010_v47 = vld [vmem:[#allocation51_spill] sm:$0xff] }
 0x254   :  { %v6472_v51 = vmul.f32 %v1801_v28, %v9002_v48  ;;  %v6475_v4 = vmul.f32 %v1805_v36, %v9002_v48  ;;  %v1886_v32 = vmul.f32 %v1869_v34, %v9006_v1  ;;  %v1887_v2 = vmul.f32 %v1873_v53, %v9006_v1 }
 0x255   :  { %2553 = vrot.lane.b32.xlu1 %v4929_v24, %s4067_s24  ;;  %v1890_v46 = vadd.f32 %v1882_v15, %v1814_v37  ;;  %v1891_v43 = vadd.f32 %v1883_v6, %v1815_v19  ;;  %v1892_v35 = vadd.f32 %v1884_v54, %v1816_v5  ;;  %v1893_v26 = vadd.f32 %v1885_v44, %v1817_v0  ;;  %v6481_v58 = vpop.permute.xlu0 %2407  ;;  %v9009_v37 = vld [vmem:[#allocation60_spill] sm:$0xff] }
 0x256   :  { %9008 = vst [vmem:[#allocation12_spill] sm:$0xff] %v6481_v58  ;;  %v1838_v28 = vsel %vm489_vm5, %v9003_v41, %v6277_v39  ;;  %v1845_v36 = vsel %vm489_vm5, %v6277_v39, %v6149_v14  ;;  %v1937_v34 = vrot.slane %v1918_v38, %v4123_v8  ;;  %v1941_v53 = vrot.slane %v1917_v13, %v4123_v8 }
 0x257   :  { %3044 = vrot.lane.b32.xlu0 %v5148_v50, %s4063_s22  ;;  %v1958_v19 = vmul.f32 %v1929_v33, %v9009_v37  ;;  %v1959_v56 = vmul.f32 %v1933_v27, %v9009_v37  ;;  %v1915_v41 = vsel %vm566_vm6, %v1909_v20, %v9010_v47  ;;  %v1916_v3 = vsel %vm566_vm6, %v9007_v9, %v1909_v20  ;;  %v1977_v14 = vpop.permute.xlu1 %1976 }
 0x258   :  { %v1894_v39 = vadd.f32 %v1886_v32, %v1818_v57  ;;  %v1895_v15 = vadd.f32 %v1887_v2, %v1819_v52  ;;  %v1995_v6 = vsel %vm643_vm7, %v1977_v14, %v5823_v45  ;;  %v1996_v54 = vsel %vm643_vm7, %v6469_v60, %v1977_v14  ;;  %v9012_v32 = vld [vmem:[#allocation57_spill] sm:$0xff] }
 0x259   :  { %2557 = vrot.lane.b32.xlu1 %v4932_v55, %s4067_s24  ;;  %v1877_v27 = vrot.slane %v1838_v28, %v4123_v8  ;;  %v1881_v44 = vrot.slane %v1845_v36, %v4123_v8  ;;  %v2005_v20 = vrot.slane %v1996_v54, %v4123_v8  ;;  %v2009_v5 = vrot.slane %v1995_v6, %v4123_v8  ;;  %v6515_v52 = vpop.permute.xlu0 %2411 }
 0x25a   :  { %9011 = vst [vmem:[#allocation18_spill] sm:$0xff] %v6515_v52  ;;  %v1960_v0 = vmul.f32 %v1937_v34, %v9009_v37  ;;  %v1961_v57 = vmul.f32 %v1941_v53, %v9009_v37  ;;  %v1945_v33 = vrot.slane %v1916_v3, %v4123_v8  ;;  %v1949_v9 = vrot.slane %v1915_v41, %v4123_v8  ;;  %v9013_v41 = vld [vmem:[#allocation65_spill] sm:$0xff] }
 0x25b   :  { %3048 = vrot.lane.b32.xlu0 %v8955_v23, %s4063_s22  ;;  %v1966_v13 = vadd.f32 %v1958_v19, %v1890_v46  ;;  %v1967_v38 = vadd.f32 %v1959_v56, %v1891_v43  ;;  %v2034_v2 = vmul.f32 %v2005_v20, %v9012_v32  ;;  %v2035_v28 = vmul.f32 %v2009_v5, %v9012_v32  ;;  %v1981_v36 = vpop.permute.xlu1 %1980 }
 0x25c   :  { %v1914_v34 = vsel %vm566_vm6, %v9010_v47, %v6439_v18  ;;  %v1921_v53 = vsel %vm566_vm6, %v6439_v18, %v6319_v22  ;;  %v1993_v46 = vsel %vm643_vm7, %v1981_v36, %v9013_v41  ;;  %v1994_v43 = vsel %vm643_vm7, %v5823_v45, %v1981_v36 }
 0x25d   :  { %2617 = vrot.lane.b32.xlu1 %v4916_v42, %s4069_s25  ;;  %v2042_v19 = vadd.f32 %v2034_v2, %v1966_v13  ;;  %v2043_v56 = vadd.f32 %v2035_v28, %v1967_v38  ;;  %v2013_v47 = vrot.slane %v1994_v43, %v4123_v8  ;;  %v2017_v3 = vrot.slane %v1993_v46, %v4123_v8  ;;  %v6543_v14 = vpop.permute.xlu0 %2471 }
 0x25e   :  { %9014 = vst [vmem:[#allocation13_spill] sm:$0xff] %v6543_v14  ;;  %v1968_v22 = vadd.f32 %v1960_v0, %v1892_v35  ;;  %v1969_v18 = vadd.f32 %v1961_v57, %v1893_v26  ;;  %v1962_v6 = vmul.f32 %v1945_v33, %v9009_v37  ;;  %v1963_v54 = vmul.f32 %v1949_v9, %v9009_v37  ;;  %v9015_v33 = vld [vmem:[#allocation63_spill] sm:$0xff] }
 0x25f   :  { %3108 = vrot.lane.b32.xlu0 %v5140_v7, %s4065_s23  ;;  %v1953_v45 = vrot.slane %v1914_v34, %v4123_v8  ;;  %v1957_v20 = vrot.slane %v1921_v53, %v4123_v8  ;;  %3962 = vst [vmem:[%s8374_s3 + $0x8] sm:$0xff] %v2043_v56  ;;  %v2036_v5 = vmul.f32 %v2013_v47, %v9012_v32  ;;  %3961 = vst [vmem:[%s8374_s3] sm:$0xff] %v2042_v19  ;;  %v1985_v26 = vpop.permute.xlu1 %1984  ;;  %v9066_v14 = vld [vmem:[#allocation139_spill] sm:$0xff] }
 0x260   :  { %v2037_v35 = vmul.f32 %v2017_v3, %v9012_v32  ;;  %v1888_v0 = vmul.f32 %v1877_v27, %v9006_v1  ;;  %v1889_v57 = vmul.f32 %v1881_v44, %v9006_v1  ;;  %v1991_v9 = vsel %vm643_vm7, %v1985_v26, %v9015_v33 }
 0x261   :  { %v1992_v13 = vsel %vm643_vm7, %v9013_v41, %v1985_v26  ;;  %2621 = vrot.lane.b32.xlu1 %v4919_v11, %s4069_s25  ;;  %v2044_v38 = vadd.f32 %v2036_v5, %v1968_v22  ;;  %v2025_v36 = vrot.slane %v1991_v9, %v4123_v8  ;;  %v6571_v27 = vpop.permute.xlu0 %2475  ;;  %v1820_v44 = vadd.f32 %v6472_v51, %v6401_v12 }
 0x262   :  { %v2045_v2 = vadd.f32 %v2037_v35, %v1969_v18  ;;  %v2021_v28 = vrot.slane %v1992_v13, %v4123_v8  ;;  %9016 = vst [vmem:[#allocation19_spill] sm:$0xff] %v6571_v27  ;;  %v1821_v34 = vadd.f32 %v6475_v4, %v6403_v63  ;;  %v1970_v53 = vadd.f32 %v1962_v6, %v1894_v39 }
 0x263   :  { %v1971_v46 = vadd.f32 %v1963_v54, %v1895_v15  ;;  %3112 = vrot.lane.b32.xlu0 %v5144_v25, %s4065_s23  ;;  %v1964_v41 = vmul.f32 %v1953_v45, %v9009_v37  ;;  %v1965_v43 = vmul.f32 %v1957_v20, %v9009_v37  ;;  %3963 = vst [vmem:[%s8374_s3 + $0x10] sm:$0xff] %v2044_v38  ;;  %v1989_v51 = vpop.permute.xlu1 %1988  ;;  %v9022_v38 = vld [vmem:[#allocation5_spill] sm:$0xff]  ;;  %v9037_v37 = vld [vmem:[#allocation4_spill] sm:$0xff] }
 0x264   :  { %3964 = vst [vmem:[%s8374_s3 + $0x18] sm:$0xff] %v2045_v2  ;;  %v2038_v12 = vmul.f32 %v2021_v28, %v9012_v32  ;;  %v2039_v63 = vmul.f32 %v2025_v36, %v9012_v32  ;;  %v1896_v4 = vadd.f32 %v1888_v0, %v1820_v44  ;;  %v1897_v39 = vadd.f32 %v1889_v57, %v1821_v34  ;;  %v9019_v0 = vld [vmem:[#allocation3_spill] sm:$0xff] }
 0x265   :  { %v1990_v15 = vsel %vm643_vm7, %v9015_v33, %v1989_v51  ;;  %v1997_v19 = vsel %vm643_vm7, %v1989_v51, %v6469_v60  ;;  %2625 = vrot.lane.b32.xlu1 %v4929_v24, %s4069_s25  ;;  %v6599_v18 = vpop.permute.xlu0 %2479  ;;  %v9020_v57 = vld [vmem:[#allocation147_spill] sm:$0xff] }
 0x266   :  { %v2046_v56 = vadd.f32 %v2038_v12, %v1970_v53  ;;  %v2047_v47 = vadd.f32 %v2039_v63, %v1971_v46  ;;  %v2029_v3 = vrot.slane %v1990_v15, %v4123_v8  ;;  %v2033_v22 = vrot.slane %v1997_v19, %v4123_v8  ;;  %9017 = vst [vmem:[#allocation14_spill] sm:$0xff] %v6599_v18  ;;  %v9024_v44 = vld [vmem:[#allocation7_spill] sm:$0xff] }
 0x267   :  { %3116 = vrot.lane.b32.xlu0 %v5148_v50, %s4065_s23  ;;  %v1972_v6 = vadd.f32 %v1964_v41, %v1896_v4  ;;  %v1973_v54 = vadd.f32 %v1965_v43, %v1897_v39  ;;  %v6611_v20 = vpop.permute.xlu1 %2111  ;;  %v6619_v33 = vrot.slane %v9020_v57, %v9019_v0  ;;  %v6637_v2 = vrot.slane %v9020_v57, %v9022_v38  ;;  %v9026_v41 = vld [vmem:[#allocation8_spill] sm:$0xff] }
 0x268   :  { %3965 = vst [vmem:[%s8374_s3 + $0x20] sm:$0xff] %v2046_v56  ;;  %3966 = vst [vmem:[%s8374_s3 + $0x28] sm:$0xff] %v2047_v47  ;;  %v2040_v60 = vmul.f32 %v2029_v3, %v9012_v32  ;;  %v2041_v45 = vmul.f32 %v2033_v22, %v9012_v32  ;;  %v6649_v34 = vrot.slane %v9020_v57, %v9024_v44  ;;  %v3989_v47 = vld [vmem:[%s8373_s0 + $0x5] ss:$8 sm:$0xf] }
 0x269   :  { %2629 = vrot.lane.b32.xlu1 %v4932_v55, %s4069_s25  ;;  %v6615_v26 = vpop.permute.xlu0 %2483  ;;  %v6661_v43 = vrot.slane %v9020_v57, %v9026_v41  ;;  %v3990_v3 = vld [vmem:[%s8373_s0 + $0x5] ss:$8 sm:$0xf0] }
 0x26a   :  { %v2048_v5 = vadd.f32 %v2040_v60, %v1972_v6  ;;  %v2049_v35 = vadd.f32 %v2041_v45, %v1973_v54  ;;  %9018 = vst [vmem:[#allocation62_spill] sm:$0xff] %v6615_v26  ;;  %v6707_v6 = vor.u32 %v3990_v3, %v3989_v47  ;;  %v9034_v57 = vld [vmem:[#allocation2_spill] sm:$0xff] }
 0x26b   :  { %3120 = vrot.lane.b32.xlu0 %v8955_v23, %s4065_s23  ;;  %v6629_v9 = vpop.permute.xlu1 %2113 }
 0x26c   :  { %3967 = vst [vmem:[%s8374_s3 + $0x30] sm:$0xff] %v2048_v5  ;;  %3968 = vst [vmem:[%s8374_s3 + $0x38] sm:$0xff] %v2049_v35  ;;  %v6719_v45 = vrot.slane %v6707_v6, %v4123_v8  ;;  %v6731_v47 = vrot.slane %v6707_v6, %v9034_v57  ;;  %v6743_v1 = vrot.slane %v6707_v6, %v9037_v37 }
 0x26d   :  { %2750 = vrot.lane.b32.xlu1 %v6619_v33, %s4054_s2  ;;  %v6633_v13 = vpop.permute.xlu0 %2543 }
 0x26e   :  { %9021 = vst [vmem:[#allocation80_spill] sm:$0xff] %v6633_v13  ;;  %9032 = vst [vmem:[#allocation90_spill] sm:$0xff] %v6719_v45 }
 0x26f   :  { %3180 = vrot.lane.b32.xlu0 %v5140_v7, %s4067_s24  ;;  %v6641_v28 = vpop.permute.xlu1 %2117  ;;  %9035 = vst [vmem:[#allocation73_spill] sm:$0xff] %v6731_v47  ;;  %9038 = vst [vmem:[#allocation76_spill] sm:$0xff] %v6743_v1 }
 0x271   :  { %2754 = vrot.lane.b32.xlu1 %v6637_v2, %s4054_s2  ;;  %v6645_v36 = vpop.permute.xlu0 %2547 }
 0x272   :  { %9023 = vst [vmem:[#allocation67_spill] sm:$0xff] %v6645_v36 }
 0x273   :  { %3184 = vrot.lane.b32.xlu0 %v5144_v25, %s4067_s24  ;;  %v6653_v53 = vpop.permute.xlu1 %2121 }
 0x275   :  { %2758 = vrot.lane.b32.xlu1 %v6649_v34, %s4054_s2  ;;  %v6657_v46 = vpop.permute.xlu0 %2551 }
 0x276   :  { %9025 = vst [vmem:[#allocation64_spill] sm:$0xff] %v6657_v46 }
 0x277   :  { %3188 = vrot.lane.b32.xlu0 %v5148_v50, %s4067_s24  ;;  %v6665_v12 = vpop.permute.xlu1 %2125 }
 0x279   :  { %2762 = vrot.lane.b32.xlu1 %v6661_v43, %s4054_s2  ;;  %v6669_v63 = vpop.permute.xlu0 %2555 }
 0x27a   :  { %9027 = vst [vmem:[#allocation82_spill] sm:$0xff] %v6669_v63 }
 0x27b   :  { %3192 = vrot.lane.b32.xlu0 %v8955_v23, %s4067_s24  ;;  %v6673_v51 = vpop.permute.xlu1 %2185 }
 0x27d   :  { %2822 = vrot.lane.b32.xlu1 %v6619_v33, %s4056_s1  ;;  %v6677_v4 = vpop.permute.xlu0 %2615 }
 0x27e   :  { %9028 = vst [vmem:[#allocation66_spill] sm:$0xff] %v6677_v4 }
 0x27f   :  { %3252 = vrot.lane.b32.xlu0 %v5140_v7, %s4069_s25  ;;  %v6681_v39 = vpop.permute.xlu1 %2189 }
 0x281   :  { %2826 = vrot.lane.b32.xlu1 %v6637_v2, %s4056_s1  ;;  %v6685_v15 = vpop.permute.xlu0 %2619 }
 0x282   :  { %9029 = vst [vmem:[#allocation84_spill] sm:$0xff] %v6685_v15 }
 0x283   :  { %3256 = vrot.lane.b32.xlu0 %v5144_v25, %s4069_s25  ;;  %v6689_v19 = vpop.permute.xlu1 %2193 }
 0x285   :  { %2830 = vrot.lane.b32.xlu1 %v6649_v34, %s4056_s1  ;;  %v6693_v56 = vpop.permute.xlu0 %2623 }
 0x286   :  { %9030 = vst [vmem:[#allocation86_spill] sm:$0xff] %v6693_v56 }
 0x287   :  { %3260 = vrot.lane.b32.xlu0 %v5148_v50, %s4069_s25  ;;  %v6703_v22 = vpop.permute.xlu1 %2197 }
 0x289   :  { %2834 = vrot.lane.b32.xlu1 %v6661_v43, %s4056_s1  ;;  %v6709_v54 = vpop.permute.xlu0 %2627 }
 0x28a   :  { %9031 = vst [vmem:[#allocation71_spill] sm:$0xff] %v6709_v54 }
 0x28b   :  { %3264 = vrot.lane.b32.xlu0 %v8955_v23, %s4069_s25  ;;  %v6713_v60 = vpop.permute.xlu1 %2257 }
 0x28d   :  { %2894 = vrot.lane.b32.xlu1 %v6619_v33, %s4059_s20  ;;  %v6721_v5 = vpop.permute.xlu0 %2748 }
 0x28e   :  { %9033 = vst [vmem:[#allocation69_spill] sm:$0xff] %v6721_v5  ;;  %v9040_v5 = vld [vmem:[#allocation6_spill] sm:$0xff] }
 0x28f   :  { %3385 = vrot.lane.b32.xlu0 %v6719_v45, %s4054_s2  ;;  %v6725_v35 = vpop.permute.xlu1 %2261 }
 0x291   :  { %2898 = vrot.lane.b32.xlu1 %v6637_v2, %s4059_s20  ;;  %v6733_v3 = vpop.permute.xlu0 %2752 }
 0x292   :  { %9036 = vst [vmem:[#allocation92_spill] sm:$0xff] %v6733_v3  ;;  %v6755_v3 = vrot.slane %v6707_v6, %v9040_v5 }
 0x293   :  { %3389 = vrot.lane.b32.xlu0 %v6731_v47, %s4054_s2  ;;  %v6737_v32 = vpop.permute.xlu1 %2265 }
 0x294   :  { %9041 = vst [vmem:[#allocation96_spill] sm:$0xff] %v6755_v3 }
 0x295   :  { %2902 = vrot.lane.b32.xlu1 %v6649_v34, %s4059_s20  ;;  %v6745_v48 = vpop.permute.xlu0 %2756 }
 0x296   :  { %9039 = vst [vmem:[#allocation94_spill] sm:$0xff] %v6745_v48 }
 0x297   :  { %3393 = vrot.lane.b32.xlu0 %v6743_v1, %s4054_s2  ;;  %v6749_v57 = vpop.permute.xlu1 %2269 }
 0x299   :  { %2906 = vrot.lane.b32.xlu1 %v6661_v43, %s4059_s20  ;;  %v6757_v23 = vpop.permute.xlu0 %2760 }
 0x29a   :  { %9042 = vst [vmem:[#allocation81_spill] sm:$0xff] %v6757_v23 }
 0x29b   :  { %3397 = vrot.lane.b32.xlu0 %v6755_v3, %s4054_s2  ;;  %v6761_v37 = vpop.permute.xlu1 %2329 }
 0x29d   :  { %2966 = vrot.lane.b32.xlu1 %v6619_v33, %s4061_s21  ;;  %v6765_v48 = vpop.permute.xlu0 %2820 }
 0x29e   :  { %9043 = vst [vmem:[#allocation100_spill] sm:$0xff] %v6765_v48 }
 0x29f   :  { %3457 = vrot.lane.b32.xlu0 %v6719_v45, %s4056_s1  ;;  %v6769_v54 = vpop.permute.xlu1 %2333 }
 0x2a1   :  { %2970 = vrot.lane.b32.xlu1 %v6637_v2, %s4061_s21  ;;  %v6773_v5 = vpop.permute.xlu0 %2824 }
 0x2a2   :  { %9044 = vst [vmem:[#allocation98_spill] sm:$0xff] %v6773_v5 }
 0x2a3   :  { %3461 = vrot.lane.b32.xlu0 %v6731_v47, %s4056_s1  ;;  %v6777_v23 = vpop.permute.xlu1 %2337 }
 0x2a5   :  { %2974 = vrot.lane.b32.xlu1 %v6649_v34, %s4061_s21  ;;  %v6781_v56 = vpop.permute.xlu0 %2828 }
 0x2a6   :  { %9045 = vst [vmem:[#allocation83_spill] sm:$0xff] %v6781_v56 }
 0x2a7   :  { %3465 = vrot.lane.b32.xlu0 %v6743_v1, %s4056_s1  ;;  %v6785_v48 = vpop.permute.xlu1 %2341 }
 0x2a9   :  { %2978 = vrot.lane.b32.xlu1 %v6661_v43, %s4061_s21  ;;  %v6789_v4 = vpop.permute.xlu0 %2832 }
 0x2aa   :  { %9046 = vst [vmem:[#allocation102_spill] sm:$0xff] %v6789_v4 }
 0x2ab   :  { %3469 = vrot.lane.b32.xlu0 %v6755_v3, %s4056_s1  ;;  %v6793_v5 = vpop.permute.xlu1 %2401 }
 0x2ac   :  { %9047 = vst [vmem:[#allocation85_spill] sm:$0xff] %v6793_v5 }
 0x2ad   :  { %3038 = vrot.lane.b32.xlu1 %v6619_v33, %s4063_s22  ;;  %v6797_v15 = vpop.permute.xlu0 %2892 }
 0x2ae   :  { %9048 = vst [vmem:[#allocation104_spill] sm:$0xff] %v6797_v15 }
 0x2af   :  { %3529 = vrot.lane.b32.xlu0 %v6719_v45, %s4059_s20  ;;  %v6801_v56 = vpop.permute.xlu1 %2405 }
 0x2b0   :  { %9049 = vst [vmem:[#allocation106_spill] sm:$0xff] %v6801_v56 }
 0x2b1   :  { %3042 = vrot.lane.b32.xlu1 %v6637_v2, %s4063_s22  ;;  %v6805_v63 = vpop.permute.xlu0 %2896 }
 0x2b2   :  { %9050 = vst [vmem:[#allocation89_spill] sm:$0xff] %v6805_v63 }
 0x2b3   :  { %3533 = vrot.lane.b32.xlu0 %v6731_v47, %s4059_s20  ;;  %v6809_v4 = vpop.permute.xlu1 %2409 }
 0x2b4   :  { %9051 = vst [vmem:[#allocation110_spill] sm:$0xff] %v6809_v4 }
 0x2b5   :  { %3046 = vrot.lane.b32.xlu1 %v6649_v34, %s4063_s22  ;;  %v6813_v46 = vpop.permute.xlu0 %2900 }
 0x2b6   :  { %9052 = vst [vmem:[#allocation108_spill] sm:$0xff] %v6813_v46 }
 0x2b7   :  { %3537 = vrot.lane.b32.xlu0 %v6743_v1, %s4059_s20  ;;  %v6817_v15 = vpop.permute.xlu1 %2413 }
 0x2b8   :  { %9053 = vst [vmem:[#allocation91_spill] sm:$0xff] %v6817_v15  ;;  %v9068_v15 = vld [vmem:[#allocation134_spill] sm:$0xff] }
 0x2b9   :  { %3050 = vrot.lane.b32.xlu1 %v6661_v43, %s4063_s22  ;;  %v6821_v13 = vpop.permute.xlu0 %2904 }
 0x2ba   :  { %9054 = vst [vmem:[#allocation112_spill] sm:$0xff] %v6821_v13 }
 0x2bb   :  { %3541 = vrot.lane.b32.xlu0 %v6755_v3, %s4059_s20  ;;  %v6825_v63 = vpop.permute.xlu1 %2473 }
 0x2bc   :  { %9055 = vst [vmem:[#allocation93_spill] sm:$0xff] %v6825_v63 }
 0x2bd   :  { %3110 = vrot.lane.b32.xlu1 %v6619_v33, %s4065_s23  ;;  %v6829_v36 = vpop.permute.xlu0 %2964 }
 0x2be   :  { %9056 = vst [vmem:[#allocation114_spill] sm:$0xff] %v6829_v36 }
 0x2bf   :  { %3601 = vrot.lane.b32.xlu0 %v6719_v45, %s4061_s21  ;;  %v6833_v46 = vpop.permute.xlu1 %2477 }
 0x2c0   :  { %9057 = vst [vmem:[#allocation116_spill] sm:$0xff] %v6833_v46 }
 0x2c1   :  { %3114 = vrot.lane.b32.xlu1 %v6637_v2, %s4065_s23  ;;  %v6837_v26 = vpop.permute.xlu0 %2968 }
 0x2c2   :  { %9058 = vst [vmem:[#allocation97_spill] sm:$0xff] %v6837_v26 }
 0x2c3   :  { %3605 = vrot.lane.b32.xlu0 %v6731_v47, %s4061_s21  ;;  %v6841_v13 = vpop.permute.xlu1 %2481 }
 0x2c4   :  { %9059 = vst [vmem:[#allocation120_spill] sm:$0xff] %v6841_v13 }
 0x2c5   :  { %3118 = vrot.lane.b32.xlu1 %v6649_v34, %s4065_s23  ;;  %v6845_v18 = vpop.permute.xlu0 %2972 }
 0x2c6   :  { %9060 = vst [vmem:[#allocation118_spill] sm:$0xff] %v6845_v18  ;;  %v9065_v18 = vld [vmem:[#allocation10_spill] sm:$0xff] }
 0x2c7   :  { %3609 = vrot.lane.b32.xlu0 %v6743_v1, %s4061_s21  ;;  %v6849_v36 = vpop.permute.xlu1 %2485  ;;  %v2095_v63 = vmul.f32 %v9066_v14, %v9065_v18  ;;  %v2099_v4 = vmul.f32 %v9068_v15, %v9065_v18  ;;  %v9070_v14 = vld [vmem:[#allocation137_spill] sm:$0xff]  ;;  %v2102_v56 = vmul.f32 %v4932_v55, %v9065_v18 }
 0x2c8   :  { %9061 = vst [vmem:[#allocation99_spill] sm:$0xff] %v6849_v36  ;;  %v2096_v36 = vmul.f32 %v4916_v42, %v9065_v18  ;;  %v2101_v42 = vmul.f32 %v9070_v14, %v9065_v18 }
 0x2c9   :  { %3122 = vrot.lane.b32.xlu1 %v6661_v43, %s4065_s23  ;;  %v6853_v46 = vpop.permute.xlu0 %2976 }
 0x2ca   :  { %9062 = vst [vmem:[#allocation122_spill] sm:$0xff] %v6853_v46  ;;  %v9067_v46 = vld [vmem:[#allocation131_spill] sm:$0xff] }
 0x2cb   :  { %3613 = vrot.lane.b32.xlu0 %v6755_v3, %s4061_s21  ;;  %v6857_v26 = vpop.permute.xlu1 %2545  ;;  %v2097_v27 = vmul.f32 %v9067_v46, %v9065_v18 }
 0x2cc   :  { %9063 = vst [vmem:[#allocation101_spill] sm:$0xff] %v6857_v26  ;;  %v2098_v26 = vmul.f32 %v4919_v11, %v9065_v18  ;;  %v9072_v11 = vld [vmem:[#allocation9_spill] sm:$0xff] }
 0x2cd   :  { %3182 = vrot.lane.b32.xlu1 %v6619_v33, %s4067_s24  ;;  %v6861_v13 = vpop.permute.xlu0 %3036  ;;  %v6888_v58 = vadd.f32 %v2095_v63, %v9072_v11  ;;  %v6891_v15 = vadd.f32 %v2096_v36, %v9072_v11  ;;  %v6902_v55 = vadd.f32 %v2099_v4, %v9072_v11  ;;  %v6910_v36 = vadd.f32 %v2101_v42, %v9072_v11 }
 0x2ce   :  { %9064 = vst [vmem:[#allocation124_spill] sm:$0xff] %v6861_v13  ;;  %v2100_v13 = vmul.f32 %v4929_v24, %v9065_v18  ;;  %v6896_v24 = vadd.f32 %v2097_v27, %v9072_v11  ;;  %v6899_v14 = vadd.f32 %v2098_v26, %v9072_v11  ;;  %v9074_v27 = vld [vmem:[#allocation77_spill] sm:$0xff] }
 0x2cf   :  { %3673 = vrot.lane.b32.xlu0 %v6719_v45, %s4063_s22  ;;  %v6877_v52 = vpop.permute.xlu1 %2549  ;;  %v6919_v26 = vmul.f32 %v5140_v7, %v9074_v27  ;;  %v6923_v4 = vmul.f32 %v6619_v33, %v9074_v27  ;;  %v6935_v42 = vmul.f32 %v5144_v25, %v9074_v27  ;;  %v6939_v7 = vmul.f32 %v6637_v2, %v9074_v27 }
 0x2d0   :  { %9069 = vst [vmem:[#allocation126_spill] sm:$0xff] %v6877_v52  ;;  %v6905_v18 = vadd.f32 %v2100_v13, %v9072_v11  ;;  %v2132_v13 = vsel %vm104_vm0, %v6629_v9, %v5945_v30  ;;  %v6953_v25 = vmul.f32 %v5148_v50, %v9074_v27  ;;  %v6973_v50 = vrot.slane %v6707_v6, %v9019_v0 }
 0x2d1   :  { %3186 = vrot.lane.b32.xlu1 %v6637_v2, %s4067_s24  ;;  %v6885_v46 = vpop.permute.xlu0 %3040  ;;  %9075 = vst [vmem:[#allocation128_spill] sm:$0xff] %v6919_v26  ;;  %9076 = vst [vmem:[#allocation107_spill] sm:$0xff] %v6923_v4  ;;  %v2130_v4 = vsel %vm104_vm0, %v6641_v28, %v5979_v59  ;;  %v2127_v26 = vsel %vm104_vm0, %v6027_v40, %v6665_v12 }
 0x2d2   :  { %9071 = vst [vmem:[#allocation105_spill] sm:$0xff] %v6885_v46  ;;  %v6913_v46 = vadd.f32 %v2102_v56, %v9072_v11  ;;  %v2133_v56 = vsel %vm104_vm0, %v6611_v20, %v6629_v9  ;;  %9077 = vst [vmem:[#allocation133_spill] sm:$0xff] %v6935_v42  ;;  %v2131_v9 = vsel %vm104_vm0, %v5945_v30, %v6641_v28 }
 0x2d3   :  { %3677 = vrot.lane.b32.xlu0 %v6731_v47, %s4063_s22  ;;  %v6907_v63 = vpop.permute.xlu1 %2553  ;;  %9078 = vst [vmem:[#allocation109_spill] sm:$0xff] %v6939_v7  ;;  %9080 = vst [vmem:[#allocation140_spill] sm:$0xff] %v6953_v25  ;;  %v6957_v42 = vmul.f32 %v6649_v34, %v9074_v27  ;;  %v2129_v30 = vsel %vm104_vm0, %v5979_v59, %v6653_v53  ;;  %v2138_v25 = vrot.slane %v2133_v56, %v4123_v8  ;;  %v9084_v56 = vld [vmem:[#allocation68_spill] sm:$0xff] }
 0x2d4   :  { %9073 = vst [vmem:[#allocation130_spill] sm:$0xff] %v6907_v63  ;;  %v2142_v7 = vrot.slane %v2132_v13, %v4123_v8  ;;  %v2134_v59 = vsel %vm104_vm0, %v6665_v12, %v6611_v20  ;;  %v2146_v0 = vrot.slane %v2131_v9, %v4123_v8  ;;  %v2154_v20 = vrot.slane %v2129_v30, %v4123_v8  ;;  %v9087_v30 = vld [vmem:[#allocation74_spill] sm:$0xff] }
 0x2d5   :  { %3190 = vrot.lane.b32.xlu1 %v6649_v34, %s4067_s24  ;;  %v6941_v11 = vpop.permute.xlu0 %3044  ;;  %9081 = vst [vmem:[#allocation113_spill] sm:$0xff] %v6957_v42  ;;  %v6977_v42 = vrot.slane %v6707_v6, %v9022_v38  ;;  %v2150_v38 = vrot.slane %v2130_v4, %v4123_v8  ;;  %v2167_v5 = vmul.f32 %v2138_v25, %v9089_v31 }
 0x2d6   :  { %9079 = vst [vmem:[#allocation136_spill] sm:$0xff] %v6941_v11  ;;  %v2128_v11 = vsel %vm104_vm0, %v6653_v53, %v6027_v40  ;;  %v9083_v53 = vld [vmem:[#allocation59_spill] sm:$0xff]  ;;  %v2205_v40 = vsel %vm181_vm1, %v9084_v56, %v6673_v51 }
 0x2d7   :  { %3681 = vrot.lane.b32.xlu0 %v6743_v1, %s4063_s22  ;;  %v6969_v28 = vpop.permute.xlu1 %2557  ;;  %v2204_v13 = vsel %vm181_vm1, %v6673_v51, %v9083_v53  ;;  %v2158_v12 = vrot.slane %v2128_v11, %v4123_v8  ;;  %v2203_v9 = vsel %vm181_vm1, %v9083_v53, %v6681_v39  ;;  %v2162_v51 = vrot.slane %v2127_v26, %v4123_v8 }
 0x2d8   :  { %9082 = vst [vmem:[#allocation142_spill] sm:$0xff] %v6969_v28  ;;  %v9086_v28 = vld [vmem:[#allocation70_spill] sm:$0xff]  ;;  %v2200_v11 = vsel %vm181_vm1, %v6689_v19, %v9087_v30  ;;  %v2214_v53 = vrot.slane %v2204_v13, %v4123_v8  ;;  %v7033_v26 = vrot.slane %v6707_v6, %v9024_v44  ;;  %v2169_v13 = vmul.f32 %v2146_v0, %v9089_v31 }
 0x2d9   :  { %3194 = vrot.lane.b32.xlu1 %v6661_v43, %s4067_s24  ;;  %v7001_v27 = vpop.permute.xlu0 %3048  ;;  %v2202_v4 = vsel %vm181_vm1, %v6681_v39, %v9086_v28  ;;  %v2201_v63 = vsel %vm181_vm1, %v9086_v28, %v6689_v19  ;;  %v2210_v39 = vrot.slane %v2205_v40, %v4123_v8  ;;  %v2168_v19 = vmul.f32 %v2142_v7, %v9089_v31 }
 0x2da   :  { %9085 = vst [vmem:[#allocation115_spill] sm:$0xff] %v7001_v27  ;;  %v2166_v27 = vrot.slane %v2134_v59, %v4123_v8  ;;  %v7037_v59 = vrot.slane %v6707_v6, %v9026_v41  ;;  %v2218_v28 = vrot.slane %v2203_v9, %v4123_v8  ;;  %v2222_v40 = vrot.slane %v2202_v4, %v4123_v8 }
 0x2db   :  { %3685 = vrot.lane.b32.xlu0 %v6755_v3, %s4063_s22  ;;  %v7025_v52 = vpop.permute.xlu1 %2617  ;;  %v2230_v44 = vrot.slane %v2200_v11, %v4123_v8  ;;  %v2171_v41 = vmul.f32 %v2154_v20, %v9089_v31  ;;  %v2172_v6 = vmul.f32 %v2158_v12, %v9089_v31  ;;  %v2173_v7 = vmul.f32 %v2162_v51, %v9089_v31 }
 0x2dc   :  { %9088 = vst [vmem:[#allocation117_spill] sm:$0xff] %v7025_v52  ;;  %v2226_v52 = vrot.slane %v2201_v63, %v4123_v8  ;;  %v2174_v25 = vmul.f32 %v2166_v27, %v9089_v31  ;;  %v2199_v11 = vsel %vm181_vm1, %v9087_v30, %v6703_v22  ;;  %v2206_v20 = vsel %vm181_vm1, %v6703_v22, %v9084_v56 }
 0x2dd   :  { %3254 = vrot.lane.b32.xlu1 %v6619_v33, %s4069_s25  ;;  %v2170_v33 = vmul.f32 %v2150_v38, %v9089_v31  ;;  %v7055_v0 = vpop.permute.xlu0 %3108  ;;  %v9091_v38 = vld [vmem:[#allocation20_spill] sm:$0xff]  ;;  %v2175_v31 = vadd.f32 %v2167_v5, %v6888_v58  ;;  %v2176_v27 = vadd.f32 %v2168_v19, %v6891_v15  ;;  %v2180_v58 = vadd.f32 %v2172_v6, %v6905_v18 }
 0x2de   :  { %9090 = vst [vmem:[#allocation121_spill] sm:$0xff] %v7055_v0  ;;  %v2239_v9 = vmul.f32 %v2210_v39, %v9091_v38  ;;  %v2240_v63 = vmul.f32 %v2214_v53, %v9091_v38  ;;  %v2241_v12 = vmul.f32 %v2218_v28, %v9091_v38  ;;  %v2242_v51 = vmul.f32 %v2222_v40, %v9091_v38  ;;  %v9092_v28 = vld [vmem:[#allocation16_spill] sm:$0xff] }
 0x2df   :  { %3745 = vrot.lane.b32.xlu0 %v6719_v45, %s4065_s23  ;;  %v7053_v4 = vpop.permute.xlu1 %2621  ;;  %v2177_v39 = vadd.f32 %v2169_v13, %v6896_v24  ;;  %v2178_v30 = vadd.f32 %v2170_v33, %v6899_v14  ;;  %v2243_v53 = vmul.f32 %v2226_v52, %v9091_v38  ;;  %v2244_v0 = vmul.f32 %v2230_v44, %v9091_v38 }
 0x2e0   :  { %v2234_v22 = vrot.slane %v2199_v11, %v4123_v8  ;;  %v2238_v5 = vrot.slane %v2206_v20, %v4123_v8  ;;  %v2181_v24 = vadd.f32 %v2173_v7, %v6910_v36  ;;  %v2182_v14 = vadd.f32 %v2174_v25, %v6913_v46 }
 0x2e1   :  { %3258 = vrot.lane.b32.xlu1 %v6637_v2, %s4069_s25  ;;  %v2179_v2 = vadd.f32 %v2171_v41, %v6902_v55  ;;  %v2247_v52 = vadd.f32 %v2239_v9, %v2175_v31  ;;  %v2248_v56 = vadd.f32 %v2240_v63, %v2176_v27  ;;  %v7089_v19 = vadd.f32 %v2241_v12, %v2177_v39  ;;  %v7101_v46 = vpop.permute.xlu0 %3112  ;;  %v9093_v9 = vld [vmem:[#allocation11_spill] sm:$0xff] }
 0x2e2   :  { %v7091_v55 = vadd.f32 %v2242_v51, %v2178_v30  ;;  %v2276_v18 = vsel %vm258_vm2, %v6713_v60, %v6201_v29  ;;  %v2277_v36 = vsel %vm258_vm2, %v9092_v28, %v6713_v60  ;;  %v7105_v13 = vadd.f32 %v2244_v0, %v2180_v58 }
 0x2e3   :  { %3749 = vrot.lane.b32.xlu0 %v6731_v47, %s4065_s23  ;;  %v7083_v15 = vpop.permute.xlu1 %2625  ;;  %v7103_v40 = vadd.f32 %v2243_v53, %v2179_v2  ;;  %v2275_v33 = vsel %vm258_vm2, %v6201_v29, %v6725_v35  ;;  %v2245_v60 = vmul.f32 %v2234_v22, %v9091_v38  ;;  %v2246_v44 = vmul.f32 %v2238_v5, %v9091_v38  ;;  %v9094_v2 = vld [vmem:[#allocation21_spill] sm:$0xff] }
 0x2e4   :  { %v2272_v41 = vsel %vm258_vm2, %v6737_v32, %v6261_v62  ;;  %v2273_v6 = vsel %vm258_vm2, %v6223_v16, %v6737_v32  ;;  %v2282_v29 = vrot.slane %v2277_v36, %v4123_v8  ;;  %v2271_v25 = vsel %vm258_vm2, %v6261_v62, %v6749_v57 }
 0x2e5   :  { %3262 = vrot.lane.b32.xlu1 %v6649_v34, %s4069_s25  ;;  %v2274_v34 = vsel %vm258_vm2, %v6725_v35, %v6223_v16  ;;  %v2286_v35 = vrot.slane %v2276_v18, %v4123_v8  ;;  %v2278_v0 = vsel %vm258_vm2, %v6749_v57, %v9092_v28  ;;  %v2290_v16 = vrot.slane %v2275_v33, %v4123_v8 }
 0x2e6   :  { %v2294_v32 = vrot.slane %v2274_v34, %v4123_v8  ;;  %v2348_v38 = vsel %vm335_vm3, %v6761_v37, %v6329_v10  ;;  %v2349_v62 = vsel %vm335_vm3, %v9093_v9, %v6761_v37  ;;  %v2298_v63 = vrot.slane %v2273_v6, %v4123_v8 }
 0x2e7   :  { %3753 = vrot.lane.b32.xlu0 %v6743_v1, %s4065_s23  ;;  %v7127_v7 = vpop.permute.xlu1 %2629  ;;  %v2302_v57 = vrot.slane %v2272_v41, %v4123_v8  ;;  %v2346_v11 = vsel %vm335_vm3, %v6769_v54, %v6351_v17  ;;  %v2347_v20 = vsel %vm335_vm3, %v6329_v10, %v6769_v54  ;;  %v2306_v31 = vrot.slane %v2271_v25, %v4123_v8  ;;  %v7175_v10 = vpop.permute.xlu0 %3116 }
 0x2e8   :  { %v2310_v37 = vrot.slane %v2278_v0, %v4123_v8  ;;  %v2344_v27 = vsel %vm335_vm3, %v6777_v23, %v6387_v21  ;;  %v2345_v12 = vsel %vm335_vm3, %v6351_v17, %v6777_v23  ;;  %v2253_v54 = vadd.f32 %v2245_v60, %v2181_v24 }
 0x2e9   :  { %3266 = vrot.lane.b32.xlu1 %v6661_v43, %s4069_s25  ;;  %v2254_v39 = vadd.f32 %v2246_v44, %v2182_v14  ;;  %v2354_v30 = vrot.slane %v2349_v62, %v4123_v8  ;;  %v2358_v53 = vrot.slane %v2348_v38, %v4123_v8  ;;  %v2311_v58 = vmul.f32 %v2282_v29, %v9094_v2  ;;  %v9095_v44 = vld [vmem:[#allocation29_spill] sm:$0xff] }
 0x2ea   :  { %v2312_v22 = vmul.f32 %v2286_v35, %v9094_v2  ;;  %v2362_v5 = vrot.slane %v2347_v20, %v4123_v8  ;;  %v2366_v23 = vrot.slane %v2346_v11, %v4123_v8  ;;  %v2313_v17 = vmul.f32 %v2290_v16, %v9094_v2 }
 0x2eb   :  { %3757 = vrot.lane.b32.xlu0 %v6755_v3, %s4065_s23  ;;  %v7173_v51 = vpop.permute.xlu1 %2750  ;;  %v2314_v24 = vmul.f32 %v2294_v32, %v9094_v2  ;;  %v2370_v14 = vrot.slane %v2345_v12, %v4123_v8  ;;  %v2374_v18 = vrot.slane %v2344_v27, %v4123_v8  ;;  %v2315_v28 = vmul.f32 %v2298_v63, %v9094_v2  ;;  %v7211_v38 = vpop.permute.xlu0 %3120  ;;  %v9097_v12 = vld [vmem:[#allocation17_spill] sm:$0xff] }
 0x2ec   :  { %v2316_v36 = vmul.f32 %v2302_v57, %v9094_v2  ;;  %v2317_v34 = vmul.f32 %v2306_v31, %v9094_v2  ;;  %v2318_v33 = vmul.f32 %v2310_v37, %v9094_v2  ;;  %v2383_v41 = vmul.f32 %v2354_v30, %v9095_v44  ;;  %v9099_v2 = vld [vmem:[#allocation106_spill] sm:$0xff] }
 0x2ed   :  { %3387 = vrot.lane.b32.xlu1 %v6973_v50, %s4054_s2  ;;  %v2384_v6 = vmul.f32 %v2358_v53, %v9095_v44  ;;  %v2343_v29 = vsel %vm335_vm3, %v6387_v21, %v6785_v48  ;;  %v2350_v35 = vsel %vm335_vm3, %v6785_v48, %v9093_v9  ;;  %v2319_v25 = vadd.f32 %v2311_v58, %v2247_v52  ;;  %v9098_v53 = vld [vmem:[#allocation12_spill] sm:$0xff] }
 0x2ee   :  { %v2320_v0 = vadd.f32 %v2312_v22, %v2248_v56  ;;  %v2385_v16 = vmul.f32 %v2362_v5, %v9095_v44  ;;  %v2386_v32 = vmul.f32 %v2366_v23, %v9095_v44  ;;  %v2321_v62 = vadd.f32 %v2313_v17, %v7089_v19  ;;  %v9100_v17 = vld [vmem:[#allocation18_spill] sm:$0xff] }
 0x2ef   :  { %3817 = vrot.lane.b32.xlu0 %v6719_v45, %s4067_s24  ;;  %v7195_v60 = vpop.permute.xlu1 %2754  ;;  %v2322_v21 = vadd.f32 %v2314_v24, %v7091_v55  ;;  %v2387_v63 = vmul.f32 %v2370_v14, %v9095_v44  ;;  %v2388_v57 = vmul.f32 %v2374_v18, %v9095_v44  ;;  %v2323_v48 = vadd.f32 %v2315_v28, %v7103_v40  ;;  %v9096_v40 = vld [vmem:[#allocation85_spill] sm:$0xff]  ;;  %v9101_v24 = vld [vmem:[#allocation110_spill] sm:$0xff] }
 0x2f0   :  { %v2324_v52 = vadd.f32 %v2316_v36, %v7105_v13  ;;  %v2378_v56 = vrot.slane %v2343_v29, %v4123_v8  ;;  %v2382_v9 = vrot.slane %v2350_v35, %v4123_v8  ;;  %v2325_v19 = vadd.f32 %v2317_v34, %v2253_v54  ;;  %v9103_v35 = vld [vmem:[#allocation19_spill] sm:$0xff] }
 0x2f1   :  { %3391 = vrot.lane.b32.xlu1 %v6977_v42, %s4054_s2  ;;  %v2326_v20 = vadd.f32 %v2318_v33, %v2254_v39  ;;  %v2391_v55 = vadd.f32 %v2383_v41, %v2319_v25  ;;  %v2392_v31 = vadd.f32 %v2384_v6, %v2320_v0  ;;  %v7227_v37 = vadd.f32 %v2385_v16, %v2321_v62  ;;  %v9102_v33 = vld [vmem:[#allocation91_spill] sm:$0xff]  ;;  %v9104_v25 = vld [vmem:[#allocation93_spill] sm:$0xff] }
 0x2f2   :  { %v7229_v27 = vadd.f32 %v2386_v32, %v2322_v21  ;;  %v2420_v13 = vsel %vm412_vm4, %v9096_v40, %v6457_v49  ;;  %v2421_v54 = vsel %vm412_vm4, %v9097_v12, %v9096_v40  ;;  %v7239_v39 = vadd.f32 %v2387_v63, %v2323_v48  ;;  %v9105_v16 = vld [vmem:[#allocation13_spill] sm:$0xff]  ;;  %v9106_v63 = vld [vmem:[#allocation14_spill] sm:$0xff] }
 0x2f3   :  { %3821 = vrot.lane.b32.xlu0 %v6731_v47, %s4067_s24  ;;  %v7223_v11 = vpop.permute.xlu1 %2758  ;;  %v7241_v30 = vadd.f32 %v2388_v57, %v2324_v52  ;;  %v2418_v58 = vsel %vm412_vm4, %v9099_v2, %v9098_v53  ;;  %v2419_v22 = vsel %vm412_vm4, %v6457_v49, %v9099_v2  ;;  %v2389_v5 = vmul.f32 %v2378_v56, %v9095_v44  ;;  %v7265_v49 = vpop.permute.xlu0 %3180  ;;  %v9107_v57 = vld [vmem:[#allocation116_spill] sm:$0xff]  ;;  %v9108_v40 = vld [vmem:[#allocation62_spill] sm:$0xff] }
 0x2f4   :  { %v2390_v23 = vmul.f32 %v2382_v9, %v9095_v44  ;;  %v2416_v14 = vsel %vm412_vm4, %v9101_v24, %v9100_v17  ;;  %v2417_v18 = vsel %vm412_vm4, %v9098_v53, %v9101_v24  ;;  %v2426_v36 = vrot.slane %v2421_v54, %v4123_v8  ;;  %v9110_v24 = vld [vmem:[#allocation37_spill] sm:$0xff] }
 0x2f5   :  { %3395 = vrot.lane.b32.xlu1 %v7033_v26, %s4054_s2  ;;  %v2430_v34 = vrot.slane %v2420_v13, %v4123_v8  ;;  %v2415_v44 = vsel %vm412_vm4, %v9100_v17, %v9102_v33  ;;  %v2422_v41 = vsel %vm412_vm4, %v9102_v33, %v9097_v12  ;;  %v2434_v6 = vrot.slane %v2419_v22, %v4123_v8  ;;  %v9109_v13 = vld [vmem:[#allocation120_spill] sm:$0xff] }
 0x2f6   :  { %v2438_v29 = vrot.slane %v2418_v58, %v4123_v8  ;;  %v2492_v0 = vsel %vm489_vm5, %v9104_v25, %v9103_v35  ;;  %v2493_v32 = vsel %vm489_vm5, %v9105_v16, %v9104_v25  ;;  %v2442_v62 = vrot.slane %v2417_v18, %v4123_v8 }
 0x2f7   :  { %3825 = vrot.lane.b32.xlu0 %v6743_v1, %s4067_s24  ;;  %v7263_v28 = vpop.permute.xlu1 %2762  ;;  %v2446_v21 = vrot.slane %v2416_v14, %v4123_v8  ;;  %v2490_v48 = vsel %vm489_vm5, %v9107_v57, %v9106_v63  ;;  %v2491_v52 = vsel %vm489_vm5, %v9103_v35, %v9107_v57  ;;  %v2450_v56 = vrot.slane %v2415_v44, %v4123_v8 }
 0x2f8   :  { %v2454_v9 = vrot.slane %v2422_v41, %v4123_v8  ;;  %v2488_v12 = vsel %vm489_vm5, %v9109_v13, %v9108_v40  ;;  %v2489_v54 = vsel %vm489_vm5, %v9106_v63, %v9109_v13  ;;  %v2397_v2 = vadd.f32 %v2389_v5, %v2325_v19  ;;  %v7321_v41 = vpop.permute.xlu0 %3184  ;;  %v9112_v63 = vld [vmem:[#allocation99_spill] sm:$0xff] }
 0x2f9   :  { %3399 = vrot.lane.b32.xlu1 %v7037_v59, %s4054_s2  ;;  %v2398_v58 = vadd.f32 %v2390_v23, %v2326_v20  ;;  %v2498_v22 = vrot.slane %v2493_v32, %v4123_v8  ;;  %v2502_v17 = vrot.slane %v2492_v0, %v4123_v8  ;;  %v2455_v14 = vmul.f32 %v2426_v36, %v9110_v24 }
 0x2fa   :  { %v2456_v18 = vmul.f32 %v2430_v34, %v9110_v24  ;;  %v2506_v33 = vrot.slane %v2491_v52, %v4123_v8  ;;  %v2510_v44 = vrot.slane %v2490_v48, %v4123_v8  ;;  %v2457_v19 = vmul.f32 %v2434_v6, %v9110_v24  ;;  %v9111_v6 = vld [vmem:[#allocation45_spill] sm:$0xff] }
 0x2fb   :  { %3829 = vrot.lane.b32.xlu0 %v6755_v3, %s4067_s24  ;;  %v7311_v53 = vpop.permute.xlu1 %2822  ;;  %v2458_v20 = vmul.f32 %v2438_v29, %v9110_v24  ;;  %v2514_v5 = vrot.slane %v2489_v54, %v4123_v8  ;;  %v2518_v23 = vrot.slane %v2488_v12, %v4123_v8  ;;  %v2459_v36 = vmul.f32 %v2442_v62, %v9110_v24 }
 0x2fc   :  { %v2460_v34 = vmul.f32 %v2446_v21, %v9110_v24  ;;  %v2461_v35 = vmul.f32 %v2450_v56, %v9110_v24  ;;  %v2462_v25 = vmul.f32 %v2454_v9, %v9110_v24  ;;  %v2527_v32 = vmul.f32 %v2498_v22, %v9111_v6 }
 0x2fd   :  { %3459 = vrot.lane.b32.xlu1 %v6973_v50, %s4056_s1  ;;  %v2528_v29 = vmul.f32 %v2502_v17, %v9111_v6  ;;  %v2487_v57 = vsel %vm489_vm5, %v9108_v40, %v9112_v63  ;;  %v2494_v62 = vsel %vm489_vm5, %v9112_v63, %v9105_v16  ;;  %v2463_v21 = vadd.f32 %v2455_v14, %v2391_v55 }
 0x2fe   :  { %v2464_v48 = vadd.f32 %v2456_v18, %v2392_v31  ;;  %v2529_v52 = vmul.f32 %v2506_v33, %v9111_v6  ;;  %v2530_v56 = vmul.f32 %v2510_v44, %v9111_v6  ;;  %v2465_v9 = vadd.f32 %v2457_v19, %v7227_v37  ;;  %v7361_v37 = vpop.permute.xlu0 %3188  ;;  %v9114_v44 = vld [vmem:[#allocation101_spill] sm:$0xff]  ;;  %v9115_v19 = vld [vmem:[#allocation80_spill] sm:$0xff] }
 0x2ff   :  { %3889 = vrot.lane.b32.xlu0 %v6719_v45, %s4069_s25  ;;  %v7333_v0 = vpop.permute.xlu1 %2826  ;;  %v2466_v13 = vadd.f32 %v2458_v20, %v7229_v27  ;;  %v2531_v40 = vmul.f32 %v2514_v5, %v9111_v6  ;;  %v2532_v12 = vmul.f32 %v2518_v23, %v9111_v6  ;;  %v2467_v16 = vadd.f32 %v2459_v36, %v7239_v39  ;;  %v9113_v39 = vld [vmem:[#allocation67_spill] sm:$0xff]  ;;  %v9117_v23 = vld [vmem:[#allocation126_spill] sm:$0xff] }
 0x300   :  { %v2468_v55 = vadd.f32 %v2460_v34, %v7241_v30  ;;  %v2522_v31 = vrot.slane %v2487_v57, %v4123_v8  ;;  %v2526_v54 = vrot.slane %v2494_v62, %v4123_v8  ;;  %v2469_v27 = vadd.f32 %v2461_v35, %v2397_v2 }
 0x301   :  { %3463 = vrot.lane.b32.xlu1 %v6977_v42, %s4056_s1  ;;  %v2470_v17 = vadd.f32 %v2462_v25, %v2398_v58  ;;  %v2535_v24 = vadd.f32 %v2527_v32, %v2463_v21  ;;  %v2536_v14 = vadd.f32 %v2528_v29, %v2464_v48  ;;  %v2537_v18 = vadd.f32 %v2529_v52, %v2465_v9  ;;  %v9116_v58 = vld [vmem:[#allocation64_spill] sm:$0xff]  ;;  %v9118_v32 = vld [vmem:[#allocation82_spill] sm:$0xff] }
 0x302   :  { %v2538_v33 = vadd.f32 %v2530_v56, %v2466_v13  ;;  %v2564_v30 = vsel %vm566_vm6, %v9114_v44, %v9113_v39  ;;  %v2565_v20 = vsel %vm566_vm6, %v9115_v19, %v9114_v44  ;;  %v2539_v5 = vadd.f32 %v2531_v40, %v2467_v16  ;;  %v9119_v29 = vld [vmem:[#allocation130_spill] sm:$0xff]  ;;  %v9120_v52 = vld [vmem:[#allocation84_spill] sm:$0xff]  ;;  %v9121_v56 = vld [vmem:[#allocation117_spill] sm:$0xff] }
 0x303   :  { %3893 = vrot.lane.b32.xlu0 %v6731_v47, %s4069_s25  ;;  %v7359_v22 = vpop.permute.xlu1 %2830  ;;  %v2540_v2 = vadd.f32 %v2532_v12, %v2468_v55  ;;  %v2562_v36 = vsel %vm566_vm6, %v9117_v23, %v9116_v58  ;;  %v2563_v34 = vsel %vm566_vm6, %v9113_v39, %v9117_v23  ;;  %v2533_v35 = vmul.f32 %v2522_v31, %v9111_v6  ;;  %v9122_v9 = vld [vmem:[#allocation66_spill] sm:$0xff] }
 0x304   :  { %v2534_v25 = vmul.f32 %v2526_v54, %v9111_v6  ;;  %v2560_v63 = vsel %vm566_vm6, %v9119_v29, %v9118_v32  ;;  %v2561_v57 = vsel %vm566_vm6, %v9116_v58, %v9119_v29  ;;  %v2570_v21 = vrot.slane %v2565_v20, %v4123_v8  ;;  %v9123_v16 = vld [vmem:[#allocation86_spill] sm:$0xff]  ;;  %v7417_v54 = vpop.permute.xlu0 %3192 }
 0x305   :  { %3467 = vrot.lane.b32.xlu1 %v7033_v26, %s4056_s1  ;;  %v2574_v48 = vrot.slane %v2564_v30, %v4123_v8  ;;  %v2636_v6 = vsel %vm643_vm7, %v9121_v56, %v9120_v52  ;;  %v2637_v13 = vsel %vm643_vm7, %v9122_v9, %v9121_v56  ;;  %v2578_v40 = vrot.slane %v2563_v34, %v4123_v8  ;;  %v9124_v30 = vld [vmem:[#allocation142_spill] sm:$0xff]  ;;  %v9126_v56 = vld [vmem:[#allocation53_spill] sm:$0xff] }
 0x306   :  { %v2582_v12 = vrot.slane %v2562_v36, %v4123_v8  ;;  %v2634_v55 = vsel %vm643_vm7, %v7053_v4, %v9123_v16  ;;  %v2635_v31 = vsel %vm643_vm7, %v9120_v52, %v7053_v4  ;;  %v2586_v39 = vrot.slane %v2561_v57, %v4123_v8  ;;  %v9125_v36 = vld [vmem:[#allocation71_spill] sm:$0xff] }
 0x307   :  { %3897 = vrot.lane.b32.xlu0 %v6743_v1, %s4069_s25  ;;  %v7393_v62 = vpop.permute.xlu1 %2834  ;;  %v2590_v44 = vrot.slane %v2560_v63, %v4123_v8  ;;  %v2559_v20 = vsel %vm566_vm6, %v9118_v32, %v9124_v30  ;;  %v2566_v58 = vsel %vm566_vm6, %v9124_v30, %v9115_v19  ;;  %v2642_v4 = vrot.slane %v2637_v13, %v4123_v8 }
 0x308   :  { %v2646_v23 = vrot.slane %v2636_v6, %v4123_v8  ;;  %v2632_v34 = vsel %vm643_vm7, %v7083_v15, %v9125_v36  ;;  %v2633_v32 = vsel %vm643_vm7, %v9123_v16, %v7083_v15  ;;  %v2541_v19 = vadd.f32 %v2533_v35, %v2469_v27 }
 0x309   :  { %3471 = vrot.lane.b32.xlu1 %v7037_v59, %s4056_s1  ;;  %v2542_v63 = vadd.f32 %v2534_v25, %v2470_v17  ;;  %v2650_v57 = vrot.slane %v2635_v31, %v4123_v8  ;;  %v2654_v52 = vrot.slane %v2634_v55, %v4123_v8  ;;  %v2599_v6 = vmul.f32 %v2570_v21, %v9126_v56  ;;  %v9127_v55 = vld [vmem:[#allocation61_spill] sm:$0xff] }
 0x30a   :  { %v2600_v13 = vmul.f32 %v2574_v48, %v9126_v56  ;;  %v2594_v30 = vrot.slane %v2559_v20, %v4123_v8  ;;  %v2601_v15 = vmul.f32 %v2578_v40, %v9126_v56  ;;  %v2602_v27 = vmul.f32 %v2582_v12, %v9126_v56  ;;  %v7461_v20 = vpop.permute.xlu0 %3252 }
 0x30b   :  { %3901 = vrot.lane.b32.xlu0 %v6755_v3, %s4069_s25  ;;  %v7441_v29 = vpop.permute.xlu1 %2894  ;;  %v2598_v3 = vrot.slane %v2566_v58, %v4123_v8  ;;  %v2658_v17 = vrot.slane %v2633_v32, %v4123_v8  ;;  %v2662_v35 = vrot.slane %v2632_v34, %v4123_v8  ;;  %v2603_v25 = vmul.f32 %v2586_v39, %v9126_v56 }
 0x30c   :  { %v2604_v16 = vmul.f32 %v2590_v44, %v9126_v56  ;;  %v2671_v21 = vmul.f32 %v2642_v4, %v9127_v55  ;;  %v2672_v48 = vmul.f32 %v2646_v23, %v9127_v55  ;;  %v2673_v40 = vmul.f32 %v2650_v57, %v9127_v55 }
 0x30d   :  { %3531 = vrot.lane.b32.xlu1 %v6973_v50, %s4059_s20  ;;  %v2674_v12 = vmul.f32 %v2654_v52, %v9127_v55  ;;  %v2631_v58 = vsel %vm643_vm7, %v9125_v36, %v7127_v7  ;;  %v2638_v39 = vsel %vm643_vm7, %v7127_v7, %v9122_v9  ;;  %v2607_v44 = vadd.f32 %v2599_v6, %v2535_v24 }
 0x30e   :  { %v2608_v4 = vadd.f32 %v2600_v13, %v2536_v14  ;;  %v2605_v23 = vmul.f32 %v2594_v30, %v9126_v56  ;;  %v2606_v34 = vmul.f32 %v2598_v3, %v9126_v56  ;;  %v2609_v32 = vadd.f32 %v2601_v15, %v2537_v18  ;;  %v9129_v56 = vld [vmem:[#allocation149_spill] sm:$0xff] }
 0x30f   :  { %v7459_v31 = vpop.permute.xlu1 %2898  ;;  %v2610_v57 = vadd.f32 %v2602_v27, %v2538_v33  ;;  %v2675_v52 = vmul.f32 %v2658_v17, %v9127_v55  ;;  %v2676_v36 = vmul.f32 %v2662_v35, %v9127_v55  ;;  %v2611_v1 = vadd.f32 %v2603_v25, %v2539_v5  ;;  %v9128_v33 = vld [vmem:[#allocation77_spill] sm:$0xff]  ;;  %v9130_v17 = vld [vmem:[#allocation92_spill] sm:$0xff] }
 0x310   :  { %v2612_v47 = vadd.f32 %v2604_v16, %v2540_v2  ;;  %v2666_v45 = vrot.slane %v2631_v58, %v4123_v8  ;;  %v2670_v7 = vrot.slane %v2638_v39, %v4123_v8  ;;  %v2679_v24 = vadd.f32 %v2671_v21, %v2607_v44  ;;  %v7489_v2 = vpop.permute.xlu0 %3256  ;;  %v9131_v25 = vld [vmem:[#allocation69_spill] sm:$0xff]  ;;  %v9132_v21 = vld [vmem:[#allocation94_spill] sm:$0xff] }
 0x311   :  { %3535 = vrot.lane.b32.xlu1 %v6977_v42, %s4059_s20  ;;  %v2680_v14 = vadd.f32 %v2672_v48, %v2608_v4  ;;  %v2681_v6 = vadd.f32 %v2673_v40, %v2609_v32  ;;  %v2682_v13 = vadd.f32 %v2674_v12, %v2610_v57  ;;  %v2613_v3 = vadd.f32 %v2605_v23, %v2541_v19  ;;  %v9133_v48 = vld [vmem:[#allocation128_spill] sm:$0xff]  ;;  %v9134_v12 = vld [vmem:[#allocation107_spill] sm:$0xff]  ;;  %v9135_v58 = vld [vmem:[#allocation133_spill] sm:$0xff] }
 0x312   :  { %v2614_v18 = vadd.f32 %v2606_v34, %v2542_v63  ;;  %v2738_v30 = vmul.f32 %v9129_v56, %v9128_v33  ;;  %v2739_v5 = vmul.f32 %v6661_v43, %v9128_v33  ;;  %v2683_v15 = vadd.f32 %v2675_v52, %v2611_v1  ;;  %v9136_v39 = vld [vmem:[#allocation109_spill] sm:$0xff] }
 0x313   :  { %v7481_v9 = vpop.permute.xlu1 %2902  ;;  %v2684_v27 = vadd.f32 %v2676_v36, %v2612_v47  ;;  %v2769_v35 = vsel %vm104_vm0, %v7173_v51, %v9130_v17  ;;  %v2770_v19 = vsel %vm104_vm0, %v9131_v25, %v7173_v51  ;;  %v2677_v63 = vmul.f32 %v2666_v45, %v9127_v55  ;;  %v9137_v23 = vld [vmem:[#allocation81_spill] sm:$0xff] }
 0x314   :  { %v2678_v16 = vmul.f32 %v2670_v7, %v9127_v55  ;;  %v2767_v1 = vsel %vm104_vm0, %v7195_v60, %v9132_v21  ;;  %v2768_v43 = vsel %vm104_vm0, %v9130_v17, %v7195_v60  ;;  %v2740_v40 = vadd.f32 %v9133_v48, %v2679_v24  ;;  %v7541_v56 = vpop.permute.xlu0 %3260 }
 0x315   :  { %3539 = vrot.lane.b32.xlu1 %v7033_v26, %s4059_s20  ;;  %v2741_v51 = vadd.f32 %v9134_v12, %v2680_v14  ;;  %v2742_v45 = vadd.f32 %v9135_v58, %v2681_v6  ;;  %v2743_v55 = vadd.f32 %v9136_v39, %v2682_v13  ;;  %v2775_v44 = vrot.slane %v2770_v19, %v4123_v8  ;;  %v9138_v14 = vld [vmem:[#allocation140_spill] sm:$0xff]  ;;  %v9139_v13 = vld [vmem:[#allocation113_spill] sm:$0xff]  ;;  %v9140_v19 = vld [vmem:[#allocation98_spill] sm:$0xff] }
 0x316   :  { %v2779_v4 = vrot.slane %v2769_v35, %v4123_v8  ;;  %v2765_v60 = vsel %vm104_vm0, %v7223_v11, %v9137_v23  ;;  %v2766_v34 = vsel %vm104_vm0, %v9132_v21, %v7223_v11  ;;  %v2783_v32 = vrot.slane %v2768_v43, %v4123_v8  ;;  %v9144_v39 = vld [vmem:[#allocation102_spill] sm:$0xff] }
 0x317   :  { %v7509_v47 = vpop.permute.xlu1 %2906  ;;  %v2787_v57 = vrot.slane %v2767_v1, %v4123_v8  ;;  %v2764_v52 = vsel %vm104_vm0, %v9137_v23, %v7263_v28  ;;  %v2771_v36 = vsel %vm104_vm0, %v7263_v28, %v9131_v25  ;;  %v2685_v7 = vadd.f32 %v2677_v63, %v2613_v3  ;;  %v9141_v28 = vld [vmem:[#allocation100_spill] sm:$0xff] }
 0x318   :  { %v2686_v24 = vadd.f32 %v2678_v16, %v2614_v18  ;;  %v2744_v6 = vadd.f32 %v9138_v14, %v2683_v15  ;;  %v2745_v11 = vadd.f32 %v9139_v13, %v2684_v27  ;;  %v2791_v17 = vrot.slane %v2766_v34, %v4123_v8  ;;  %v9142_v27 = vld [vmem:[#allocation83_spill] sm:$0xff]  ;;  %v9143_v16 = vld [vmem:[#allocation88_spill] sm:$0xff] }
 0x319   :  { %3543 = vrot.lane.b32.xlu1 %v7037_v59, %s4059_s20  ;;  %v2795_v35 = vrot.slane %v2765_v60, %v4123_v8  ;;  %v2841_v21 = vsel %vm181_vm1, %v7311_v53, %v9140_v19  ;;  %v2842_v3 = vsel %vm181_vm1, %v9141_v28, %v7311_v53  ;;  %v2799_v18 = vrot.slane %v2764_v52, %v4123_v8 }
 0x31a   :  { %v2803_v15 = vrot.slane %v2771_v36, %v4123_v8  ;;  %v2839_v25 = vsel %vm181_vm1, %v7333_v0, %v9142_v27  ;;  %v2840_v63 = vsel %vm181_vm1, %v9140_v19, %v7333_v0  ;;  %v2804_v1 = vmul.f32 %v2775_v44, %v9143_v16 }
 0x31b   :  { %v7539_v33 = vpop.permute.xlu1 %2966  ;;  %v2805_v53 = vmul.f32 %v2779_v4, %v9143_v16  ;;  %v2806_v43 = vmul.f32 %v2783_v32, %v9143_v16  ;;  %v2807_v48 = vmul.f32 %v2787_v57, %v9143_v16  ;;  %v2847_v12 = vrot.slane %v2842_v3, %v4123_v8 }
 0x31c   :  { %v2851_v58 = vrot.slane %v2841_v21, %v4123_v8  ;;  %v2837_v23 = vsel %vm181_vm1, %v7359_v22, %v9144_v39  ;;  %v2838_v0 = vsel %vm181_vm1, %v9142_v27, %v7359_v22  ;;  %v2746_v4 = vadd.f32 %v2738_v30, %v2685_v7  ;;  %v7589_v22 = vpop.permute.xlu0 %3264  ;;  %v9145_v21 = vld [vmem:[#allocation79_spill] sm:$0xff] }
 0x31d   :  { %3603 = vrot.lane.b32.xlu1 %v6973_v50, %s4061_s21  ;;  %v2747_v60 = vadd.f32 %v2739_v5, %v2686_v24  ;;  %v2855_v34 = vrot.slane %v2840_v63, %v4123_v8  ;;  %v2859_v32 = vrot.slane %v2839_v25, %v4123_v8  ;;  %v2808_v57 = vmul.f32 %v2791_v17, %v9143_v16 }
 0x31e   :  { %v2809_v52 = vmul.f32 %v2795_v35, %v9143_v16  ;;  %v2810_v36 = vmul.f32 %v2799_v18, %v9143_v16  ;;  %v2811_v14 = vmul.f32 %v2803_v15, %v9143_v16  ;;  %v2812_v13 = vadd.f32 %v2804_v1, %v2740_v40  ;;  %v9146_v1 = vld [vmem:[#allocation89_spill] sm:$0xff] }
 0x31f   :  { %v7579_v44 = vpop.permute.xlu1 %2970  ;;  %v2813_v30 = vadd.f32 %v2805_v53, %v2741_v51  ;;  %v2863_v5 = vrot.slane %v2838_v0, %v4123_v8  ;;  %v2867_v7 = vrot.slane %v2837_v23, %v4123_v8  ;;  %v2814_v24 = vadd.f32 %v2806_v43, %v2742_v45  ;;  %v9147_v43 = vld [vmem:[#allocation104_spill] sm:$0xff] }
 0x320   :  { %v2815_v19 = vadd.f32 %v2807_v48, %v2743_v55  ;;  %v2876_v3 = vmul.f32 %v2847_v12, %v9145_v21  ;;  %v2877_v17 = vmul.f32 %v2851_v58, %v9145_v21  ;;  %v2878_v35 = vmul.f32 %v2855_v34, %v9145_v21 }
 0x321   :  { %3607 = vrot.lane.b32.xlu1 %v6977_v42, %s4061_s21  ;;  %v2879_v18 = vmul.f32 %v2859_v32, %v9145_v21  ;;  %v2836_v40 = vsel %vm181_vm1, %v9144_v39, %v7393_v62  ;;  %v2843_v51 = vsel %vm181_vm1, %v7393_v62, %v9141_v28  ;;  %v2816_v45 = vadd.f32 %v2808_v57, %v2744_v6  ;;  %v7629_v39 = vpop.permute.xlu0 %3385  ;;  %v9149_v32 = vld [vmem:[#allocation112_spill] sm:$0xff] }
 0x322   :  { %v2817_v55 = vadd.f32 %v2809_v52, %v2745_v11  ;;  %v2818_v15 = vadd.f32 %v2810_v36, %v2746_v4  ;;  %v2819_v25 = vadd.f32 %v2811_v14, %v2747_v60  ;;  %v2880_v63 = vmul.f32 %v2863_v5, %v9145_v21  ;;  %v9148_v11 = vld [vmem:[#allocation108_spill] sm:$0xff]  ;;  %v9150_v14 = vld [vmem:[#allocation97_spill] sm:$0xff] }
 0x323   :  { %v7595_v27 = vpop.permute.xlu1 %2974  ;;  %v2881_v16 = vmul.f32 %v2867_v7, %v9145_v21  ;;  %v2913_v53 = vsel %vm258_vm2, %v7441_v29, %v9146_v1  ;;  %v2914_v62 = vsel %vm258_vm2, %v9147_v43, %v7441_v29  ;;  %v2871_v28 = vrot.slane %v2836_v40, %v4123_v8 }
 0x324   :  { %v2875_v6 = vrot.slane %v2843_v51, %v4123_v8  ;;  %v2911_v48 = vsel %vm258_vm2, %v7459_v31, %v9148_v11  ;;  %v2912_v12 = vsel %vm258_vm2, %v9146_v1, %v7459_v31  ;;  %v2884_v23 = vadd.f32 %v2876_v3, %v2812_v13  ;;  %v9152_v51 = vld [vmem:[#allocation118_spill] sm:$0xff] }
 0x325   :  { %3611 = vrot.lane.b32.xlu1 %v7033_v26, %s4061_s21  ;;  %v2885_v0 = vadd.f32 %v2877_v17, %v2813_v30  ;;  %v2886_v29 = vadd.f32 %v2878_v35, %v2814_v24  ;;  %v2887_v4 = vadd.f32 %v2879_v18, %v2815_v19  ;;  %v2919_v60 = vrot.slane %v2914_v62, %v4123_v8  ;;  %v9151_v30 = vld [vmem:[#allocation114_spill] sm:$0xff] }
 0x326   :  { %v2923_v34 = vrot.slane %v2913_v53, %v4123_v8  ;;  %v2908_v57 = vsel %vm258_vm2, %v9149_v32, %v7509_v47  ;;  %v2915_v31 = vsel %vm258_vm2, %v7509_v47, %v9147_v43  ;;  %v2927_v52 = vrot.slane %v2912_v12, %v4123_v8 }
 0x327   :  { %v2979_v58 = vpop.permute.xlu1 %2978  ;;  %v2931_v36 = vrot.slane %v2911_v48, %v4123_v8  ;;  %v2985_v13 = vsel %vm335_vm3, %v7539_v33, %v9150_v14  ;;  %v2986_v5 = vsel %vm335_vm3, %v9151_v30, %v7539_v33  ;;  %v7653_v7 = vadd.f32 %v2880_v63, %v2816_v45  ;;  %v9153_v63 = vld [vmem:[#allocation87_spill] sm:$0xff] }
 0x328   :  { %v7655_v24 = vadd.f32 %v2881_v16, %v2817_v55  ;;  %v2882_v47 = vmul.f32 %v2871_v28, %v9145_v21  ;;  %v2883_v19 = vmul.f32 %v2875_v6, %v9145_v21  ;;  %v2909_v17 = vsel %vm258_vm2, %v7481_v9, %v9149_v32  ;;  %v7681_v55 = vpop.permute.xlu0 %3389  ;;  %v9154_v32 = vld [vmem:[#allocation122_spill] sm:$0xff] }
 0x329   :  { %3615 = vrot.lane.b32.xlu1 %v7037_v59, %s4061_s21  ;;  %v2910_v35 = vsel %vm258_vm2, %v9148_v11, %v7481_v9  ;;  %v2943_v33 = vrot.slane %v2908_v57, %v4123_v8  ;;  %v2947_v18 = vrot.slane %v2915_v31, %v4123_v8  ;;  %v2991_v21 = vrot.slane %v2986_v5, %v4123_v8  ;;  %v9155_v57 = vld [vmem:[#allocation95_spill] sm:$0xff] }
 0x32a   :  { %v2995_v40 = vrot.slane %v2985_v13, %v4123_v8  ;;  %v2983_v45 = vsel %vm335_vm3, %v7579_v44, %v9152_v51  ;;  %v2984_v9 = vsel %vm335_vm3, %v9150_v14, %v7579_v44  ;;  %v2948_v16 = vmul.f32 %v2919_v60, %v9153_v63 }
 0x32b   :  { %v3039_v3 = vpop.permute.xlu1 %3038  ;;  %v2949_v1 = vmul.f32 %v2923_v34, %v9153_v63  ;;  %v2950_v53 = vmul.f32 %v2927_v52, %v9153_v63  ;;  %v2951_v43 = vmul.f32 %v2931_v36, %v9153_v63  ;;  %v2890_v62 = vadd.f32 %v2882_v47, %v2818_v15 }
 0x32c   :  { %v2891_v28 = vadd.f32 %v2883_v19, %v2819_v25  ;;  %v2935_v6 = vrot.slane %v2910_v35, %v4123_v8  ;;  %v2939_v11 = vrot.slane %v2909_v17, %v4123_v8  ;;  %v2999_v12 = vrot.slane %v2984_v9, %v4123_v8  ;;  %v9157_v17 = vld [vmem:[#allocation124_spill] sm:$0xff] }
 0x32d   :  { %3675 = vrot.lane.b32.xlu1 %v6973_v50, %s4063_s22  ;;  %v3003_v44 = vrot.slane %v2983_v45, %v4123_v8  ;;  %v2980_v60 = vsel %vm335_vm3, %v9154_v32, %v2979_v58  ;;  %v2987_v34 = vsel %vm335_vm3, %v2979_v58, %v9151_v30  ;;  %v2954_v15 = vmul.f32 %v2943_v33, %v9153_v63  ;;  %v9156_v58 = vld [vmem:[#allocation105_spill] sm:$0xff] }
 0x32e   :  { %v2955_v25 = vmul.f32 %v2947_v18, %v9153_v63  ;;  %v3020_v31 = vmul.f32 %v2991_v21, %v9155_v57  ;;  %v3021_v52 = vmul.f32 %v2995_v40, %v9155_v57  ;;  %v2956_v36 = vadd.f32 %v2948_v16, %v2884_v23  ;;  %v7711_v18 = vpop.permute.xlu0 %3393 }
 0x32f   :  { %v3043_v48 = vpop.permute.xlu1 %3042  ;;  %v2957_v14 = vadd.f32 %v2949_v1, %v2885_v0  ;;  %v2958_v13 = vadd.f32 %v2950_v53, %v2886_v29  ;;  %v2959_v5 = vadd.f32 %v2951_v43, %v2887_v4  ;;  %v3015_v47 = vrot.slane %v2980_v60, %v4123_v8 }
 0x330   :  { %v3019_v19 = vrot.slane %v2987_v34, %v4123_v8  ;;  %v3057_v30 = vsel %vm412_vm4, %v3039_v3, %v9156_v58  ;;  %v3058_v35 = vsel %vm412_vm4, %v9157_v17, %v3039_v3  ;;  %v7714_v23 = vmul.f32 %v2935_v6, %v9153_v63 }
 0x331   :  { %3679 = vrot.lane.b32.xlu1 %v6977_v42, %s4063_s22  ;;  %v7717_v0 = vmul.f32 %v2939_v11, %v9153_v63  ;;  %v3022_v29 = vmul.f32 %v2999_v12, %v9155_v57  ;;  %v3023_v4 = vmul.f32 %v3003_v44, %v9155_v57  ;;  %v2962_v21 = vadd.f32 %v2954_v15, %v2890_v62  ;;  %v9158_v62 = vld [vmem:[#allocation136_spill] sm:$0xff] }
 0x332   :  { %v2963_v40 = vadd.f32 %v2955_v25, %v2891_v28  ;;  %v3028_v45 = vadd.f32 %v3020_v31, %v2956_v36  ;;  %v3029_v3 = vadd.f32 %v3021_v52, %v2957_v14  ;;  %v2981_v9 = vsel %vm335_vm3, %v7595_v27, %v9154_v32  ;;  %v7753_v25 = vpop.permute.xlu0 %3397  ;;  %v9160_v31 = vld [vmem:[#allocation103_spill] sm:$0xff] }
 0x333   :  { %v3047_v33 = vpop.permute.xlu1 %3046  ;;  %v2982_v63 = vsel %vm335_vm3, %v9152_v51, %v7595_v27  ;;  %v3063_v16 = vrot.slane %v3058_v35, %v4123_v8  ;;  %v3067_v1 = vrot.slane %v3057_v30, %v4123_v8  ;;  %v3026_v53 = vmul.f32 %v3015_v47, %v9155_v57  ;;  %v9159_v27 = vld [vmem:[#allocation115_spill] sm:$0xff] }
 0x334   :  { %v3027_v43 = vmul.f32 %v3019_v19, %v9155_v57  ;;  %v3055_v28 = vsel %vm412_vm4, %v3043_v48, %v9158_v62  ;;  %v3056_v6 = vsel %vm412_vm4, %v9156_v58, %v3043_v48  ;;  %v3030_v12 = vadd.f32 %v3022_v29, %v2958_v13 }
 0x335   :  { %3683 = vrot.lane.b32.xlu1 %v7033_v26, %s4063_s22  ;;  %v3031_v44 = vadd.f32 %v3023_v4, %v2959_v5  ;;  %v3007_v60 = vrot.slane %v2982_v63, %v4123_v8  ;;  %v3011_v34 = vrot.slane %v2981_v9, %v4123_v8  ;;  %v3092_v52 = vmul.f32 %v3063_v16, %v9160_v31  ;;  %v9161_v4 = vld [vmem:[#allocation121_spill] sm:$0xff] }
 0x336   :  { %v3093_v36 = vmul.f32 %v3067_v1, %v9160_v31  ;;  %v3071_v14 = vrot.slane %v3056_v6, %v4123_v8  ;;  %v3075_v13 = vrot.slane %v3055_v28, %v4123_v8  ;;  %v3034_v5 = vadd.f32 %v3026_v53, %v2962_v21  ;;  %v9162_v6 = vld [vmem:[#allocation111_spill] sm:$0xff] }
 0x337   :  { %v3051_v11 = vpop.permute.xlu1 %3050  ;;  %v3035_v47 = vadd.f32 %v3027_v43, %v2963_v40  ;;  %v3054_v35 = vsel %vm412_vm4, %v9158_v62, %v3047_v33  ;;  %v3100_v1 = vadd.f32 %v3092_v52, %v3028_v45  ;;  %v3025_v45 = vmul.f32 %v3011_v34, %v9155_v57 }
 0x338   :  { %v3052_v51 = vsel %vm412_vm4, %v9159_v27, %v3051_v11  ;;  %v3059_v32 = vsel %vm412_vm4, %v3051_v11, %v9157_v17  ;;  %v3053_v17 = vsel %vm412_vm4, %v3047_v33, %v9159_v27  ;;  %v3101_v53 = vadd.f32 %v3093_v36, %v3029_v3 }
 0x339   :  { %3687 = vrot.lane.b32.xlu1 %v7037_v59, %s4063_s22  ;;  %v3087_v48 = vrot.slane %v3052_v51, %v4123_v8  ;;  %v3091_v15 = vrot.slane %v3059_v32, %v4123_v8  ;;  %v3094_v33 = vmul.f32 %v3071_v14, %v9160_v31  ;;  %v3095_v43 = vmul.f32 %v3075_v13, %v9160_v31  ;;  %v7783_v32 = vpop.permute.xlu0 %3457 }
 0x33a   :  { %v3079_v62 = vrot.slane %v3054_v35, %v4123_v8  ;;  %v3083_v28 = vrot.slane %v3053_v17, %v4123_v8 }
 0x33b   :  { %v3098_v19 = vmul.f32 %v3087_v48, %v9160_v31  ;;  %v3099_v58 = vmul.f32 %v3091_v15, %v9160_v31  ;;  %v3111_v30 = vpop.permute.xlu1 %3110  ;;  %v3024_v48 = vmul.f32 %v3007_v60, %v9155_v57  ;;  %v2960_v57 = vadd.f32 %v7714_v23, %v7653_v7 }
 0x33c   :  { %v3129_v29 = vsel %vm489_vm5, %v3111_v30, %v7101_v46  ;;  %v3130_v21 = vsel %vm489_vm5, %v9161_v4, %v3111_v30  ;;  %v2961_v60 = vadd.f32 %v7717_v0, %v7655_v24  ;;  %v3102_v34 = vadd.f32 %v3094_v33, %v3030_v12 }
 0x33d   :  { %3747 = vrot.lane.b32.xlu1 %v6973_v50, %s4065_s23  ;;  %v3106_v40 = vadd.f32 %v3098_v19, %v3034_v5  ;;  %v3107_v9 = vadd.f32 %v3099_v58, %v3035_v47  ;;  %v3135_v63 = vrot.slane %v3130_v21, %v4123_v8  ;;  %v3139_v16 = vrot.slane %v3129_v29, %v4123_v8 }
 0x33e   :  { %v3103_v5 = vadd.f32 %v3095_v43, %v3031_v44  ;;  %v3096_v47 = vmul.f32 %v3079_v62, %v9160_v31  ;;  %v3032_v17 = vadd.f32 %v3024_v48, %v2960_v57  ;;  %v3033_v35 = vadd.f32 %v3025_v45, %v2961_v60 }
 0x33f   :  { %v3164_v11 = vmul.f32 %v3135_v63, %v9162_v6  ;;  %v3165_v27 = vmul.f32 %v3139_v16, %v9162_v6  ;;  %v3115_v51 = vpop.permute.xlu1 %3114 }
 0x340   :  { %v3127_v3 = vsel %vm489_vm5, %v3115_v51, %v7175_v10  ;;  %v3128_v15 = vsel %vm489_vm5, %v7101_v46, %v3115_v51  ;;  %v3097_v46 = vmul.f32 %v3083_v28, %v9160_v31  ;;  %v7815_v31 = vpop.permute.xlu0 %3461  ;;  %v3104_v29 = vadd.f32 %v3096_v47, %v3032_v17 }
 0x341   :  { %3751 = vrot.lane.b32.xlu1 %v6977_v42, %s4065_s23  ;;  %v3172_v52 = vadd.f32 %v3164_v11, %v3100_v1  ;;  %v3173_v36 = vadd.f32 %v3165_v27, %v3101_v53  ;;  %v3143_v14 = vrot.slane %v3128_v15, %v4123_v8  ;;  %v3147_v13 = vrot.slane %v3127_v3, %v4123_v8 }
 0x342   :  { %v3105_v21 = vadd.f32 %v3097_v46, %v3033_v35 }
 0x343   :  { %v3166_v19 = vmul.f32 %v3143_v14, %v9162_v6  ;;  %v3167_v58 = vmul.f32 %v3147_v13, %v9162_v6  ;;  %v3119_v30 = vpop.permute.xlu1 %3118  ;;  %v9163_v14 = vld [vmem:[#allocation119_spill] sm:$0xff] }
 0x344   :  { %v3125_v7 = vsel %vm489_vm5, %v3119_v30, %v7211_v38  ;;  %v3126_v24 = vsel %vm489_vm5, %v7175_v10, %v3119_v30  ;;  %v7831_v48 = vpop.permute.xlu0 %3465 }
 0x345   :  { %3755 = vrot.lane.b32.xlu1 %v7033_v26, %s4065_s23  ;;  %v3174_v23 = vadd.f32 %v3166_v19, %v3102_v34  ;;  %v3175_v0 = vadd.f32 %v3167_v58, %v3103_v5  ;;  %v3151_v12 = vrot.slane %v3126_v24, %v4123_v8  ;;  %v3155_v44 = vrot.slane %v3125_v7, %v4123_v8 }
 0x347   :  { %v3168_v63 = vmul.f32 %v3151_v12, %v9162_v6  ;;  %v3169_v16 = vmul.f32 %v3155_v44, %v9162_v6  ;;  %v3123_v1 = vpop.permute.xlu1 %3122 }
 0x348   :  { %v3124_v10 = vsel %vm489_vm5, %v7211_v38, %v3123_v1  ;;  %v3131_v53 = vsel %vm489_vm5, %v3123_v1, %v9161_v4  ;;  %v7855_v19 = vpop.permute.xlu0 %3469 }
 0x349   :  { %3759 = vrot.lane.b32.xlu1 %v7037_v59, %s4065_s23  ;;  %v3176_v33 = vadd.f32 %v3168_v63, %v3104_v29  ;;  %v3177_v43 = vadd.f32 %v3169_v16, %v3105_v21  ;;  %v3159_v62 = vrot.slane %v3124_v10, %v4123_v8  ;;  %v3163_v28 = vrot.slane %v3131_v53, %v4123_v8 }
 0x34b   :  { %v3170_v11 = vmul.f32 %v3159_v62, %v9162_v6  ;;  %v3171_v27 = vmul.f32 %v3163_v28, %v9162_v6  ;;  %v3183_v51 = vpop.permute.xlu1 %3182 }
 0x34c   :  { %v3201_v38 = vsel %vm566_vm6, %v3183_v51, %v7321_v41  ;;  %v3202_v4 = vsel %vm566_vm6, %v7265_v49, %v3183_v51  ;;  %v7871_v21 = vpop.permute.xlu0 %3529  ;;  %v9164_v51 = vld [vmem:[#allocation127_spill] sm:$0xff] }
 0x34d   :  { %3819 = vrot.lane.b32.xlu1 %v6973_v50, %s4067_s24  ;;  %v3178_v45 = vadd.f32 %v3170_v11, %v3106_v40  ;;  %v3179_v3 = vadd.f32 %v3171_v27, %v3107_v9  ;;  %v3207_v15 = vrot.slane %v3202_v4, %v4123_v8  ;;  %v3211_v6 = vrot.slane %v3201_v38, %v4123_v8 }
 0x34f   :  { %v3236_v13 = vmul.f32 %v3207_v15, %v9163_v14  ;;  %v3237_v57 = vmul.f32 %v3211_v6, %v9163_v14  ;;  %v3187_v60 = vpop.permute.xlu1 %3186 }
 0x350   :  { %v3199_v34 = vsel %vm566_vm6, %v3187_v60, %v7361_v37  ;;  %v3200_v5 = vsel %vm566_vm6, %v7321_v41, %v3187_v60  ;;  %v7895_v27 = vpop.permute.xlu0 %3533 }
 0x351   :  { %3823 = vrot.lane.b32.xlu1 %v6977_v42, %s4067_s24  ;;  %v3244_v40 = vadd.f32 %v3236_v13, %v3172_v52  ;;  %v3245_v9 = vadd.f32 %v3237_v57, %v3173_v36  ;;  %v3215_v47 = vrot.slane %v3200_v5, %v4123_v8  ;;  %v3219_v46 = vrot.slane %v3199_v34, %v4123_v8 }
 0x353   :  { %v3238_v58 = vmul.f32 %v3215_v47, %v9163_v14  ;;  %v3239_v30 = vmul.f32 %v3219_v46, %v9163_v14  ;;  %v3191_v17 = vpop.permute.xlu1 %3190 }
 0x354   :  { %v3197_v41 = vsel %vm566_vm6, %v3191_v17, %v7417_v54  ;;  %v3198_v52 = vsel %vm566_vm6, %v7361_v37, %v3191_v17  ;;  %v7911_v47 = vpop.permute.xlu0 %3537 }
 0x355   :  { %3827 = vrot.lane.b32.xlu1 %v7033_v26, %s4067_s24  ;;  %v3246_v36 = vadd.f32 %v3238_v58, %v3174_v23  ;;  %v3247_v35 = vadd.f32 %v3239_v30, %v3175_v0  ;;  %v3223_v7 = vrot.slane %v3198_v52, %v4123_v8  ;;  %v3227_v24 = vrot.slane %v3197_v41, %v4123_v8 }
 0x357   :  { %v3240_v12 = vmul.f32 %v3223_v7, %v9163_v14  ;;  %v3241_v44 = vmul.f32 %v3227_v24, %v9163_v14  ;;  %v3195_v29 = vpop.permute.xlu1 %3194 }
 0x358   :  { %v3196_v37 = vsel %vm566_vm6, %v7417_v54, %v3195_v29  ;;  %v3203_v23 = vsel %vm566_vm6, %v3195_v29, %v7265_v49 }
 0x359   :  { %3831 = vrot.lane.b32.xlu1 %v7037_v59, %s4067_s24  ;;  %v3248_v0 = vadd.f32 %v3240_v12, %v3176_v33  ;;  %v3249_v63 = vadd.f32 %v3241_v44, %v3177_v43  ;;  %v3231_v16 = vrot.slane %v3196_v37, %v4123_v8  ;;  %v3235_v1 = vrot.slane %v3203_v23, %v4123_v8  ;;  %v7935_v44 = vpop.permute.xlu0 %3541  ;;  %v9165_v23 = vld [vmem:[#allocation22_spill] sm:$0xff] }
 0x35b   :  { %v3242_v10 = vmul.f32 %v3231_v16, %v9163_v14  ;;  %v3243_v53 = vmul.f32 %v3235_v1, %v9163_v14  ;;  %v3255_v62 = vpop.permute.xlu1 %3254  ;;  %v9166_v16 = vld [vmem:[#allocation90_spill] sm:$0xff] }
 0x35c   :  { %v3273_v54 = vsel %vm643_vm7, %v3255_v62, %v7489_v2  ;;  %v3274_v49 = vsel %vm643_vm7, %v7461_v20, %v3255_v62  ;;  %v3369_v1 = vmul.f32 %v9166_v16, %v9165_v23 }
 0x35d   :  { %3891 = vrot.lane.b32.xlu1 %v6973_v50, %s4069_s25  ;;  %v3250_v33 = vadd.f32 %v3242_v10, %v3178_v45  ;;  %v3251_v43 = vadd.f32 %v3243_v53, %v3179_v3  ;;  %v3279_v28 = vrot.slane %v3274_v49, %v4123_v8  ;;  %v3283_v11 = vrot.slane %v3273_v54, %v4123_v8 }
 0x35f   :  { %v3308_v38 = vmul.f32 %v3279_v28, %v9164_v51  ;;  %v3309_v4 = vmul.f32 %v3283_v11, %v9164_v51  ;;  %v3259_v15 = vpop.permute.xlu1 %3258  ;;  %v9167_v11 = vld [vmem:[#allocation40_spill] sm:$0xff] }
 0x360   :  { %v3271_v6 = vsel %vm643_vm7, %v3259_v15, %v7541_v56  ;;  %v3272_v45 = vsel %vm643_vm7, %v7489_v2, %v3259_v15  ;;  %v9168_v15 = vld [vmem:[#allocation73_spill] sm:$0xff] }
 0x361   :  { %3895 = vrot.lane.b32.xlu1 %v6977_v42, %s4069_s25  ;;  %v3316_v3 = vadd.f32 %v3308_v38, %v3244_v40  ;;  %v3317_v14 = vadd.f32 %v3309_v4, %v3245_v9  ;;  %v3287_v13 = vrot.slane %v3272_v45, %v4123_v8  ;;  %v3291_v57 = vrot.slane %v3271_v6, %v4123_v8  ;;  %v7953_v4 = vpop.permute.xlu0 %3601 }
 0x362   :  { %v3371_v6 = vmul.f32 %v9168_v15, %v9165_v23 }
 0x363   :  { %v3310_v60 = vmul.f32 %v3287_v13, %v9164_v51  ;;  %v3311_v34 = vmul.f32 %v3291_v57, %v9164_v51  ;;  %v3263_v5 = vpop.permute.xlu1 %3262  ;;  %v3377_v49 = vadd.f32 %v3369_v1, %v3316_v3 }
 0x364   :  { %v3269_v2 = vsel %vm643_vm7, %v3263_v5, %v7589_v22  ;;  %v3270_v40 = vsel %vm643_vm7, %v7541_v56, %v3263_v5 }
 0x365   :  { %3899 = vrot.lane.b32.xlu1 %v7033_v26, %s4069_s25  ;;  %v3318_v9 = vadd.f32 %v3310_v60, %v3246_v36  ;;  %v3319_v46 = vadd.f32 %v3311_v34, %v3247_v35  ;;  %v3295_v58 = vrot.slane %v3270_v40, %v4123_v8  ;;  %v3299_v30 = vrot.slane %v3269_v2, %v4123_v8  ;;  %v9169_v40 = vld [vmem:[#allocation76_spill] sm:$0xff] }
 0x367   :  { %v3312_v17 = vmul.f32 %v3295_v58, %v9164_v51  ;;  %v3313_v41 = vmul.f32 %v3299_v30, %v9164_v51  ;;  %v3267_v52 = vpop.permute.xlu1 %3266  ;;  %v3379_v60 = vadd.f32 %v3371_v6, %v3318_v9  ;;  %v3373_v58 = vmul.f32 %v9169_v40, %v9165_v23 }
 0x368   :  { %v3268_v7 = vsel %vm643_vm7, %v7589_v22, %v3267_v52  ;;  %v3275_v56 = vsel %vm643_vm7, %v3267_v52, %v7461_v20  ;;  %v3370_v20 = vmul.f32 %v6973_v50, %v9165_v23  ;;  %v3374_v30 = vmul.f32 %v7033_v26, %v9165_v23 }
 0x369   :  { %3903 = vrot.lane.b32.xlu1 %v7037_v59, %s4069_s25  ;;  %v3320_v36 = vadd.f32 %v3312_v17, %v3248_v0  ;;  %v3321_v35 = vadd.f32 %v3313_v41, %v3249_v63  ;;  %v3303_v24 = vrot.slane %v3268_v7, %v4123_v8  ;;  %v3307_v12 = vrot.slane %v3275_v56, %v4123_v8  ;;  %v7981_v7 = vpop.permute.xlu0 %3605 }
 0x36a   :  { %v3378_v28 = vadd.f32 %v3370_v20, %v3317_v14 }
 0x36b   :  { %v3314_v29 = vmul.f32 %v3303_v24, %v9164_v51  ;;  %v3315_v37 = vmul.f32 %v3307_v12, %v9164_v51  ;;  %v3388_v22 = vpop.permute.xlu1 %3387  ;;  %v3381_v56 = vadd.f32 %v3373_v58, %v3320_v36  ;;  %v3382_v24 = vadd.f32 %v3374_v30, %v3321_v35 }
 0x36c   :  { %v3406_v0 = vsel %vm104_vm0, %v3388_v22, %v7681_v55  ;;  %v3407_v63 = vsel %vm104_vm0, %v7629_v39, %v3388_v22 }
 0x36d   :  { %v3322_v10 = vadd.f32 %v3314_v29, %v3250_v33  ;;  %v3323_v53 = vadd.f32 %v3315_v37, %v3251_v43  ;;  %v3412_v62 = vrot.slane %v3407_v63, %v4123_v8  ;;  %v3416_v54 = vrot.slane %v3406_v0, %v4123_v8  ;;  %v9170_v37 = vld [vmem:[#allocation96_spill] sm:$0xff] }
 0x36e   :  { %v3372_v33 = vmul.f32 %v6977_v42, %v9165_v23  ;;  %v3375_v22 = vmul.f32 %v9170_v37, %v9165_v23 }
 0x36f   :  { %v3441_v51 = vmul.f32 %v3412_v62, %v9167_v11  ;;  %v3442_v50 = vmul.f32 %v3416_v54, %v9167_v11  ;;  %v3392_v38 = vpop.permute.xlu1 %3391 }
 0x370   :  { %v3404_v43 = vsel %vm104_vm0, %v3392_v38, %v7711_v18  ;;  %v3405_v45 = vsel %vm104_vm0, %v7681_v55, %v3392_v38  ;;  %v3380_v34 = vadd.f32 %v3372_v33, %v3319_v46  ;;  %v3383_v63 = vadd.f32 %v3375_v22, %v3322_v10 }
 0x371   :  { %v3449_v3 = vadd.f32 %v3441_v51, %v3377_v49  ;;  %v3450_v14 = vadd.f32 %v3442_v50, %v3378_v28  ;;  %v3420_v13 = vrot.slane %v3405_v45, %v4123_v8  ;;  %v3424_v57 = vrot.slane %v3404_v43, %v4123_v8  ;;  %v7999_v49 = vpop.permute.xlu0 %3609  ;;  %v9171_v50 = vld [vmem:[#allocation146_spill] sm:$0xff] }
 0x373   :  { %v3443_v5 = vmul.f32 %v3420_v13, %v9167_v11  ;;  %v3444_v42 = vmul.f32 %v3424_v57, %v9167_v11  ;;  %v3396_v2 = vpop.permute.xlu1 %3395 }
 0x374   :  { %v3402_v55 = vsel %vm104_vm0, %v3396_v2, %v7753_v25  ;;  %v3403_v9 = vsel %vm104_vm0, %v7711_v18, %v3396_v2  ;;  %v3376_v18 = vmul.f32 %v7037_v59, %v9165_v23 }
 0x375   :  { %v3451_v46 = vadd.f32 %v3443_v5, %v3379_v60  ;;  %v3452_v17 = vadd.f32 %v3444_v42, %v3380_v34  ;;  %v3428_v41 = vrot.slane %v3403_v9, %v4123_v8  ;;  %v3432_v52 = vrot.slane %v3402_v55, %v4123_v8  ;;  %v8019_v60 = vpop.permute.xlu0 %3613 }
 0x376   :  { %v3384_v62 = vadd.f32 %v3376_v18, %v3323_v53 }
 0x377   :  { %v3445_v26 = vmul.f32 %v3428_v41, %v9167_v11  ;;  %v3446_v12 = vmul.f32 %v3432_v52, %v9167_v11  ;;  %v3400_v29 = vpop.permute.xlu1 %3399 }
 0x378   :  { %v3401_v16 = vsel %vm104_vm0, %v7753_v25, %v3400_v29  ;;  %v3408_v36 = vsel %vm104_vm0, %v3400_v29, %v7629_v39 }
 0x379   :  { %v3453_v35 = vadd.f32 %v3445_v26, %v3381_v56  ;;  %v3454_v1 = vadd.f32 %v3446_v12, %v3382_v24  ;;  %v3436_v20 = vrot.slane %v3401_v16, %v4123_v8  ;;  %v3440_v0 = vrot.slane %v3408_v36, %v4123_v8  ;;  %v8033_v41 = vpop.permute.xlu0 %3673 }
 0x37b   :  { %v3447_v54 = vmul.f32 %v3436_v20, %v9167_v11  ;;  %v3448_v59 = vmul.f32 %v3440_v0, %v9167_v11  ;;  %v3460_v23 = vpop.permute.xlu1 %3459 }
 0x37c   :  { %v3478_v25 = vsel %vm181_vm1, %v3460_v23, %v7815_v31  ;;  %v3479_v39 = vsel %vm181_vm1, %v7783_v32, %v3460_v23 }
 0x37d   :  { %v3455_v28 = vadd.f32 %v3447_v54, %v3383_v63  ;;  %v3456_v51 = vadd.f32 %v3448_v59, %v3384_v62  ;;  %v3484_v10 = vrot.slane %v3479_v39, %v4123_v8  ;;  %v3488_v53 = vrot.slane %v3478_v25, %v4123_v8  ;;  %v8053_v36 = vpop.permute.xlu0 %3677 }
 0x37f   :  { %v3513_v38 = vmul.f32 %v3484_v10, %v9171_v50  ;;  %v3514_v11 = vmul.f32 %v3488_v53, %v9171_v50  ;;  %v3464_v15 = vpop.permute.xlu1 %3463 }
 0x380   :  { %v3476_v6 = vsel %vm181_vm1, %v3464_v15, %v7831_v48  ;;  %v3477_v33 = vsel %vm181_vm1, %v7815_v31, %v3464_v15 }
 0x381   :  { %v3521_v43 = vadd.f32 %v3513_v38, %v3449_v3  ;;  %v3522_v45 = vadd.f32 %v3514_v11, %v3450_v14  ;;  %v3492_v13 = vrot.slane %v3477_v33, %v4123_v8  ;;  %v3496_v57 = vrot.slane %v3476_v6, %v4123_v8  ;;  %v8071_v10 = vpop.permute.xlu0 %3681 }
 0x383   :  { %v3515_v34 = vmul.f32 %v3492_v13, %v9171_v50  ;;  %v3516_v5 = vmul.f32 %v3496_v57, %v9171_v50  ;;  %v3468_v42 = vpop.permute.xlu1 %3467 }
 0x384   :  { %v3474_v2 = vsel %vm181_vm1, %v3468_v42, %v7855_v19  ;;  %v3475_v31 = vsel %vm181_vm1, %v7831_v48, %v3468_v42 }
 0x385   :  { %v3523_v3 = vadd.f32 %v3515_v34, %v3451_v46  ;;  %v3524_v14 = vadd.f32 %v3516_v5, %v3452_v17  ;;  %v3500_v40 = vrot.slane %v3475_v31, %v4123_v8  ;;  %v3504_v58 = vrot.slane %v3474_v2, %v4123_v8  ;;  %v8099_v42 = vpop.permute.xlu0 %3685 }
 0x387   :  { %v3517_v30 = vmul.f32 %v3500_v40, %v9171_v50  ;;  %v3518_v55 = vmul.f32 %v3504_v58, %v9171_v50  ;;  %v3472_v9 = vpop.permute.xlu1 %3471 }
 0x388   :  { %v3473_v52 = vsel %vm181_vm1, %v7855_v19, %v3472_v9  ;;  %v3480_v48 = vsel %vm181_vm1, %v3472_v9, %v7783_v32 }
 0x389   :  { %v3525_v46 = vadd.f32 %v3517_v30, %v3453_v35  ;;  %v3526_v17 = vadd.f32 %v3518_v55, %v3454_v1  ;;  %v3508_v56 = vrot.slane %v3473_v52, %v4123_v8  ;;  %v3512_v24 = vrot.slane %v3480_v48, %v4123_v8  ;;  %v9172_v35 = vld [vmem:[#allocation25_spill] sm:$0xff]  ;;  %v8107_v40 = vpop.permute.xlu0 %3745 }
 0x38b   :  { %v3519_v26 = vmul.f32 %v3508_v56, %v9171_v50  ;;  %v3520_v12 = vmul.f32 %v3512_v24, %v9171_v50  ;;  %v3532_v29 = vpop.permute.xlu1 %3531 }
 0x38c   :  { %v3550_v37 = vsel %vm258_vm2, %v3532_v29, %v7895_v27  ;;  %v3551_v19 = vsel %vm258_vm2, %v7871_v21, %v3532_v29 }
 0x38d   :  { %v3527_v32 = vadd.f32 %v3519_v26, %v3455_v28  ;;  %v3528_v22 = vadd.f32 %v3520_v12, %v3456_v51  ;;  %v3556_v18 = vrot.slane %v3551_v19, %v4123_v8  ;;  %v3560_v16 = vrot.slane %v3550_v37, %v4123_v8  ;;  %v8109_v30 = vpop.permute.xlu0 %3749 }
 0x38f   :  { %v3585_v1 = vmul.f32 %v3556_v18, %v9172_v35  ;;  %v3586_v20 = vmul.f32 %v3560_v16, %v9172_v35  ;;  %v3536_v0 = vpop.permute.xlu1 %3535 }
 0x390   :  { %v3548_v63 = vsel %vm258_vm2, %v3536_v0, %v7911_v47  ;;  %v3549_v62 = vsel %vm258_vm2, %v7895_v27, %v3536_v0 }
 0x391   :  { %v8063_v54 = vadd.f32 %v3585_v1, %v3521_v43  ;;  %v8065_v59 = vadd.f32 %v3586_v20, %v3522_v45  ;;  %v3564_v23 = vrot.slane %v3549_v62, %v4123_v8  ;;  %v3568_v25 = vrot.slane %v3548_v63, %v4123_v8  ;;  %v8111_v52 = vpop.permute.xlu0 %3753 }
 0x393   :  { %v3587_v39 = vmul.f32 %v3564_v23, %v9172_v35  ;;  %v3588_v28 = vmul.f32 %v3568_v25, %v9172_v35  ;;  %v3540_v51 = vpop.permute.xlu1 %3539 }
 0x394   :  { %v3546_v53 = vsel %vm258_vm2, %v3540_v51, %v7935_v44  ;;  %v3547_v27 = vsel %vm258_vm2, %v7911_v47, %v3540_v51 }
 0x395   :  { %v8079_v50 = vadd.f32 %v3587_v39, %v3523_v3  ;;  %v8081_v38 = vadd.f32 %v3588_v28, %v3524_v14  ;;  %v3572_v11 = vrot.slane %v3547_v27, %v4123_v8  ;;  %v3576_v15 = vrot.slane %v3546_v53, %v4123_v8 }
 0x397   :  { %v3589_v6 = vmul.f32 %v3572_v11, %v9172_v35  ;;  %v3590_v33 = vmul.f32 %v3576_v15, %v9172_v35  ;;  %v3544_v43 = vpop.permute.xlu1 %3543 }
 0x398   :  { %v3545_v45 = vsel %vm258_vm2, %v7935_v44, %v3544_v43  ;;  %v3552_v47 = vsel %vm258_vm2, %v3544_v43, %v7871_v21 }
 0x399   :  { %v8093_v13 = vadd.f32 %v3589_v6, %v3525_v46  ;;  %v8095_v57 = vadd.f32 %v3590_v33, %v3526_v17  ;;  %v3580_v34 = vrot.slane %v3545_v45, %v4123_v8  ;;  %v3584_v5 = vrot.slane %v3552_v47, %v4123_v8  ;;  %v8113_v46 = vpop.permute.xlu0 %3757 }
 0x39b   :  { %v3591_v2 = vmul.f32 %v3580_v34, %v9172_v35  ;;  %v3592_v31 = vmul.f32 %v3584_v5, %v9172_v35  ;;  %v3604_v3 = vpop.permute.xlu1 %3603 }
 0x39c   :  { %v3622_v29 = vsel %vm335_vm3, %v3604_v3, %v7981_v7  ;;  %v3623_v37 = vsel %vm335_vm3, %v7953_v4, %v3604_v3 }
 0x39d   :  { %v8103_v44 = vadd.f32 %v3591_v2, %v3527_v32  ;;  %v8105_v14 = vadd.f32 %v3592_v31, %v3528_v22  ;;  %v8117_v24 = vpop.permute.xlu0 %3817  ;;  %v3628_v18 = vrot.slane %v3623_v37, %v4123_v8  ;;  %v3632_v16 = vrot.slane %v3622_v29, %v4123_v8 }
 0x39f   :  { %v3608_v21 = vpop.permute.xlu1 %3607 }
 0x3a0   :  { %v3620_v32 = vsel %vm335_vm3, %v3608_v21, %v7999_v49  ;;  %v3621_v22 = vsel %vm335_vm3, %v7981_v7, %v3608_v21 }
 0x3a1   :  { %v8119_v12 = vpop.permute.xlu0 %3821  ;;  %v3636_v20 = vrot.slane %v3621_v22, %v4123_v8  ;;  %v3640_v0 = vrot.slane %v3620_v32, %v4123_v8 }
 0x3a3   :  { %v3612_v58 = vpop.permute.xlu1 %3611 }
 0x3a4   :  { %v3618_v35 = vsel %vm335_vm3, %v3612_v58, %v8019_v60  ;;  %v3619_v1 = vsel %vm335_vm3, %v7999_v49, %v3612_v58  ;;  %v9173_v49 = vld [vmem:[#allocation33_spill] sm:$0xff] }
 0x3a5   :  { %v8149_v23 = vpop.permute.xlu0 %3825  ;;  %v3644_v25 = vrot.slane %v3619_v1, %v4123_v8  ;;  %v3648_v39 = vrot.slane %v3618_v35, %v4123_v8  ;;  %v3657_v28 = vmul.f32 %v3628_v18, %v9173_v49  ;;  %v3658_v51 = vmul.f32 %v3632_v16, %v9173_v49  ;;  %v9174_v16 = vld [vmem:[#allocation39_spill] sm:$0xff] }
 0x3a6   :  { %v3660_v11 = vmul.f32 %v3640_v0, %v9173_v49 }
 0x3a7   :  { %v3616_v55 = vpop.permute.xlu1 %3615  ;;  %v3661_v15 = vmul.f32 %v3644_v25, %v9173_v49  ;;  %v3662_v6 = vmul.f32 %v3648_v39, %v9173_v49  ;;  %v3665_v45 = vadd.f32 %v3657_v28, %v8063_v54  ;;  %v3666_v47 = vadd.f32 %v3658_v51, %v8065_v59 }
 0x3a8   :  { %v3617_v7 = vsel %vm335_vm3, %v8019_v60, %v3616_v55  ;;  %v3624_v63 = vsel %vm335_vm3, %v3616_v55, %v7953_v4  ;;  %v3659_v60 = vmul.f32 %v3636_v20, %v9173_v49  ;;  %v3668_v29 = vadd.f32 %v3660_v11, %v8081_v38 }
 0x3a9   :  { %v3652_v53 = vrot.slane %v3617_v7, %v4123_v8  ;;  %v3656_v27 = vrot.slane %v3624_v63, %v4123_v8  ;;  %v8171_v34 = vpop.permute.xlu0 %3829  ;;  %v3669_v37 = vadd.f32 %v3661_v15, %v8093_v13  ;;  %v9175_v15 = vld [vmem:[#allocation47_spill] sm:$0xff] }
 0x3ab   :  { %v3676_v9 = vpop.permute.xlu1 %3675  ;;  %v3663_v5 = vmul.f32 %v3652_v53, %v9173_v49  ;;  %v3664_v2 = vmul.f32 %v3656_v27, %v9173_v49 }
 0x3ac   :  { %v3694_v33 = vsel %vm412_vm4, %v3676_v9, %v8053_v36  ;;  %v3695_v43 = vsel %vm412_vm4, %v8033_v41, %v3676_v9  ;;  %v3667_v9 = vadd.f32 %v3659_v60, %v8079_v50 }
 0x3ad   :  { %v3700_v21 = vrot.slane %v3695_v43, %v4123_v8  ;;  %v3704_v54 = vrot.slane %v3694_v33, %v4123_v8  ;;  %v8213_v18 = vadd.f32 %v3664_v2, %v8105_v14  ;;  %v8217_v20 = vpop.permute.xlu0 %3889 }
 0x3af   :  { %v3680_v48 = vpop.permute.xlu1 %3679  ;;  %v3730_v35 = vmul.f32 %v3704_v54, %v9174_v16 }
 0x3b0   :  { %v3692_v31 = vsel %vm412_vm4, %v3680_v48, %v8071_v10  ;;  %v3693_v3 = vsel %vm412_vm4, %v8053_v36, %v3680_v48  ;;  %v3670_v36 = vadd.f32 %v3662_v6, %v8095_v57 }
 0x3b1   :  { %v3708_v48 = vrot.slane %v3693_v3, %v4123_v8  ;;  %v3712_v32 = vrot.slane %v3692_v31, %v4123_v8  ;;  %v3738_v28 = vadd.f32 %v3730_v35, %v3666_v47  ;;  %v3894_v47 = vpop.permute.xlu0 %3893 }
 0x3b3   :  { %v3684_v17 = vpop.permute.xlu1 %3683  ;;  %v3731_v25 = vmul.f32 %v3708_v48, %v9174_v16 }
 0x3b4   :  { %v3690_v59 = vsel %vm412_vm4, %v3684_v17, %v8099_v42  ;;  %v3691_v58 = vsel %vm412_vm4, %v8071_v10, %v3684_v17  ;;  %v8210_v17 = vadd.f32 %v3663_v5, %v8103_v44 }
 0x3b5   :  { %v3716_v50 = vrot.slane %v3691_v58, %v4123_v8  ;;  %v3720_v38 = vrot.slane %v3690_v59, %v4123_v8  ;;  %v3739_v5 = vadd.f32 %v3731_v25, %v3667_v9 }
 0x3b7   :  { %v8115_v56 = vpop.permute.xlu1 %3687  ;;  %v3734_v39 = vmul.f32 %v3720_v38, %v9174_v16 }
 0x3b8   :  { %v3689_v0 = vsel %vm412_vm4, %v8099_v42, %v8115_v56  ;;  %v3696_v44 = vsel %vm412_vm4, %v8115_v56, %v8033_v41  ;;  %v3732_v41 = vmul.f32 %v3712_v32, %v9174_v16  ;;  %v3733_v56 = vmul.f32 %v3716_v50, %v9174_v16 }
 0x3b9   :  { %v3724_v51 = vrot.slane %v3689_v0, %v4123_v8  ;;  %v3728_v53 = vrot.slane %v3696_v44, %v4123_v8  ;;  %v3742_v3 = vadd.f32 %v3734_v39, %v3670_v36  ;;  %v3898_v0 = vpop.permute.xlu0 %3897 }
 0x3ba   :  { %v3740_v2 = vadd.f32 %v3732_v41, %v3668_v29  ;;  %v3741_v31 = vadd.f32 %v3733_v56, %v3669_v37 }
 0x3bb   :  { %v3748_v26 = vpop.permute.xlu1 %3747  ;;  %v8264_v48 = vmul.f32 %v3724_v51, %v9174_v16  ;;  %v8267_v9 = vmul.f32 %v3728_v53, %v9174_v16 }
 0x3bc   :  { %v3766_v22 = vsel %vm489_vm5, %v3748_v26, %v8109_v30  ;;  %v3767_v10 = vsel %vm489_vm5, %v8107_v40, %v3748_v26  ;;  %v3729_v26 = vmul.f32 %v3700_v21, %v9174_v16 }
 0x3bd   :  { %v3772_v14 = vrot.slane %v3767_v10, %v4123_v8 }
 0x3be   :  { %v3737_v49 = vadd.f32 %v3729_v26, %v3665_v45 }
 0x3bf   :  { %v3752_v19 = vpop.permute.xlu1 %3751  ;;  %v3801_v6 = vmul.f32 %v3772_v14, %v9175_v15 }
 0x3c0   :  { %v3764_v13 = vsel %vm489_vm5, %v3752_v19, %v8111_v52  ;;  %v3765_v57 = vsel %vm489_vm5, %v8109_v30, %v3752_v19  ;;  %v3776_v30 = vrot.slane %v3766_v22, %v4123_v8 }
 0x3c1   :  { %v3780_v19 = vrot.slane %v3765_v57, %v4123_v8  ;;  %v3784_v7 = vrot.slane %v3764_v13, %v4123_v8  ;;  %v3809_v36 = vadd.f32 %v3801_v6, %v3737_v49  ;;  %v9176_v57 = vld [vmem:[#allocation60_spill] sm:$0xff]  ;;  %v9177_v49 = vld [vmem:[#allocation57_spill] sm:$0xff] }
 0x3c2   :  { %v3802_v33 = vmul.f32 %v3776_v30, %v9175_v15 }
 0x3c3   :  { %v3756_v62 = vpop.permute.xlu1 %3755  ;;  %v3803_v43 = vmul.f32 %v3780_v19, %v9175_v15  ;;  %v3804_v45 = vmul.f32 %v3784_v7, %v9175_v15 }
 0x3c4   :  { %v3762_v63 = vsel %vm489_vm5, %v3756_v62, %v8113_v46  ;;  %v3763_v42 = vsel %vm489_vm5, %v8111_v52, %v3756_v62  ;;  %v3810_v32 = vadd.f32 %v3802_v33, %v3738_v28 }
 0x3c5   :  { %v3788_v60 = vrot.slane %v3763_v42, %v4123_v8  ;;  %v3792_v11 = vrot.slane %v3762_v63, %v4123_v8  ;;  %v3811_v22 = vadd.f32 %v3803_v43, %v3739_v5  ;;  %v3812_v10 = vadd.f32 %v3804_v45, %v3740_v2  ;;  %v3902_v45 = vpop.permute.xlu0 %3901 }
 0x3c7   :  { %v8159_v4 = vpop.permute.xlu1 %3759  ;;  %v3805_v29 = vmul.f32 %v3788_v60, %v9175_v15  ;;  %v3806_v37 = vmul.f32 %v3792_v11, %v9175_v15 }
 0x3c8   :  { %v3768_v50 = vsel %vm489_vm5, %v8159_v4, %v8107_v40 }
 0x3c9   :  { %v3813_v44 = vadd.f32 %v3805_v29, %v3741_v31  ;;  %v3814_v40 = vadd.f32 %v3806_v37, %v3742_v3  ;;  %v3800_v19 = vrot.slane %v3768_v50, %v4123_v8 }
 0x3cb   :  { %v3820_v55 = vpop.permute.xlu1 %3819 }
 0x3cc   :  { %v3838_v52 = vsel %vm566_vm6, %v3820_v55, %v8119_v12  ;;  %v3839_v62 = vsel %vm566_vm6, %v8117_v24, %v3820_v55 }
 0x3cd   :  { %v3844_v21 = vrot.slane %v3839_v62, %v4123_v8  ;;  %v3848_v54 = vrot.slane %v3838_v52, %v4123_v8 }
 0x3cf   :  { %v3824_v1 = vpop.permute.xlu1 %3823  ;;  %v3873_v16 = vmul.f32 %v3844_v21, %v9176_v57  ;;  %v3874_v26 = vmul.f32 %v3848_v54, %v9176_v57 }
 0x3d0   :  { %v3836_v59 = vsel %vm566_vm6, %v3824_v1, %v8149_v23  ;;  %v3837_v58 = vsel %vm566_vm6, %v8119_v12, %v3824_v1  ;;  %v3761_v12 = vsel %vm489_vm5, %v8113_v46, %v8159_v4 }
 0x3d1   :  { %v3852_v38 = vrot.slane %v3837_v58, %v4123_v8  ;;  %v3856_v13 = vrot.slane %v3836_v59, %v4123_v8  ;;  %v3796_v30 = vrot.slane %v3761_v12, %v4123_v8  ;;  %v3881_v56 = vadd.f32 %v3873_v16, %v3809_v36 }
 0x3d2   :  { %v3882_v39 = vadd.f32 %v3874_v26, %v3810_v32  ;;  %v3808_v58 = vmul.f32 %v3800_v19, %v9175_v15  ;;  %v3744_v12 = vadd.f32 %v8267_v9, %v8213_v18 }
 0x3d3   :  { %v3828_v27 = vpop.permute.xlu1 %3827  ;;  %v3876_v42 = vmul.f32 %v3856_v13, %v9176_v57  ;;  %v3807_v59 = vmul.f32 %v3796_v30, %v9175_v15 }
 0x3d4   :  { %v3834_v35 = vsel %vm566_vm6, %v3828_v27, %v8171_v34  ;;  %v3835_v46 = vsel %vm566_vm6, %v8149_v23, %v3828_v27  ;;  %v3875_v23 = vmul.f32 %v3852_v38, %v9176_v57  ;;  %v3816_v9 = vadd.f32 %v3808_v58, %v3744_v12 }
 0x3d5   :  { %v3860_v25 = vrot.slane %v3835_v46, %v4123_v8  ;;  %v3864_v41 = vrot.slane %v3834_v35, %v4123_v8  ;;  %v3884_v2 = vadd.f32 %v3876_v42, %v3812_v10  ;;  %v3743_v10 = vadd.f32 %v8264_v48, %v8210_v17 }
 0x3d6   :  { %v3883_v5 = vadd.f32 %v3875_v23, %v3811_v22 }
 0x3d7   :  { %v3832_v55 = vpop.permute.xlu1 %3831  ;;  %v3878_v31 = vmul.f32 %v3864_v41, %v9176_v57  ;;  %v3815_v18 = vadd.f32 %v3807_v59, %v3743_v10 }
 0x3d8   :  { %v3833_v27 = vsel %vm566_vm6, %v8171_v34, %v3832_v55  ;;  %v3840_v60 = vsel %vm566_vm6, %v3832_v55, %v8117_v24  ;;  %v3877_v34 = vmul.f32 %v3860_v25, %v9176_v57 }
 0x3d9   :  { %v3868_v24 = vrot.slane %v3833_v27, %v4123_v8  ;;  %v3872_v3 = vrot.slane %v3840_v60, %v4123_v8  ;;  %v3886_v15 = vadd.f32 %v3878_v31, %v3814_v40 }
 0x3da   :  { %v3885_v50 = vadd.f32 %v3877_v34, %v3813_v44 }
 0x3db   :  { %v3892_v1 = vpop.permute.xlu1 %3891  ;;  %v3879_v38 = vmul.f32 %v3868_v24, %v9176_v57  ;;  %v3880_v13 = vmul.f32 %v3872_v3, %v9176_v57 }
 0x3dc   :  { %v3910_v4 = vsel %vm643_vm7, %v3892_v1, %v3894_v47  ;;  %v3911_v14 = vsel %vm643_vm7, %v8217_v20, %v3892_v1 }
 0x3dd   :  { %v3916_v7 = vrot.slane %v3911_v14, %v4123_v8  ;;  %v3920_v63 = vrot.slane %v3910_v4, %v4123_v8  ;;  %v3887_v44 = vadd.f32 %v3879_v38, %v3815_v18  ;;  %v3888_v40 = vadd.f32 %v3880_v13, %v3816_v9 }
 0x3df   :  { %v3945_v28 = vmul.f32 %v3916_v7, %v9177_v49  ;;  %v3946_v51 = vmul.f32 %v3920_v63, %v9177_v49  ;;  %v3896_v53 = vpop.permute.xlu1 %3895 }
 0x3e0   :  { %v3908_v11 = vsel %vm643_vm7, %v3896_v53, %v3898_v0  ;;  %v3909_v52 = vsel %vm643_vm7, %v3894_v47, %v3896_v53 }
 0x3e1   :  { %v3953_v62 = vadd.f32 %v3945_v28, %v3881_v56  ;;  %v3954_v6 = vadd.f32 %v3946_v51, %v3882_v39  ;;  %v3924_v33 = vrot.slane %v3909_v52, %v4123_v8  ;;  %v3928_v43 = vrot.slane %v3908_v11, %v4123_v8 }
 0x3e3   :  { %3969 = vst [vmem:[%s8374_s3 + $0x40] sm:$0xff] %v3953_v62  ;;  %3970 = vst [vmem:[%s8374_s3 + $0x48] sm:$0xff] %v3954_v6  ;;  %v3947_v47 = vmul.f32 %v3924_v33, %v9177_v49  ;;  %v3948_v21 = vmul.f32 %v3928_v43, %v9177_v49  ;;  %v3900_v54 = vpop.permute.xlu1 %3899 }
 0x3e4   :  { %v3906_v55 = vsel %vm643_vm7, %v3900_v54, %v3902_v45  ;;  %v3907_v29 = vsel %vm643_vm7, %v3898_v0, %v3900_v54 }
 0x3e5   :  { %v3955_v37 = vadd.f32 %v3947_v47, %v3883_v5  ;;  %v3956_v36 = vadd.f32 %v3948_v21, %v3884_v2  ;;  %v3932_v32 = vrot.slane %v3907_v29, %v4123_v8  ;;  %v3936_v22 = vrot.slane %v3906_v55, %v4123_v8 }
 0x3e7   :  { %3971 = vst [vmem:[%s8374_s3 + $0x50] sm:$0xff] %v3955_v37  ;;  %3972 = vst [vmem:[%s8374_s3 + $0x58] sm:$0xff] %v3956_v36  ;;  %v3949_v16 = vmul.f32 %v3932_v32, %v9177_v49  ;;  %v3950_v17 = vmul.f32 %v3936_v22, %v9177_v49  ;;  %v3904_v48 = vpop.permute.xlu1 %3903 }
 0x3e8   :  { %v3905_v26 = vsel %vm643_vm7, %v3902_v45, %v3904_v48  ;;  %v3912_v57 = vsel %vm643_vm7, %v3904_v48, %v8217_v20 }
 0x3e9   :  { %v3957_v35 = vadd.f32 %v3949_v16, %v3885_v50  ;;  %v3958_v46 = vadd.f32 %v3950_v17, %v3886_v15  ;;  %v3940_v1 = vrot.slane %v3905_v26, %v4123_v8  ;;  %v3944_v0 = vrot.slane %v3912_v57, %v4123_v8 }
 0x3eb   :  { %3973 = vst [vmem:[%s8374_s3 + $0x60] sm:$0xff] %v3957_v35  ;;  %3974 = vst [vmem:[%s8374_s3 + $0x68] sm:$0xff] %v3958_v46  ;;  %v3951_v4 = vmul.f32 %v3940_v1, %v9177_v49  ;;  %v3952_v61 = vmul.f32 %v3944_v0, %v9177_v49 }
 0x3ed   :  { %v3959_v20 = vadd.f32 %v3951_v4, %v3887_v44  ;;  %v3960_v14 = vadd.f32 %v3952_v61, %v3888_v40 }
 0x3ef   :  { %3975 = vst [vmem:[%s8374_s3 + $0x70] sm:$0xff] %v3959_v20  ;;  %3976 = vst [vmem:[%s8374_s3 + $0x78] sm:$0xff] %v3960_v14 }

</bundles_post_ra>
